<compile_context>
chip_gen: v7x
topology: tpu7x:2x2x1
jax: 0.10.0
libtpu: 0.0.40
codegen_flags: <defaults>
</compile_context>

<pallas_src>
import functools

import jax
import jax.numpy as jnp
import numpy as np
from jax import lax
from jax.experimental import pallas as pl
from jax.experimental.pallas import tpu as pltpu

LANE = 128


def _round_up(x, m):
    return (x + m - 1) // m * m


def _pad_last(x, n):
    pad = n - x.shape[-1]
    if pad <= 0:
        return x
    widths = [(0, 0)] * (x.ndim - 1) + [(0, pad)]
    return jnp.pad(x, widths)


def _pad2(x, rows, cols):
    # x: (layer_num, a, b) -> (layer_num, rows, cols), zero padded
    return jnp.pad(x, ((0, 0), (0, rows - x.shape[1]), (0, cols - x.shape[2])))


def _nbytes(shape, dtype):
    return int(np.prod(shape)) * jnp.dtype(dtype).itemsize


def _vmem_capacity_bytes():
    try:
        return int(pltpu.get_tpu_info().vmem_capacity_bytes)
    except Exception:
        return 64 * 1024 * 1024          # conservative default (v7x per-TC VMEM)


# ----------------------------------------------------------------------------
# Fused kernel: one (segment i, layer j) step of the xl encoder
# ----------------------------------------------------------------------------
def xl_encoder_kernel(emb_ref, r_ref, vr_ref, u_ref,
                      wqkv_ref, wo_ref,
                      ln1g_ref, ln1b_ref, w1_ref, b1_ref, w2_ref, b2_ref,
                      ln2g_ref, ln2b_ref,
                      out_ref,
                      kv_ref, state_ref,
                      *, seg_len, mem_len, d_model, k_dim, kp, dp, reuse):
    i = pl.program_id(0)          # segment index (outer, sequential)
    j = pl.program_id(1)          # layer index  (inner, sequential)
    S, M = seg_len, mem_len
    Lp = kv_ref.shape[1]          # lane-dense key axis (multiple of 128)
    bf = jnp.bfloat16

    # one-time init of the rolling per-layer [K | V] caches
    @pl.when((i == 0) & (j == 0))
    def _():
        kv_ref[...] = jnp.zeros_like(kv_ref)

    # at the first layer of a segment, load the embedded tokens as the state
    @pl.when(j == 0)
    def _():
        state_ref[...] = emb_ref[0]

    cur = state_ref[...]                                  # (S, Dp) f32
    cur_bf = cur.astype(bf)

    # fused Q|K|V projection of only the S new rows (memory K/V comes from cache)
    proj = jnp.dot(cur_bf, wqkv_ref[j],
                   preferred_element_type=jnp.float32)    # (S, Kp+Kp+Dp)
    q = proj[:, 0:kp]                                     # (S, Kp) f32

    kvj = kv_ref.at[j]                                    # (Lp, Kp+Dp) bf16 view
    kvj[M:M + S, :] = proj[:, kp:].astype(bf)             # one store of [K|V] slab
    k_full = kvj[:, 0:kp]                                 # (Lp, Kp) bf16
    v_full = kvj[:, kp:]                                  # (Lp, Dp) bf16

    # scores: AC = (q+u) k^T ; BD = q r^T ; v.r^T bias precomputed on host
    dn = (((1,), (1,)), ((), ()))
    qu = (q + u_ref[...]).astype(bf)
    ac = lax.dot_general(qu, k_full, dn, preferred_element_type=jnp.float32)
    bd = lax.dot_general(q.astype(bf), r_ref[j], dn,
                         preferred_element_type=jnp.float32)          # (S, Lp)

    # additive attention mask generated in-kernel (no HBM mask array).
    # TODO(synk): stand-in for the unavailable reference generate_mask:
    # causal within the current segment + only the filled memory segments valid.
    kpos = lax.broadcasted_iota(jnp.int32, (S, Lp), 1)
    qpos = lax.broadcasted_iota(jnp.int32, (S, Lp), 0)
    mem_valid = (kpos < M) & (kpos >= (reuse - i) * S)
    cur_valid = (kpos >= M) & (kpos < M + S) & ((kpos - M) <= qpos)
    mask_bias = jnp.where(mem_valid | cur_valid, 0.0, -1e9)           # f32

    scale = 1.0 / float(np.sqrt(float(k_dim)))
    scores = (ac + bd + vr_ref[j]) * scale + mask_bias                # (S, Lp) f32

    m = jnp.max(scores, axis=-1, keepdims=True)
    e = jnp.exp(scores - m)
    denom = jnp.sum(e, axis=-1, keepdims=True)
    p = e * pl.reciprocal(denom, approx=True)                         # (S, Lp)

    attn = jnp.dot(p.astype(bf), v_full, preferred_element_type=jnp.float32)
    attn = jnp.dot(attn.astype(bf), wo_ref[j], preferred_element_type=jnp.float32)

    # masked two-pass LayerNorm (stats over the real d_model lanes; padded lanes
    # of every activation are identically zero end-to-end)
    inv_d = 1.0 / float(d_model)
    lane = lax.broadcasted_iota(jnp.int32, (1, dp), 1)
    lane_mask = (lane < d_model).astype(jnp.float32)

    x = cur + attn
    mu = jnp.sum(x, axis=-1, keepdims=True) * inv_d
    d1 = (x - mu) * lane_mask
    var = jnp.sum(d1 * d1, axis=-1, keepdims=True) * inv_d
    x = d1 * lax.rsqrt(var + 1e-5) * ln1g_ref[j] + ln1b_ref[j]

    # position-wise FFN (bf16 matmuls, f32 elementwise)
    h = jnp.maximum(
        jnp.dot(x.astype(bf), w1_ref[j], preferred_element_type=jnp.float32)
        + b1_ref[j], 0.0)
    y = jnp.dot(h.astype(bf), w2_ref[j], preferred_element_type=jnp.float32) + b2_ref[j]

    x2 = x + y
    mu2 = jnp.sum(x2, axis=-1, keepdims=True) * inv_d
    d2 = (x2 - mu2) * lane_mask
    var2 = jnp.sum(d2 * d2, axis=-1, keepdims=True) * inv_d
    new_state = d2 * lax.rsqrt(var2 + 1e-5) * ln2g_ref[j] + ln2b_ref[j]

    # roll this layer's K/V memory window left by one segment
    roll = kvj[S:M + S, :]
    kvj[0:M, :] = roll

    state_ref[...] = new_state

    # output block is resident across j; store only the last layer's state
    @pl.when(j == pl.num_programs(1) - 1)
    def _():
        out_ref[0] = new_state


# ----------------------------------------------------------------------------
# one_xl_Encoder forward
# ----------------------------------------------------------------------------
def one_xl_encoder_forward(src, pad_idx, R, params, cfg):
    seg_len = cfg["seg_len"]
    d_model = cfg["d_model"]
    k_dim = cfg["k_dim"]
    d_ff = cfg["d_ff"]
    layer_num = cfg["layer_num"]
    reuse = cfg["reuse_seg_num"]

    S = seg_len
    M = reuse * seg_len
    L = M + S
    Dp = _round_up(max(d_model, 1), LANE)
    Kp = _round_up(max(k_dim, 1), LANE)
    Fp = _round_up(max(d_ff, 1), LANE)
    Lp = _round_up(L, LANE)          # lane-dense key/score axis
    Cp = Kp + Dp                     # cached [K | V] lane width

    # ---- token glue: pad sequence to a whole number of segments, embed ----
    seq_len = src.shape[-1]
    pad = (-seq_len) % seg_len
    src_flat = src.reshape(-1)
    if pad:
        src_flat = jnp.concatenate(
            [src_flat, jnp.full((pad,), pad_idx, dtype=src_flat.dtype)])
    n_seg = src_flat.shape[0] // seg_len
    tok = src_flat.reshape(n_seg, seg_len)

    emb_p = _pad_last(params["emb"], Dp)                    # (V, Dp)
    states = jnp.take(emb_p, tok, axis=0)                   # (n_seg, S, Dp) f32

    # ---- stack + pad per-layer weights ----
    def stack(name):
        return jnp.stack([lp[name] for lp in params["layers"]], axis=0)

    bf = jnp.bfloat16
    wq = _pad2(stack("wq"), Dp, Kp)
    wk = _pad2(stack("wk"), Dp, Kp)
    wv = _pad2(stack("wv"), Dp, Dp)
    wqkv = jnp.concatenate([wq, wk, wv], axis=-1).astype(bf)   # (layer, Dp, 2Kp+Dp)
    wo = _pad2(stack("wo"), Dp, Dp).astype(bf)
    w1 = _pad2(stack("w1"), Dp, Fp).astype(bf)
    w2 = _pad2(stack("w2"), Fp, Dp).astype(bf)
    b1 = _pad2(stack("b1"), 1, Fp)
    b2 = _pad2(stack("b2"), 1, Dp)
    ln1g = _pad2(stack("ln1g"), 1, Dp)
    ln1b = _pad2(stack("ln1b"), 1, Dp)
    ln2g = _pad2(stack("ln2g"), 1, Dp)
    ln2b = _pad2(stack("ln2b"), 1, Dp)
    u = _pad_last(params["u"], Kp)                          # (1, Kp) f32

    # ---- host-precomputed R-side quantities (constant across the whole grid) ----
    rel = jnp.flip(R, axis=0)                               # (L, d_model)
    wr = stack("wr")                                        # (layer, d_model, k_dim)
    r_host = jnp.einsum("ld,ndk->nlk", rel, wr)             # (layer, L, k_dim) f32
    vr_host = jnp.einsum("ok,nlk->nol", params["v"], r_host)  # (layer, 1, L) f32
    r_in = jnp.pad(r_host, ((0, 0), (0, Lp - L), (0, Kp - k_dim))).astype(bf)
    vr_in = jnp.pad(vr_host, ((0, 0), (0, 0), (0, Lp - L)))

    kern = functools.partial(xl_encoder_kernel, seg_len=S, mem_len=M,
                             d_model=d_model, k_dim=k_dim, kp=Kp, dp=Dp,
                             reuse=reuse)

    seg_ix = lambda i, j: (i, 0, 0)       # per-segment blocks
    const3 = lambda i, j: (0, 0, 0)       # resident for the whole grid
    const2 = lambda i, j: (0, 0)

    # ---- VMEM budgeting from the real footprint + device capacity ----
    const_bytes = (
        _nbytes((layer_num, Lp, Kp), bf)                     # r
        + _nbytes((layer_num, 1, Lp), jnp.float32)           # vr bias
        + _nbytes((1, Kp), jnp.float32)                      # u
        + _nbytes((layer_num, Dp, 2 * Kp + Dp), bf)          # fused Wq|Wk|Wv
        + _nbytes((layer_num, Dp, Dp), bf)                   # wo
        + _nbytes((layer_num, Dp, Fp), bf)                   # w1
        + _nbytes((layer_num, Fp, Dp), bf)                   # w2
        + _nbytes((layer_num, 1, Fp), jnp.float32)           # b1
        + 5 * _nbytes((layer_num, 1, Dp), jnp.float32))      # b2 + 4 LN params
    stream_bytes = 2 * (_nbytes((1, S, Dp), jnp.float32)     # emb (double-buffered)
                        + _nbytes((1, S, Dp), jnp.float32))  # out (double-buffered)
    scratch_bytes = (_nbytes((layer_num, Lp, Cp), bf)        # K|V cache
                     + _nbytes((S, Dp), jnp.float32))        # carried state
    cap = _vmem_capacity_bytes()
    single_buffer_consts = (2 * const_bytes + stream_bytes + scratch_bytes) > cap // 4
    const_mult = 1 if single_buffer_consts else 2
    footprint = const_mult * const_bytes + stream_bytes + scratch_bytes
    vmem_limit = int(min(max(2 * footprint + (8 << 20), 16 << 20), int(cap * 0.9)))

    def cspec(shape, imap, single):
        if single:
            return pl.BlockSpec(shape, imap, pipeline_mode=pl.Buffered(1))
        return pl.BlockSpec(shape, imap)

    def build(single):
        in_specs = [
            pl.BlockSpec((1, S, Dp), seg_ix),                       # embedded segments
            cspec((layer_num, Lp, Kp), const3, single),             # r = flip(R) @ Wr
            cspec((layer_num, 1, Lp), const3, single),              # v . r^T bias
            cspec((1, Kp), const2, single),                         # u_vec
            cspec((layer_num, Dp, 2 * Kp + Dp), const3, single),    # fused Wq|Wk|Wv
            cspec((layer_num, Dp, Dp), const3, single),             # wo
            cspec((layer_num, 1, Dp), const3, single),              # ln1 gamma
            cspec((layer_num, 1, Dp), const3, single),              # ln1 beta
            cspec((layer_num, Dp, Fp), const3, single),             # w1
            cspec((layer_num, 1, Fp), const3, single),              # b1
            cspec((layer_num, Fp, Dp), const3, single),             # w2
            cspec((layer_num, 1, Dp), const3, single),              # b2
            cspec((layer_num, 1, Dp), const3, single),              # ln2 gamma
            cspec((layer_num, 1, Dp), const3, single),              # ln2 beta
        ]
        grid_spec = pltpu.PrefetchScalarGridSpec(
            num_scalar_prefetch=0,
            grid=(n_seg, layer_num),
            in_specs=in_specs,
            out_specs=pl.BlockSpec((1, S, Dp), seg_ix),
            scratch_shapes=[
                pltpu.VMEM((layer_num, Lp, Cp), jnp.bfloat16),      # rolling K|V cache
                pltpu.VMEM((S, Dp), jnp.float32),                   # carried hidden state
            ],
        )
        return pl.pallas_call(
            kern,
            out_shape=jax.ShapeDtypeStruct((n_seg, S, Dp), jnp.float32),
            grid_spec=grid_spec,
            compiler_params=pltpu.CompilerParams(
                dimension_semantics=("arbitrary", "arbitrary"),
                vmem_limit_bytes=vmem_limit,
            ),
        )

    args = (states, r_in, vr_in, u, wqkv, wo,
            ln1g, ln1b, w1, b1, w2, b2, ln2g, ln2b)
    try:
        out = build(single_buffer_consts)(*args)
    except Exception:
        # fall back to default double-buffered constant specs
        out = build(False)(*args)

    result = out.reshape(n_seg * S, Dp)
    return result[:seq_len, :d_model]


# ----------------------------------------------------------------------------
# Deterministic parameter construction (get_clones => identical layers at init)
# ----------------------------------------------------------------------------
def make_params(key, cfg):
    D, K, F, V = cfg["d_model"], cfg["k_dim"], cfg["d_ff"], cfg["vocab"]
    ks = jax.random.split(key, 12)
    s = 0.02
    layer = {
        "wq": s * jax.random.normal(ks[0], (D, K), jnp.float32),
        "wk": s * jax.random.normal(ks[1], (D, K), jnp.float32),
        "wv": s * jax.random.normal(ks[2], (D, D), jnp.float32),
        "wr": s * jax.random.normal(ks[3], (D, K), jnp.float32),
        "wo": s * jax.random.normal(ks[4], (D, D), jnp.float32),
        "w1": s * jax.random.normal(ks[5], (D, F), jnp.float32),
        "b1": jnp.zeros((1, F), jnp.float32),
        "w2": s * jax.random.normal(ks[6], (F, D), jnp.float32),
        "b2": jnp.zeros((1, D), jnp.float32),
        "ln1g": jnp.ones((1, D), jnp.float32),
        "ln1b": jnp.zeros((1, D), jnp.float32),
        "ln2g": jnp.ones((1, D), jnp.float32),
        "ln2b": jnp.zeros((1, D), jnp.float32),
    }
    return {
        "emb": s * jax.random.normal(ks[9], (V, D), jnp.float32),
        "u": jax.random.normal(ks[7], (1, K), jnp.float32),   # self.u_vec
        "v": jax.random.normal(ks[8], (1, K), jnp.float32),   # self.v_vec
        "layers": [layer] * cfg["layer_num"],                 # get_clones: identical at init
    }


if __name__ == "__main__":
    cfg = dict(vocab=50, d_model=32, k_dim=32, d_ff=64,
               seg_len=8, reuse_seg_num=2, layer_num=2)
    key = jax.random.PRNGKey(0)
    params = make_params(key, cfg)

    seq_len = 20                                              # not a multiple of seg_len
    src = jax.random.randint(jax.random.fold_in(key, 123),
                             (1, seq_len), 1, cfg["vocab"])

    # sinusoidal relative position encodings, length = (reuse + 1) * seg_len
    L = (cfg["reuse_seg_num"] + 1) * cfg["seg_len"]
    pos = jnp.arange(L, dtype=jnp.float32)[:, None]
    dim = jnp.arange(cfg["d_model"], dtype=jnp.float32)[None, :]
    R = jnp.sin(pos / (10000.0 ** (dim / cfg["d_model"]))).astype(jnp.float32)

    out = one_xl_encoder_forward(src, pad_idx=0, R=R, params=params, cfg=cfg)
    out = jax.block_until_ready(out)
    assert out.shape == (seq_len, cfg["d_model"])
    assert bool(jnp.all(jnp.isfinite(out)))
    print("KERNEL_OK")
</pallas_src>

<mosaic_0001>
module attributes {stable_mosaic.version = 11 : i64} {
  func.func @xl_encoder_kernel(%arg0: i32, %arg1: i32, %arg2: memref<1x8x128xf32, #tpu.memory_space<vmem>>, %arg3: memref<2x128x128xbf16, #tpu.memory_space<vmem>>, %arg4: memref<2x1x128xf32, #tpu.memory_space<vmem>>, %arg5: memref<1x128xf32, #tpu.memory_space<vmem>>, %arg6: memref<2x128x384xbf16, #tpu.memory_space<vmem>>, %arg7: memref<2x128x128xbf16, #tpu.memory_space<vmem>>, %arg8: memref<2x1x128xf32, #tpu.memory_space<vmem>>, %arg9: memref<2x1x128xf32, #tpu.memory_space<vmem>>, %arg10: memref<2x128x128xbf16, #tpu.memory_space<vmem>>, %arg11: memref<2x1x128xf32, #tpu.memory_space<vmem>>, %arg12: memref<2x128x128xbf16, #tpu.memory_space<vmem>>, %arg13: memref<2x1x128xf32, #tpu.memory_space<vmem>>, %arg14: memref<2x1x128xf32, #tpu.memory_space<vmem>>, %arg15: memref<2x1x128xf32, #tpu.memory_space<vmem>>, %arg16: memref<1x8x128xf32, #tpu.memory_space<vmem>>, %arg17: memref<2x128x256xbf16, #tpu.memory_space<vmem>>, %arg18: memref<8x128xf32, #tpu.memory_space<vmem>>) attributes {dimension_semantics = [#tpu.dimension_semantics<arbitrary>, #tpu.dimension_semantics<arbitrary>], iteration_bounds = array<i64: 3, 2>, scalar_prefetch = 0 : i64, scratch_operands = 2 : i64, tpu.core_type = #tpu.core_type<tc>, window_params = [{transform_indices = @transform_0, window_bounds = array<i64: 1, 8, 128>}, {pipeline_mode = #tpu.pipeline_mode<synchronous>, transform_indices = @transform_1, window_bounds = array<i64: 2, 128, 128>}, {pipeline_mode = #tpu.pipeline_mode<synchronous>, transform_indices = @transform_2, window_bounds = array<i64: 2, 1, 128>}, {pipeline_mode = #tpu.pipeline_mode<synchronous>, transform_indices = @transform_3, window_bounds = array<i64: 1, 128>}, {pipeline_mode = #tpu.pipeline_mode<synchronous>, transform_indices = @transform_4, window_bounds = array<i64: 2, 128, 384>}, {pipeline_mode = #tpu.pipeline_mode<synchronous>, transform_indices = @transform_5, window_bounds = array<i64: 2, 128, 128>}, {pipeline_mode = #tpu.pipeline_mode<synchronous>, transform_indices = @transform_6, window_bounds = array<i64: 2, 1, 128>}, {pipeline_mode = #tpu.pipeline_mode<synchronous>, transform_indices = @transform_7, window_bounds = array<i64: 2, 1, 128>}, {pipeline_mode = #tpu.pipeline_mode<synchronous>, transform_indices = @transform_8, window_bounds = array<i64: 2, 128, 128>}, {pipeline_mode = #tpu.pipeline_mode<synchronous>, transform_indices = @transform_9, window_bounds = array<i64: 2, 1, 128>}, {pipeline_mode = #tpu.pipeline_mode<synchronous>, transform_indices = @transform_10, window_bounds = array<i64: 2, 128, 128>}, {pipeline_mode = #tpu.pipeline_mode<synchronous>, transform_indices = @transform_11, window_bounds = array<i64: 2, 1, 128>}, {pipeline_mode = #tpu.pipeline_mode<synchronous>, transform_indices = @transform_12, window_bounds = array<i64: 2, 1, 128>}, {pipeline_mode = #tpu.pipeline_mode<synchronous>, transform_indices = @transform_13, window_bounds = array<i64: 2, 1, 128>}, {transform_indices = @transform_14, window_bounds = array<i64: 1, 8, 128>}]} {
    %c0_i32 = arith.constant 0 : i32
    %0 = arith.cmpi eq, %arg0, %c0_i32 : i32
    %c0_i32_0 = arith.constant 0 : i32
    %1 = arith.cmpi eq, %arg1, %c0_i32_0 : i32
    %2 = arith.andi %0, %1 : i1
    %3 = arith.extui %2 : i1 to i32
    %c0_i32_1 = arith.constant 0 : i32
    %4 = arith.cmpi ne, %3, %c0_i32_1 : i32
    scf.if %4 {
      %cst_75 = arith.constant 0.000000e+00 : bf16
      %179 = vector.broadcast %cst_75 : bf16 to vector<2x128x256xbf16>
      %c0_76 = arith.constant 0 : index
      %c0_77 = arith.constant 0 : index
      %c0_78 = arith.constant 0 : index
      %180 = vector.load %arg17[%c0_76, %c0_77, %c0_78] : memref<2x128x256xbf16, #tpu.memory_space<vmem>>, vector<2x128x256xbf16>
      tpu.vector_store %arg17[%c0_76, %c0_77, %c0_78], %179 {strides = array<i32>} : memref<2x128x256xbf16, #tpu.memory_space<vmem>>, vector<2x128x256xbf16>,
    } else {
    }
    %c0_i32_2 = arith.constant 0 : i32
    %5 = arith.cmpi eq, %arg1, %c0_i32_2 : i32
    %6 = arith.extui %5 : i1 to i32
    %c0_i32_3 = arith.constant 0 : i32
    %7 = arith.cmpi ne, %6, %c0_i32_3 : i32
    scf.if %7 {
      %c0_75 = arith.constant 0 : index
      %c0_76 = arith.constant 0 : index
      %c0_77 = arith.constant 0 : index
      %179 = vector.load %arg2[%c0_75, %c0_76, %c0_77] : memref<1x8x128xf32, #tpu.memory_space<vmem>>, vector<1x8x128xf32>
      %180 = vector.shape_cast %179 : vector<1x8x128xf32> to vector<8x128xf32>
      %c0_78 = arith.constant 0 : index
      %c0_79 = arith.constant 0 : index
      %181 = vector.load %arg18[%c0_78, %c0_79] : memref<8x128xf32, #tpu.memory_space<vmem>>, vector<8x128xf32>
      tpu.vector_store %arg18[%c0_78, %c0_79], %180 {strides = array<i32>} : memref<8x128xf32, #tpu.memory_space<vmem>>, vector<8x128xf32>,
    } else {
    }
    %c0 = arith.constant 0 : index
    %c0_4 = arith.constant 0 : index
    %8 = vector.load %arg18[%c0, %c0_4] : memref<8x128xf32, #tpu.memory_space<vmem>>, vector<8x128xf32>
    %9 = arith.truncf %8 : vector<8x128xf32> to vector<8x128xbf16>
    %10 = arith.index_cast %arg1 : i32 to index
    %c0_5 = arith.constant 0 : index
    %c0_6 = arith.constant 0 : index
    %11 = vector.load %arg6[%10, %c0_5, %c0_6] : memref<2x128x384xbf16, #tpu.memory_space<vmem>>, vector<1x128x384xbf16>
    %12 = vector.shape_cast %11 : vector<1x128x384xbf16> to vector<128x384xbf16>
    %cst = arith.constant dense<0.000000e+00> : vector<8x384xf32>
    %13 = tpu.matmul %9, %12, %cst {dimension_numbers = #tpu.dot_dimension_numbers<[1], [0], [0], [1], [0, 0, 1, 1], [], []>} : vector<8x128xbf16>, vector<128x384xbf16>, vector<8x384xf32> -> vector<8x384xf32>
    %14 = vector.extract_strided_slice %13 {offsets = [0, 0], sizes = [8, 128], strides = [1, 1]} : vector<8x384xf32> to vector<8x128xf32>
    %15 = vector.extract_strided_slice %13 {offsets = [0, 128], sizes = [8, 256], strides = [1, 1]} : vector<8x384xf32> to vector<8x256xf32>
    %16 = arith.truncf %15 : vector<8x256xf32> to vector<8x256xbf16>
    %c0_i32_7 = arith.constant 0 : i32
    %c0_i32_8 = arith.constant 0 : i32
    %17 = tpu.memref_slice %arg17[%arg1, %c0_i32_7, %c0_i32_8] : memref<2x128x256xbf16, #tpu.memory_space<vmem>> -> memref<1x128x256xbf16, #tpu.memory_space<vmem>>
    %18 = tpu.memref_squeeze %17 : memref<1x128x256xbf16, #tpu.memory_space<vmem>> -> memref<128x256xbf16, #tpu.memory_space<vmem>>
    %c16 = arith.constant 16 : index
    %c0_9 = arith.constant 0 : index
    %19 = vector.load %18[%c16, %c0_9] : memref<128x256xbf16, #tpu.memory_space<vmem>>, vector<8x256xbf16>
    tpu.vector_store %18[%c16, %c0_9], %16 {strides = array<i32>} : memref<128x256xbf16, #tpu.memory_space<vmem>>, vector<8x256xbf16>,
    %c0_i32_10 = arith.constant 0 : i32
    %c0_i32_11 = arith.constant 0 : i32
    %20 = tpu.memref_slice %arg17[%arg1, %c0_i32_10, %c0_i32_11] : memref<2x128x256xbf16, #tpu.memory_space<vmem>> -> memref<1x128x256xbf16, #tpu.memory_space<vmem>>
    %21 = tpu.memref_squeeze %20 : memref<1x128x256xbf16, #tpu.memory_space<vmem>> -> memref<128x256xbf16, #tpu.memory_space<vmem>>
    %c0_12 = arith.constant 0 : index
    %c0_13 = arith.constant 0 : index
    %22 = vector.load %21[%c0_12, %c0_13] : memref<128x256xbf16, #tpu.memory_space<vmem>>, vector<128x128xbf16>
    %c0_i32_14 = arith.constant 0 : i32
    %c0_i32_15 = arith.constant 0 : i32
    %23 = tpu.memref_slice %arg17[%arg1, %c0_i32_14, %c0_i32_15] : memref<2x128x256xbf16, #tpu.memory_space<vmem>> -> memref<1x128x256xbf16, #tpu.memory_space<vmem>>
    %24 = tpu.memref_squeeze %23 : memref<1x128x256xbf16, #tpu.memory_space<vmem>> -> memref<128x256xbf16, #tpu.memory_space<vmem>>
    %c0_16 = arith.constant 0 : index
    %c128 = arith.constant 128 : index
    %25 = vector.load %24[%c0_16, %c128] : memref<128x256xbf16, #tpu.memory_space<vmem>>, vector<128x128xbf16>
    %c0_17 = arith.constant 0 : index
    %c0_18 = arith.constant 0 : index
    %26 = vector.load %arg5[%c0_17, %c0_18] : memref<1x128xf32, #tpu.memory_space<vmem>>, vector<1x128xf32>
    %27 = vector.broadcast %26 : vector<1x128xf32> to vector<8x128xf32>
    %28 = arith.addf %14, %27 : vector<8x128xf32>
    %29 = arith.truncf %28 : vector<8x128xf32> to vector<8x128xbf16>
    %cst_19 = arith.constant dense<0.000000e+00> : vector<8x128xf32>
    %30 = tpu.matmul %29, %22, %cst_19 {dimension_numbers = #tpu.dot_dimension_numbers<[1], [1], [0], [0], [0, 0, 1, 0], [], []>} : vector<8x128xbf16>, vector<128x128xbf16>, vector<8x128xf32> -> vector<8x128xf32>
    %31 = arith.truncf %14 : vector<8x128xf32> to vector<8x128xbf16>
    %32 = arith.index_cast %arg1 : i32 to index
    %c0_20 = arith.constant 0 : index
    %c0_21 = arith.constant 0 : index
    %33 = vector.load %arg3[%32, %c0_20, %c0_21] : memref<2x128x128xbf16, #tpu.memory_space<vmem>>, vector<1x128x128xbf16>
    %34 = vector.shape_cast %33 : vector<1x128x128xbf16> to vector<128x128xbf16>
    %cst_22 = arith.constant dense<0.000000e+00> : vector<8x128xf32>
    %35 = tpu.matmul %31, %34, %cst_22 {dimension_numbers = #tpu.dot_dimension_numbers<[1], [1], [0], [0], [0, 0, 1, 0], [], []>} : vector<8x128xbf16>, vector<128x128xbf16>, vector<8x128xf32> -> vector<8x128xf32>
    %36 = tpu.iota {dimensions = array<i32: 1>} : vector<8x128xi32>
    %37 = tpu.iota {dimensions = array<i32: 0>} : vector<8x128xi32>
    %c16_i32 = arith.constant 16 : i32
    %38 = vector.broadcast %c16_i32 : i32 to vector<8x128xi32>
    %39 = arith.cmpi slt, %36, %38 : vector<8x128xi32>
    %c2_i32 = arith.constant 2 : i32
    %40 = arith.subi %c2_i32, %arg0 : i32
    %c8_i32 = arith.constant 8 : i32
    %41 = arith.muli %40, %c8_i32 : i32
    %42 = vector.broadcast %41 : i32 to vector<8x128xi32>
    %43 = arith.cmpi sge, %36, %42 : vector<8x128xi32>
    %44 = arith.andi %39, %43 : vector<8x128xi1>
    %c16_i32_23 = arith.constant 16 : i32
    %45 = vector.broadcast %c16_i32_23 : i32 to vector<8x128xi32>
    %46 = arith.cmpi sge, %36, %45 : vector<8x128xi32>
    %c24_i32 = arith.constant 24 : i32
    %47 = vector.broadcast %c24_i32 : i32 to vector<8x128xi32>
    %48 = arith.cmpi slt, %36, %47 : vector<8x128xi32>
    %49 = arith.andi %46, %48 : vector<8x128xi1>
    %c16_i32_24 = arith.constant 16 : i32
    %50 = vector.broadcast %c16_i32_24 : i32 to vector<8x128xi32>
    %51 = arith.subi %36, %50 : vector<8x128xi32>
    %52 = arith.cmpi sle, %51, %37 : vector<8x128xi32>
    %53 = arith.andi %49, %52 : vector<8x128xi1>
    %54 = arith.ori %44, %53 : vector<8x128xi1>
    %cst_25 = arith.constant 0.000000e+00 : f32
    %cst_26 = arith.constant -1.000000e+09 : f32
    %55 = vector.broadcast %cst_25 : f32 to vector<8x128xf32>
    %56 = vector.broadcast %cst_26 : f32 to vector<8x128xf32>
    %57 = arith.select %54, %55, %56 : vector<8x128xi1>, vector<8x128xf32>
    %58 = arith.addf %30, %35 : vector<8x128xf32>
    %59 = arith.index_cast %arg1 : i32 to index
    %c0_27 = arith.constant 0 : index
    %c0_28 = arith.constant 0 : index
    %60 = vector.load %arg4[%59, %c0_27, %c0_28] : memref<2x1x128xf32, #tpu.memory_space<vmem>>, vector<1x1x128xf32>
    %61 = vector.shape_cast %60 : vector<1x1x128xf32> to vector<1x128xf32>
    %62 = vector.broadcast %61 : vector<1x128xf32> to vector<8x128xf32>
    %63 = arith.addf %58, %62 : vector<8x128xf32>
    %cst_29 = arith.constant 0.176776692 : f32
    %64 = vector.broadcast %cst_29 : f32 to vector<8x128xf32>
    %65 = arith.mulf %63, %64 : vector<8x128xf32>
    %66 = arith.addf %65, %57 : vector<8x128xf32>
    %cst_30 = arith.constant dense<0xFF800000> : vector<8xf32>
    %67 = vector.multi_reduction <maximumf>, %66, %cst_30 [1] : vector<8x128xf32> to vector<8xf32>
    %68 = vector.shape_cast %67 : vector<8xf32> to vector<8x1xf32>
    %69 = vector.broadcast %68 : vector<8x1xf32> to vector<8x128xf32>
    %70 = arith.subf %66, %69 : vector<8x128xf32>
    %71 = math.exp %70 : vector<8x128xf32>
    %cst_31 = arith.constant dense<0.000000e+00> : vector<8xf32>
    %72 = vector.multi_reduction <add>, %71, %cst_31 [1] : vector<8x128xf32> to vector<8xf32>
    %73 = vector.shape_cast %72 : vector<8xf32> to vector<8x1xf32>
    %74 = tpu.reciprocal %73 {approx = true} : vector<8x1xf32> -> vector<8x1xf32>
    %75 = vector.broadcast %74 : vector<8x1xf32> to vector<8x128xf32>
    %76 = arith.mulf %71, %75 : vector<8x128xf32>
    %77 = arith.truncf %76 : vector<8x128xf32> to vector<8x128xbf16>
    %cst_32 = arith.constant dense<0.000000e+00> : vector<8x128xf32>
    %78 = tpu.matmul %77, %25, %cst_32 {dimension_numbers = #tpu.dot_dimension_numbers<[1], [0], [0], [1], [0, 0, 1, 1], [], []>} : vector<8x128xbf16>, vector<128x128xbf16>, vector<8x128xf32> -> vector<8x128xf32>
    %79 = arith.truncf %78 : vector<8x128xf32> to vector<8x128xbf16>
    %80 = arith.index_cast %arg1 : i32 to index
    %c0_33 = arith.constant 0 : index
    %c0_34 = arith.constant 0 : index
    %81 = vector.load %arg7[%80, %c0_33, %c0_34] : memref<2x128x128xbf16, #tpu.memory_space<vmem>>, vector<1x128x128xbf16>
    %82 = vector.shape_cast %81 : vector<1x128x128xbf16> to vector<128x128xbf16>
    %cst_35 = arith.constant dense<0.000000e+00> : vector<8x128xf32>
    %83 = tpu.matmul %79, %82, %cst_35 {dimension_numbers = #tpu.dot_dimension_numbers<[1], [0], [0], [1], [0, 0, 1, 1], [], []>} : vector<8x128xbf16>, vector<128x128xbf16>, vector<8x128xf32> -> vector<8x128xf32>
    %84 = tpu.iota {dimensions = array<i32: 1>} : vector<1x128xi32>
    %c32_i32 = arith.constant 32 : i32
    %85 = vector.broadcast %c32_i32 : i32 to vector<1x128xi32>
    %86 = arith.cmpi slt, %84, %85 : vector<1x128xi32>
    %87 = arith.extui %86 : vector<1x128xi1> to vector<1x128xi32>
    %88 = arith.sitofp %87 : vector<1x128xi32> to vector<1x128xf32>
    %89 = arith.addf %8, %83 : vector<8x128xf32>
    %cst_36 = arith.constant dense<0.000000e+00> : vector<8xf32>
    %90 = vector.multi_reduction <add>, %89, %cst_36 [1] : vector<8x128xf32> to vector<8xf32>
    %91 = vector.shape_cast %90 : vector<8xf32> to vector<8x1xf32>
    %cst_37 = arith.constant 3.125000e-02 : f32
    %92 = vector.broadcast %cst_37 : f32 to vector<8x1xf32>
    %93 = arith.mulf %91, %92 : vector<8x1xf32>
    %94 = vector.broadcast %93 : vector<8x1xf32> to vector<8x128xf32>
    %95 = arith.subf %89, %94 : vector<8x128xf32>
    %96 = vector.broadcast %88 : vector<1x128xf32> to vector<8x128xf32>
    %97 = arith.mulf %95, %96 : vector<8x128xf32>
    %98 = arith.mulf %97, %97 : vector<8x128xf32>
    %cst_38 = arith.constant dense<0.000000e+00> : vector<8xf32>
    %99 = vector.multi_reduction <add>, %98, %cst_38 [1] : vector<8x128xf32> to vector<8xf32>
    %100 = vector.shape_cast %99 : vector<8xf32> to vector<8x1xf32>
    %cst_39 = arith.constant 3.125000e-02 : f32
    %101 = vector.broadcast %cst_39 : f32 to vector<8x1xf32>
    %102 = arith.mulf %100, %101 : vector<8x1xf32>
    %cst_40 = arith.constant 9.99999974E-6 : f32
    %103 = vector.broadcast %cst_40 : f32 to vector<8x1xf32>
    %104 = arith.addf %102, %103 : vector<8x1xf32>
    %105 = math.rsqrt %104 : vector<8x1xf32>
    %106 = vector.broadcast %105 : vector<8x1xf32> to vector<8x128xf32>
    %107 = arith.mulf %97, %106 : vector<8x128xf32>
    %108 = arith.index_cast %arg1 : i32 to index
    %c0_41 = arith.constant 0 : index
    %c0_42 = arith.constant 0 : index
    %109 = vector.load %arg8[%108, %c0_41, %c0_42] : memref<2x1x128xf32, #tpu.memory_space<vmem>>, vector<1x1x128xf32>
    %110 = vector.shape_cast %109 : vector<1x1x128xf32> to vector<1x128xf32>
    %111 = vector.broadcast %110 : vector<1x128xf32> to vector<8x128xf32>
    %112 = arith.mulf %107, %111 : vector<8x128xf32>
    %113 = arith.index_cast %arg1 : i32 to index
    %c0_43 = arith.constant 0 : index
    %c0_44 = arith.constant 0 : index
    %114 = vector.load %arg9[%113, %c0_43, %c0_44] : memref<2x1x128xf32, #tpu.memory_space<vmem>>, vector<1x1x128xf32>
    %115 = vector.shape_cast %114 : vector<1x1x128xf32> to vector<1x128xf32>
    %116 = vector.broadcast %115 : vector<1x128xf32> to vector<8x128xf32>
    %117 = arith.addf %112, %116 : vector<8x128xf32>
    %118 = arith.truncf %117 : vector<8x128xf32> to vector<8x128xbf16>
    %119 = arith.index_cast %arg1 : i32 to index
    %c0_45 = arith.constant 0 : index
    %c0_46 = arith.constant 0 : index
    %120 = vector.load %arg10[%119, %c0_45, %c0_46] : memref<2x128x128xbf16, #tpu.memory_space<vmem>>, vector<1x128x128xbf16>
    %121 = vector.shape_cast %120 : vector<1x128x128xbf16> to vector<128x128xbf16>
    %cst_47 = arith.constant dense<0.000000e+00> : vector<8x128xf32>
    %122 = tpu.matmul %118, %121, %cst_47 {dimension_numbers = #tpu.dot_dimension_numbers<[1], [0], [0], [1], [0, 0, 1, 1], [], []>} : vector<8x128xbf16>, vector<128x128xbf16>, vector<8x128xf32> -> vector<8x128xf32>
    %123 = arith.index_cast %arg1 : i32 to index
    %c0_48 = arith.constant 0 : index
    %c0_49 = arith.constant 0 : index
    %124 = vector.load %arg11[%123, %c0_48, %c0_49] : memref<2x1x128xf32, #tpu.memory_space<vmem>>, vector<1x1x128xf32>
    %125 = vector.shape_cast %124 : vector<1x1x128xf32> to vector<1x128xf32>
    %126 = vector.broadcast %125 : vector<1x128xf32> to vector<8x128xf32>
    %127 = arith.addf %122, %126 : vector<8x128xf32>
    %cst_50 = arith.constant 0.000000e+00 : f32
    %128 = vector.broadcast %cst_50 : f32 to vector<8x128xf32>
    %129 = arith.maximumf %127, %128 : vector<8x128xf32>
    %130 = arith.truncf %129 : vector<8x128xf32> to vector<8x128xbf16>
    %131 = arith.index_cast %arg1 : i32 to index
    %c0_51 = arith.constant 0 : index
    %c0_52 = arith.constant 0 : index
    %132 = vector.load %arg12[%131, %c0_51, %c0_52] : memref<2x128x128xbf16, #tpu.memory_space<vmem>>, vector<1x128x128xbf16>
    %133 = vector.shape_cast %132 : vector<1x128x128xbf16> to vector<128x128xbf16>
    %cst_53 = arith.constant dense<0.000000e+00> : vector<8x128xf32>
    %134 = tpu.matmul %130, %133, %cst_53 {dimension_numbers = #tpu.dot_dimension_numbers<[1], [0], [0], [1], [0, 0, 1, 1], [], []>} : vector<8x128xbf16>, vector<128x128xbf16>, vector<8x128xf32> -> vector<8x128xf32>
    %135 = arith.index_cast %arg1 : i32 to index
    %c0_54 = arith.constant 0 : index
    %c0_55 = arith.constant 0 : index
    %136 = vector.load %arg13[%135, %c0_54, %c0_55] : memref<2x1x128xf32, #tpu.memory_space<vmem>>, vector<1x1x128xf32>
    %137 = vector.shape_cast %136 : vector<1x1x128xf32> to vector<1x128xf32>
    %138 = vector.broadcast %137 : vector<1x128xf32> to vector<8x128xf32>
    %139 = arith.addf %134, %138 : vector<8x128xf32>
    %140 = arith.addf %117, %139 : vector<8x128xf32>
    %cst_56 = arith.constant dense<0.000000e+00> : vector<8xf32>
    %141 = vector.multi_reduction <add>, %140, %cst_56 [1] : vector<8x128xf32> to vector<8xf32>
    %142 = vector.shape_cast %141 : vector<8xf32> to vector<8x1xf32>
    %cst_57 = arith.constant 3.125000e-02 : f32
    %143 = vector.broadcast %cst_57 : f32 to vector<8x1xf32>
    %144 = arith.mulf %142, %143 : vector<8x1xf32>
    %145 = vector.broadcast %144 : vector<8x1xf32> to vector<8x128xf32>
    %146 = arith.subf %140, %145 : vector<8x128xf32>
    %147 = vector.broadcast %88 : vector<1x128xf32> to vector<8x128xf32>
    %148 = arith.mulf %146, %147 : vector<8x128xf32>
    %149 = arith.mulf %148, %148 : vector<8x128xf32>
    %cst_58 = arith.constant dense<0.000000e+00> : vector<8xf32>
    %150 = vector.multi_reduction <add>, %149, %cst_58 [1] : vector<8x128xf32> to vector<8xf32>
    %151 = vector.shape_cast %150 : vector<8xf32> to vector<8x1xf32>
    %cst_59 = arith.constant 3.125000e-02 : f32
    %152 = vector.broadcast %cst_59 : f32 to vector<8x1xf32>
    %153 = arith.mulf %151, %152 : vector<8x1xf32>
    %cst_60 = arith.constant 9.99999974E-6 : f32
    %154 = vector.broadcast %cst_60 : f32 to vector<8x1xf32>
    %155 = arith.addf %153, %154 : vector<8x1xf32>
    %156 = math.rsqrt %155 : vector<8x1xf32>
    %157 = vector.broadcast %156 : vector<8x1xf32> to vector<8x128xf32>
    %158 = arith.mulf %148, %157 : vector<8x128xf32>
    %159 = arith.index_cast %arg1 : i32 to index
    %c0_61 = arith.constant 0 : index
    %c0_62 = arith.constant 0 : index
    %160 = vector.load %arg14[%159, %c0_61, %c0_62] : memref<2x1x128xf32, #tpu.memory_space<vmem>>, vector<1x1x128xf32>
    %161 = vector.shape_cast %160 : vector<1x1x128xf32> to vector<1x128xf32>
    %162 = vector.broadcast %161 : vector<1x128xf32> to vector<8x128xf32>
    %163 = arith.mulf %158, %162 : vector<8x128xf32>
    %164 = arith.index_cast %arg1 : i32 to index
    %c0_63 = arith.constant 0 : index
    %c0_64 = arith.constant 0 : index
    %165 = vector.load %arg15[%164, %c0_63, %c0_64] : memref<2x1x128xf32, #tpu.memory_space<vmem>>, vector<1x1x128xf32>
    %166 = vector.shape_cast %165 : vector<1x1x128xf32> to vector<1x128xf32>
    %167 = vector.broadcast %166 : vector<1x128xf32> to vector<8x128xf32>
    %168 = arith.addf %163, %167 : vector<8x128xf32>
    %c0_i32_65 = arith.constant 0 : i32
    %c0_i32_66 = arith.constant 0 : i32
    %169 = tpu.memref_slice %arg17[%arg1, %c0_i32_65, %c0_i32_66] : memref<2x128x256xbf16, #tpu.memory_space<vmem>> -> memref<1x128x256xbf16, #tpu.memory_space<vmem>>
    %170 = tpu.memref_squeeze %169 : memref<1x128x256xbf16, #tpu.memory_space<vmem>> -> memref<128x256xbf16, #tpu.memory_space<vmem>>
    %c8 = arith.constant 8 : index
    %c0_67 = arith.constant 0 : index
    %171 = vector.load %170[%c8, %c0_67] : memref<128x256xbf16, #tpu.memory_space<vmem>>, vector<16x256xbf16>
    %c0_i32_68 = arith.constant 0 : i32
    %c0_i32_69 = arith.constant 0 : i32
    %172 = tpu.memref_slice %arg17[%arg1, %c0_i32_68, %c0_i32_69] : memref<2x128x256xbf16, #tpu.memory_space<vmem>> -> memref<1x128x256xbf16, #tpu.memory_space<vmem>>
    %173 = tpu.memref_squeeze %172 : memref<1x128x256xbf16, #tpu.memory_space<vmem>> -> memref<128x256xbf16, #tpu.memory_space<vmem>>
    %c0_70 = arith.constant 0 : index
    %c0_71 = arith.constant 0 : index
    %174 = vector.load %173[%c0_70, %c0_71] : memref<128x256xbf16, #tpu.memory_space<vmem>>, vector<16x256xbf16>
    tpu.vector_store %173[%c0_70, %c0_71], %171 {strides = array<i32>} : memref<128x256xbf16, #tpu.memory_space<vmem>>, vector<16x256xbf16>,
    %c0_72 = arith.constant 0 : index
    %c0_73 = arith.constant 0 : index
    %175 = vector.load %arg18[%c0_72, %c0_73] : memref<8x128xf32, #tpu.memory_space<vmem>>, vector<8x128xf32>
    tpu.vector_store %arg18[%c0_72, %c0_73], %168 {strides = array<i32>} : memref<8x128xf32, #tpu.memory_space<vmem>>, vector<8x128xf32>,
    %c1_i32 = arith.constant 1 : i32
    %176 = arith.cmpi eq, %arg1, %c1_i32 : i32
    %177 = arith.extui %176 : i1 to i32
    %c0_i32_74 = arith.constant 0 : i32
    %178 = arith.cmpi ne, %177, %c0_i32_74 : i32
    scf.if %178 {
      %c0_75 = arith.constant 0 : index
      %c0_76 = arith.constant 0 : index
      %c0_77 = arith.constant 0 : index
      %179 = vector.load %arg16[%c0_75, %c0_76, %c0_77] : memref<1x8x128xf32, #tpu.memory_space<vmem>>, vector<1x8x128xf32>
      %180 = vector.shape_cast %179 : vector<1x8x128xf32> to vector<8x128xf32>
      %181 = vector.shape_cast %168 : vector<8x128xf32> to vector<1x8x128xf32>
      tpu.vector_store %arg16[%c0_75, %c0_76, %c0_77], %181 {strides = array<i32>} : memref<1x8x128xf32, #tpu.memory_space<vmem>>, vector<1x8x128xf32>,
    } else {
    }
    return
  }
  func.func @transform_0(%arg0: i32, %arg1: i32) -> (i32, i32, i32) {
    %c0_i32 = arith.constant 0 : i32
    %c0_i32_0 = arith.constant 0 : i32
    %c0_i32_1 = arith.constant 0 : i32
    return %arg0, %c0_i32, %c0_i32_0 : i32, i32, i32
  }
  func.func @transform_1(%arg0: i32, %arg1: i32) -> (i32, i32, i32) {
    %c0_i32 = arith.constant 0 : i32
    %c0_i32_0 = arith.constant 0 : i32
    %c0_i32_1 = arith.constant 0 : i32
    %c0_i32_2 = arith.constant 0 : i32
    return %c0_i32, %c0_i32_0, %c0_i32_1 : i32, i32, i32
  }
  func.func @transform_2(%arg0: i32, %arg1: i32) -> (i32, i32, i32) {
    %c0_i32 = arith.constant 0 : i32
    %c0_i32_0 = arith.constant 0 : i32
    %c0_i32_1 = arith.constant 0 : i32
    %c0_i32_2 = arith.constant 0 : i32
    return %c0_i32, %c0_i32_0, %c0_i32_1 : i32, i32, i32
  }
  func.func @transform_3(%arg0: i32, %arg1: i32) -> (i32, i32) {
    %c0_i32 = arith.constant 0 : i32
    %c0_i32_0 = arith.constant 0 : i32
    %c0_i32_1 = arith.constant 0 : i32
    return %c0_i32, %c0_i32_0 : i32, i32
  }
  func.func @transform_4(%arg0: i32, %arg1: i32) -> (i32, i32, i32) {
    %c0_i32 = arith.constant 0 : i32
    %c0_i32_0 = arith.constant 0 : i32
    %c0_i32_1 = arith.constant 0 : i32
    %c0_i32_2 = arith.constant 0 : i32
    return %c0_i32, %c0_i32_0, %c0_i32_1 : i32, i32, i32
  }
  func.func @transform_5(%arg0: i32, %arg1: i32) -> (i32, i32, i32) {
    %c0_i32 = arith.constant 0 : i32
    %c0_i32_0 = arith.constant 0 : i32
    %c0_i32_1 = arith.constant 0 : i32
    %c0_i32_2 = arith.constant 0 : i32
    return %c0_i32, %c0_i32_0, %c0_i32_1 : i32, i32, i32
  }
  func.func @transform_6(%arg0: i32, %arg1: i32) -> (i32, i32, i32) {
    %c0_i32 = arith.constant 0 : i32
    %c0_i32_0 = arith.constant 0 : i32
    %c0_i32_1 = arith.constant 0 : i32
    %c0_i32_2 = arith.constant 0 : i32
    return %c0_i32, %c0_i32_0, %c0_i32_1 : i32, i32, i32
  }
  func.func @transform_7(%arg0: i32, %arg1: i32) -> (i32, i32, i32) {
    %c0_i32 = arith.constant 0 : i32
    %c0_i32_0 = arith.constant 0 : i32
    %c0_i32_1 = arith.constant 0 : i32
    %c0_i32_2 = arith.constant 0 : i32
    return %c0_i32, %c0_i32_0, %c0_i32_1 : i32, i32, i32
  }
  func.func @transform_8(%arg0: i32, %arg1: i32) -> (i32, i32, i32) {
    %c0_i32 = arith.constant 0 : i32
    %c0_i32_0 = arith.constant 0 : i32
    %c0_i32_1 = arith.constant 0 : i32
    %c0_i32_2 = arith.constant 0 : i32
    return %c0_i32, %c0_i32_0, %c0_i32_1 : i32, i32, i32
  }
  func.func @transform_9(%arg0: i32, %arg1: i32) -> (i32, i32, i32) {
    %c0_i32 = arith.constant 0 : i32
    %c0_i32_0 = arith.constant 0 : i32
    %c0_i32_1 = arith.constant 0 : i32
    %c0_i32_2 = arith.constant 0 : i32
    return %c0_i32, %c0_i32_0, %c0_i32_1 : i32, i32, i32
  }
  func.func @transform_10(%arg0: i32, %arg1: i32) -> (i32, i32, i32) {
    %c0_i32 = arith.constant 0 : i32
    %c0_i32_0 = arith.constant 0 : i32
    %c0_i32_1 = arith.constant 0 : i32
    %c0_i32_2 = arith.constant 0 : i32
    return %c0_i32, %c0_i32_0, %c0_i32_1 : i32, i32, i32
  }
  func.func @transform_11(%arg0: i32, %arg1: i32) -> (i32, i32, i32) {
    %c0_i32 = arith.constant 0 : i32
    %c0_i32_0 = arith.constant 0 : i32
    %c0_i32_1 = arith.constant 0 : i32
    %c0_i32_2 = arith.constant 0 : i32
    return %c0_i32, %c0_i32_0, %c0_i32_1 : i32, i32, i32
  }
  func.func @transform_12(%arg0: i32, %arg1: i32) -> (i32, i32, i32) {
    %c0_i32 = arith.constant 0 : i32
    %c0_i32_0 = arith.constant 0 : i32
    %c0_i32_1 = arith.constant 0 : i32
    %c0_i32_2 = arith.constant 0 : i32
    return %c0_i32, %c0_i32_0, %c0_i32_1 : i32, i32, i32
  }
  func.func @transform_13(%arg0: i32, %arg1: i32) -> (i32, i32, i32) {
    %c0_i32 = arith.constant 0 : i32
    %c0_i32_0 = arith.constant 0 : i32
    %c0_i32_1 = arith.constant 0 : i32
    %c0_i32_2 = arith.constant 0 : i32
    return %c0_i32, %c0_i32_0, %c0_i32_1 : i32, i32, i32
  }
  func.func @transform_14(%arg0: i32, %arg1: i32) -> (i32, i32, i32) {
    %c0_i32 = arith.constant 0 : i32
    %c0_i32_0 = arith.constant 0 : i32
    %c0_i32_1 = arith.constant 0 : i32
    return %arg0, %c0_i32, %c0_i32_0 : i32, i32, i32
  }
}

module attributes {stable_mosaic.version = 11 : i64} {
  func.func @xl_encoder_kernel(%arg0: i32, %arg1: i32, %arg2: memref<1x8x128xf32, #tpu.memory_space<vmem>>, %arg3: memref<2x128x128xbf16, #tpu.memory_space<vmem>>, %arg4: memref<2x1x128xf32, #tpu.memory_space<vmem>>, %arg5: memref<1x128xf32, #tpu.memory_space<vmem>>, %arg6: memref<2x128x384xbf16, #tpu.memory_space<vmem>>, %arg7: memref<2x128x128xbf16, #tpu.memory_space<vmem>>, %arg8: memref<2x1x128xf32, #tpu.memory_space<vmem>>, %arg9: memref<2x1x128xf32, #tpu.memory_space<vmem>>, %arg10: memref<2x128x128xbf16, #tpu.memory_space<vmem>>, %arg11: memref<2x1x128xf32, #tpu.memory_space<vmem>>, %arg12: memref<2x128x128xbf16, #tpu.memory_space<vmem>>, %arg13: memref<2x1x128xf32, #tpu.memory_space<vmem>>, %arg14: memref<2x1x128xf32, #tpu.memory_space<vmem>>, %arg15: memref<2x1x128xf32, #tpu.memory_space<vmem>>, %arg16: memref<1x8x128xf32, #tpu.memory_space<vmem>>, %arg17: memref<2x128x256xbf16, #tpu.memory_space<vmem>>, %arg18: memref<8x128xf32, #tpu.memory_space<vmem>>) attributes {dimension_semantics = [#tpu.dimension_semantics<arbitrary>, #tpu.dimension_semantics<arbitrary>], iteration_bounds = array<i64: 3, 2>, scalar_prefetch = 0 : i64, scratch_operands = 2 : i64, tpu.core_type = #tpu.core_type<tc>, window_params = [{transform_indices = @transform_0, window_bounds = array<i64: 1, 8, 128>}, {pipeline_mode = #tpu.pipeline_mode<synchronous>, transform_indices = @transform_1, window_bounds = array<i64: 2, 128, 128>}, {pipeline_mode = #tpu.pipeline_mode<synchronous>, transform_indices = @transform_2, window_bounds = array<i64: 2, 1, 128>}, {pipeline_mode = #tpu.pipeline_mode<synchronous>, transform_indices = @transform_3, window_bounds = array<i64: 1, 128>}, {pipeline_mode = #tpu.pipeline_mode<synchronous>, transform_indices = @transform_4, window_bounds = array<i64: 2, 128, 384>}, {pipeline_mode = #tpu.pipeline_mode<synchronous>, transform_indices = @transform_5, window_bounds = array<i64: 2, 128, 128>}, {pipeline_mode = #tpu.pipeline_mode<synchronous>, transform_indices = @transform_6, window_bounds = array<i64: 2, 1, 128>}, {pipeline_mode = #tpu.pipeline_mode<synchronous>, transform_indices = @transform_7, window_bounds = array<i64: 2, 1, 128>}, {pipeline_mode = #tpu.pipeline_mode<synchronous>, transform_indices = @transform_8, window_bounds = array<i64: 2, 128, 128>}, {pipeline_mode = #tpu.pipeline_mode<synchronous>, transform_indices = @transform_9, window_bounds = array<i64: 2, 1, 128>}, {pipeline_mode = #tpu.pipeline_mode<synchronous>, transform_indices = @transform_10, window_bounds = array<i64: 2, 128, 128>}, {pipeline_mode = #tpu.pipeline_mode<synchronous>, transform_indices = @transform_11, window_bounds = array<i64: 2, 1, 128>}, {pipeline_mode = #tpu.pipeline_mode<synchronous>, transform_indices = @transform_12, window_bounds = array<i64: 2, 1, 128>}, {pipeline_mode = #tpu.pipeline_mode<synchronous>, transform_indices = @transform_13, window_bounds = array<i64: 2, 1, 128>}, {transform_indices = @transform_14, window_bounds = array<i64: 1, 8, 128>}]} {
    %c0_i32 = arith.constant 0 : i32
    %0 = arith.cmpi eq, %arg0, %c0_i32 : i32
    %c0_i32_0 = arith.constant 0 : i32
    %1 = arith.cmpi eq, %arg1, %c0_i32_0 : i32
    %2 = arith.andi %0, %1 : i1
    %3 = arith.extui %2 : i1 to i32
    %c0_i32_1 = arith.constant 0 : i32
    %4 = arith.cmpi ne, %3, %c0_i32_1 : i32
    scf.if %4 {
      %cst_75 = arith.constant 0.000000e+00 : bf16
      %179 = vector.broadcast %cst_75 : bf16 to vector<2x128x256xbf16>
      %c0_76 = arith.constant 0 : index
      %c0_77 = arith.constant 0 : index
      %c0_78 = arith.constant 0 : index
      %180 = vector.load %arg17[%c0_76, %c0_77, %c0_78] : memref<2x128x256xbf16, #tpu.memory_space<vmem>>, vector<2x128x256xbf16>
      tpu.vector_store %arg17[%c0_76, %c0_77, %c0_78], %179 {strides = array<i32>} : memref<2x128x256xbf16, #tpu.memory_space<vmem>>, vector<2x128x256xbf16>,
    } else {
    }
    %c0_i32_2 = arith.constant 0 : i32
    %5 = arith.cmpi eq, %arg1, %c0_i32_2 : i32
    %6 = arith.extui %5 : i1 to i32
    %c0_i32_3 = arith.constant 0 : i32
    %7 = arith.cmpi ne, %6, %c0_i32_3 : i32
    scf.if %7 {
      %c0_75 = arith.constant 0 : index
      %c0_76 = arith.constant 0 : index
      %c0_77 = arith.constant 0 : index
      %179 = vector.load %arg2[%c0_75, %c0_76, %c0_77] : memref<1x8x128xf32, #tpu.memory_space<vmem>>, vector<1x8x128xf32>
      %180 = vector.shape_cast %179 : vector<1x8x128xf32> to vector<8x128xf32>
      %c0_78 = arith.constant 0 : index
      %c0_79 = arith.constant 0 : index
      %181 = vector.load %arg18[%c0_78, %c0_79] : memref<8x128xf32, #tpu.memory_space<vmem>>, vector<8x128xf32>
      tpu.vector_store %arg18[%c0_78, %c0_79], %180 {strides = array<i32>} : memref<8x128xf32, #tpu.memory_space<vmem>>, vector<8x128xf32>,
    } else {
    }
    %c0 = arith.constant 0 : index
    %c0_4 = arith.constant 0 : index
    %8 = vector.load %arg18[%c0, %c0_4] : memref<8x128xf32, #tpu.memory_space<vmem>>, vector<8x128xf32>
    %9 = arith.truncf %8 : vector<8x128xf32> to vector<8x128xbf16>
    %10 = arith.index_cast %arg1 : i32 to index
    %c0_5 = arith.constant 0 : index
    %c0_6 = arith.constant 0 : index
    %11 = vector.load %arg6[%10, %c0_5, %c0_6] : memref<2x128x384xbf16, #tpu.memory_space<vmem>>, vector<1x128x384xbf16>
    %12 = vector.shape_cast %11 : vector<1x128x384xbf16> to vector<128x384xbf16>
    %cst = arith.constant dense<0.000000e+00> : vector<8x384xf32>
    %13 = tpu.matmul %9, %12, %cst {dimension_numbers = #tpu.dot_dimension_numbers<[1], [0], [0], [1], [0, 0, 1, 1], [], []>} : vector<8x128xbf16>, vector<128x384xbf16>, vector<8x384xf32> -> vector<8x384xf32>
    %14 = vector.extract_strided_slice %13 {offsets = [0, 0], sizes = [8, 128], strides = [1, 1]} : vector<8x384xf32> to vector<8x128xf32>
    %15 = vector.extract_strided_slice %13 {offsets = [0, 128], sizes = [8, 256], strides = [1, 1]} : vector<8x384xf32> to vector<8x256xf32>
    %16 = arith.truncf %15 : vector<8x256xf32> to vector<8x256xbf16>
    %c0_i32_7 = arith.constant 0 : i32
    %c0_i32_8 = arith.constant 0 : i32
    %17 = tpu.memref_slice %arg17[%arg1, %c0_i32_7, %c0_i32_8] : memref<2x128x256xbf16, #tpu.memory_space<vmem>> -> memref<1x128x256xbf16, #tpu.memory_space<vmem>>
    %18 = tpu.memref_squeeze %17 : memref<1x128x256xbf16, #tpu.memory_space<vmem>> -> memref<128x256xbf16, #tpu.memory_space<vmem>>
    %c16 = arith.constant 16 : index
    %c0_9 = arith.constant 0 : index
    %19 = vector.load %18[%c16, %c0_9] : memref<128x256xbf16, #tpu.memory_space<vmem>>, vector<8x256xbf16>
    tpu.vector_store %18[%c16, %c0_9], %16 {strides = array<i32>} : memref<128x256xbf16, #tpu.memory_space<vmem>>, vector<8x256xbf16>,
    %c0_i32_10 = arith.constant 0 : i32
    %c0_i32_11 = arith.constant 0 : i32
    %20 = tpu.memref_slice %arg17[%arg1, %c0_i32_10, %c0_i32_11] : memref<2x128x256xbf16, #tpu.memory_space<vmem>> -> memref<1x128x256xbf16, #tpu.memory_space<vmem>>
    %21 = tpu.memref_squeeze %20 : memref<1x128x256xbf16, #tpu.memory_space<vmem>> -> memref<128x256xbf16, #tpu.memory_space<vmem>>
    %c0_12 = arith.constant 0 : index
    %c0_13 = arith.constant 0 : index
    %22 = vector.load %21[%c0_12, %c0_13] : memref<128x256xbf16, #tpu.memory_space<vmem>>, vector<128x128xbf16>
    %c0_i32_14 = arith.constant 0 : i32
    %c0_i32_15 = arith.constant 0 : i32
    %23 = tpu.memref_slice %arg17[%arg1, %c0_i32_14, %c0_i32_15] : memref<2x128x256xbf16, #tpu.memory_space<vmem>> -> memref<1x128x256xbf16, #tpu.memory_space<vmem>>
    %24 = tpu.memref_squeeze %23 : memref<1x128x256xbf16, #tpu.memory_space<vmem>> -> memref<128x256xbf16, #tpu.memory_space<vmem>>
    %c0_16 = arith.constant 0 : index
    %c128 = arith.constant 128 : index
    %25 = vector.load %24[%c0_16, %c128] : memref<128x256xbf16, #tpu.memory_space<vmem>>, vector<128x128xbf16>
    %c0_17 = arith.constant 0 : index
    %c0_18 = arith.constant 0 : index
    %26 = vector.load %arg5[%c0_17, %c0_18] : memref<1x128xf32, #tpu.memory_space<vmem>>, vector<1x128xf32>
    %27 = vector.broadcast %26 : vector<1x128xf32> to vector<8x128xf32>
    %28 = arith.addf %14, %27 : vector<8x128xf32>
    %29 = arith.truncf %28 : vector<8x128xf32> to vector<8x128xbf16>
    %cst_19 = arith.constant dense<0.000000e+00> : vector<8x128xf32>
    %30 = tpu.matmul %29, %22, %cst_19 {dimension_numbers = #tpu.dot_dimension_numbers<[1], [1], [0], [0], [0, 0, 1, 0], [], []>} : vector<8x128xbf16>, vector<128x128xbf16>, vector<8x128xf32> -> vector<8x128xf32>
    %31 = arith.truncf %14 : vector<8x128xf32> to vector<8x128xbf16>
    %32 = arith.index_cast %arg1 : i32 to index
    %c0_20 = arith.constant 0 : index
    %c0_21 = arith.constant 0 : index
    %33 = vector.load %arg3[%32, %c0_20, %c0_21] : memref<2x128x128xbf16, #tpu.memory_space<vmem>>, vector<1x128x128xbf16>
    %34 = vector.shape_cast %33 : vector<1x128x128xbf16> to vector<128x128xbf16>
    %cst_22 = arith.constant dense<0.000000e+00> : vector<8x128xf32>
    %35 = tpu.matmul %31, %34, %cst_22 {dimension_numbers = #tpu.dot_dimension_numbers<[1], [1], [0], [0], [0, 0, 1, 0], [], []>} : vector<8x128xbf16>, vector<128x128xbf16>, vector<8x128xf32> -> vector<8x128xf32>
    %36 = tpu.iota {dimensions = array<i32: 1>} : vector<8x128xi32>
    %37 = tpu.iota {dimensions = array<i32: 0>} : vector<8x128xi32>
    %c16_i32 = arith.constant 16 : i32
    %38 = vector.broadcast %c16_i32 : i32 to vector<8x128xi32>
    %39 = arith.cmpi slt, %36, %38 : vector<8x128xi32>
    %c2_i32 = arith.constant 2 : i32
    %40 = arith.subi %c2_i32, %arg0 : i32
    %c8_i32 = arith.constant 8 : i32
    %41 = arith.muli %40, %c8_i32 : i32
    %42 = vector.broadcast %41 : i32 to vector<8x128xi32>
    %43 = arith.cmpi sge, %36, %42 : vector<8x128xi32>
    %44 = arith.andi %39, %43 : vector<8x128xi1>
    %c16_i32_23 = arith.constant 16 : i32
    %45 = vector.broadcast %c16_i32_23 : i32 to vector<8x128xi32>
    %46 = arith.cmpi sge, %36, %45 : vector<8x128xi32>
    %c24_i32 = arith.constant 24 : i32
    %47 = vector.broadcast %c24_i32 : i32 to vector<8x128xi32>
    %48 = arith.cmpi slt, %36, %47 : vector<8x128xi32>
    %49 = arith.andi %46, %48 : vector<8x128xi1>
    %c16_i32_24 = arith.constant 16 : i32
    %50 = vector.broadcast %c16_i32_24 : i32 to vector<8x128xi32>
    %51 = arith.subi %36, %50 : vector<8x128xi32>
    %52 = arith.cmpi sle, %51, %37 : vector<8x128xi32>
    %53 = arith.andi %49, %52 : vector<8x128xi1>
    %54 = arith.ori %44, %53 : vector<8x128xi1>
    %cst_25 = arith.constant 0.000000e+00 : f32
    %cst_26 = arith.constant -1.000000e+09 : f32
    %55 = vector.broadcast %cst_25 : f32 to vector<8x128xf32>
    %56 = vector.broadcast %cst_26 : f32 to vector<8x128xf32>
    %57 = arith.select %54, %55, %56 : vector<8x128xi1>, vector<8x128xf32>
    %58 = arith.addf %30, %35 : vector<8x128xf32>
    %59 = arith.index_cast %arg1 : i32 to index
    %c0_27 = arith.constant 0 : index
    %c0_28 = arith.constant 0 : index
    %60 = vector.load %arg4[%59, %c0_27, %c0_28] : memref<2x1x128xf32, #tpu.memory_space<vmem>>, vector<1x1x128xf32>
    %61 = vector.shape_cast %60 : vector<1x1x128xf32> to vector<1x128xf32>
    %62 = vector.broadcast %61 : vector<1x128xf32> to vector<8x128xf32>
    %63 = arith.addf %58, %62 : vector<8x128xf32>
    %cst_29 = arith.constant 0.176776692 : f32
    %64 = vector.broadcast %cst_29 : f32 to vector<8x128xf32>
    %65 = arith.mulf %63, %64 : vector<8x128xf32>
    %66 = arith.addf %65, %57 : vector<8x128xf32>
    %cst_30 = arith.constant dense<0xFF800000> : vector<8xf32>
    %67 = vector.multi_reduction <maximumf>, %66, %cst_30 [1] : vector<8x128xf32> to vector<8xf32>
    %68 = vector.shape_cast %67 : vector<8xf32> to vector<8x1xf32>
    %69 = vector.broadcast %68 : vector<8x1xf32> to vector<8x128xf32>
    %70 = arith.subf %66, %69 : vector<8x128xf32>
    %71 = math.exp %70 : vector<8x128xf32>
    %cst_31 = arith.constant dense<0.000000e+00> : vector<8xf32>
    %72 = vector.multi_reduction <add>, %71, %cst_31 [1] : vector<8x128xf32> to vector<8xf32>
    %73 = vector.shape_cast %72 : vector<8xf32> to vector<8x1xf32>
    %74 = tpu.reciprocal %73 {approx = true} : vector<8x1xf32> -> vector<8x1xf32>
    %75 = vector.broadcast %74 : vector<8x1xf32> to vector<8x128xf32>
    %76 = arith.mulf %71, %75 : vector<8x128xf32>
    %77 = arith.truncf %76 : vector<8x128xf32> to vector<8x128xbf16>
    %cst_32 = arith.constant dense<0.000000e+00> : vector<8x128xf32>
    %78 = tpu.matmul %77, %25, %cst_32 {dimension_numbers = #tpu.dot_dimension_numbers<[1], [0], [0], [1], [0, 0, 1, 1], [], []>} : vector<8x128xbf16>, vector<128x128xbf16>, vector<8x128xf32> -> vector<8x128xf32>
    %79 = arith.truncf %78 : vector<8x128xf32> to vector<8x128xbf16>
    %80 = arith.index_cast %arg1 : i32 to index
    %c0_33 = arith.constant 0 : index
    %c0_34 = arith.constant 0 : index
    %81 = vector.load %arg7[%80, %c0_33, %c0_34] : memref<2x128x128xbf16, #tpu.memory_space<vmem>>, vector<1x128x128xbf16>
    %82 = vector.shape_cast %81 : vector<1x128x128xbf16> to vector<128x128xbf16>
    %cst_35 = arith.constant dense<0.000000e+00> : vector<8x128xf32>
    %83 = tpu.matmul %79, %82, %cst_35 {dimension_numbers = #tpu.dot_dimension_numbers<[1], [0], [0], [1], [0, 0, 1, 1], [], []>} : vector<8x128xbf16>, vector<128x128xbf16>, vector<8x128xf32> -> vector<8x128xf32>
    %84 = tpu.iota {dimensions = array<i32: 1>} : vector<1x128xi32>
    %c32_i32 = arith.constant 32 : i32
    %85 = vector.broadcast %c32_i32 : i32 to vector<1x128xi32>
    %86 = arith.cmpi slt, %84, %85 : vector<1x128xi32>
    %87 = arith.extui %86 : vector<1x128xi1> to vector<1x128xi32>
    %88 = arith.sitofp %87 : vector<1x128xi32> to vector<1x128xf32>
    %89 = arith.addf %8, %83 : vector<8x128xf32>
    %cst_36 = arith.constant dense<0.000000e+00> : vector<8xf32>
    %90 = vector.multi_reduction <add>, %89, %cst_36 [1] : vector<8x128xf32> to vector<8xf32>
    %91 = vector.shape_cast %90 : vector<8xf32> to vector<8x1xf32>
    %cst_37 = arith.constant 3.125000e-02 : f32
    %92 = vector.broadcast %cst_37 : f32 to vector<8x1xf32>
    %93 = arith.mulf %91, %92 : vector<8x1xf32>
    %94 = vector.broadcast %93 : vector<8x1xf32> to vector<8x128xf32>
    %95 = arith.subf %89, %94 : vector<8x128xf32>
    %96 = vector.broadcast %88 : vector<1x128xf32> to vector<8x128xf32>
    %97 = arith.mulf %95, %96 : vector<8x128xf32>
    %98 = arith.mulf %97, %97 : vector<8x128xf32>
    %cst_38 = arith.constant dense<0.000000e+00> : vector<8xf32>
    %99 = vector.multi_reduction <add>, %98, %cst_38 [1] : vector<8x128xf32> to vector<8xf32>
    %100 = vector.shape_cast %99 : vector<8xf32> to vector<8x1xf32>
    %cst_39 = arith.constant 3.125000e-02 : f32
    %101 = vector.broadcast %cst_39 : f32 to vector<8x1xf32>
    %102 = arith.mulf %100, %101 : vector<8x1xf32>
    %cst_40 = arith.constant 9.99999974E-6 : f32
    %103 = vector.broadcast %cst_40 : f32 to vector<8x1xf32>
    %104 = arith.addf %102, %103 : vector<8x1xf32>
    %105 = math.rsqrt %104 : vector<8x1xf32>
    %106 = vector.broadcast %105 : vector<8x1xf32> to vector<8x128xf32>
    %107 = arith.mulf %97, %106 : vector<8x128xf32>
    %108 = arith.index_cast %arg1 : i32 to index
    %c0_41 = arith.constant 0 : index
    %c0_42 = arith.constant 0 : index
    %109 = vector.load %arg8[%108, %c0_41, %c0_42] : memref<2x1x128xf32, #tpu.memory_space<vmem>>, vector<1x1x128xf32>
    %110 = vector.shape_cast %109 : vector<1x1x128xf32> to vector<1x128xf32>
    %111 = vector.broadcast %110 : vector<1x128xf32> to vector<8x128xf32>
    %112 = arith.mulf %107, %111 : vector<8x128xf32>
    %113 = arith.index_cast %arg1 : i32 to index
    %c0_43 = arith.constant 0 : index
    %c0_44 = arith.constant 0 : index
    %114 = vector.load %arg9[%113, %c0_43, %c0_44] : memref<2x1x128xf32, #tpu.memory_space<vmem>>, vector<1x1x128xf32>
    %115 = vector.shape_cast %114 : vector<1x1x128xf32> to vector<1x128xf32>
    %116 = vector.broadcast %115 : vector<1x128xf32> to vector<8x128xf32>
    %117 = arith.addf %112, %116 : vector<8x128xf32>
    %118 = arith.truncf %117 : vector<8x128xf32> to vector<8x128xbf16>
    %119 = arith.index_cast %arg1 : i32 to index
    %c0_45 = arith.constant 0 : index
    %c0_46 = arith.constant 0 : index
    %120 = vector.load %arg10[%119, %c0_45, %c0_46] : memref<2x128x128xbf16, #tpu.memory_space<vmem>>, vector<1x128x128xbf16>
    %121 = vector.shape_cast %120 : vector<1x128x128xbf16> to vector<128x128xbf16>
    %cst_47 = arith.constant dense<0.000000e+00> : vector<8x128xf32>
    %122 = tpu.matmul %118, %121, %cst_47 {dimension_numbers = #tpu.dot_dimension_numbers<[1], [0], [0], [1], [0, 0, 1, 1], [], []>} : vector<8x128xbf16>, vector<128x128xbf16>, vector<8x128xf32> -> vector<8x128xf32>
    %123 = arith.index_cast %arg1 : i32 to index
    %c0_48 = arith.constant 0 : index
    %c0_49 = arith.constant 0 : index
    %124 = vector.load %arg11[%123, %c0_48, %c0_49] : memref<2x1x128xf32, #tpu.memory_space<vmem>>, vector<1x1x128xf32>
    %125 = vector.shape_cast %124 : vector<1x1x128xf32> to vector<1x128xf32>
    %126 = vector.broadcast %125 : vector<1x128xf32> to vector<8x128xf32>
    %127 = arith.addf %122, %126 : vector<8x128xf32>
    %cst_50 = arith.constant 0.000000e+00 : f32
    %128 = vector.broadcast %cst_50 : f32 to vector<8x128xf32>
    %129 = arith.maximumf %127, %128 : vector<8x128xf32>
    %130 = arith.truncf %129 : vector<8x128xf32> to vector<8x128xbf16>
    %131 = arith.index_cast %arg1 : i32 to index
    %c0_51 = arith.constant 0 : index
    %c0_52 = arith.constant 0 : index
    %132 = vector.load %arg12[%131, %c0_51, %c0_52] : memref<2x128x128xbf16, #tpu.memory_space<vmem>>, vector<1x128x128xbf16>
    %133 = vector.shape_cast %132 : vector<1x128x128xbf16> to vector<128x128xbf16>
    %cst_53 = arith.constant dense<0.000000e+00> : vector<8x128xf32>
    %134 = tpu.matmul %130, %133, %cst_53 {dimension_numbers = #tpu.dot_dimension_numbers<[1], [0], [0], [1], [0, 0, 1, 1], [], []>} : vector<8x128xbf16>, vector<128x128xbf16>, vector<8x128xf32> -> vector<8x128xf32>
    %135 = arith.index_cast %arg1 : i32 to index
    %c0_54 = arith.constant 0 : index
    %c0_55 = arith.constant 0 : index
    %136 = vector.load %arg13[%135, %c0_54, %c0_55] : memref<2x1x128xf32, #tpu.memory_space<vmem>>, vector<1x1x128xf32>
    %137 = vector.shape_cast %136 : vector<1x1x128xf32> to vector<1x128xf32>
    %138 = vector.broadcast %137 : vector<1x128xf32> to vector<8x128xf32>
    %139 = arith.addf %134, %138 : vector<8x128xf32>
    %140 = arith.addf %117, %139 : vector<8x128xf32>
    %cst_56 = arith.constant dense<0.000000e+00> : vector<8xf32>
    %141 = vector.multi_reduction <add>, %140, %cst_56 [1] : vector<8x128xf32> to vector<8xf32>
    %142 = vector.shape_cast %141 : vector<8xf32> to vector<8x1xf32>
    %cst_57 = arith.constant 3.125000e-02 : f32
    %143 = vector.broadcast %cst_57 : f32 to vector<8x1xf32>
    %144 = arith.mulf %142, %143 : vector<8x1xf32>
    %145 = vector.broadcast %144 : vector<8x1xf32> to vector<8x128xf32>
    %146 = arith.subf %140, %145 : vector<8x128xf32>
    %147 = vector.broadcast %88 : vector<1x128xf32> to vector<8x128xf32>
    %148 = arith.mulf %146, %147 : vector<8x128xf32>
    %149 = arith.mulf %148, %148 : vector<8x128xf32>
    %cst_58 = arith.constant dense<0.000000e+00> : vector<8xf32>
    %150 = vector.multi_reduction <add>, %149, %cst_58 [1] : vector<8x128xf32> to vector<8xf32>
    %151 = vector.shape_cast %150 : vector<8xf32> to vector<8x1xf32>
    %cst_59 = arith.constant 3.125000e-02 : f32
    %152 = vector.broadcast %cst_59 : f32 to vector<8x1xf32>
    %153 = arith.mulf %151, %152 : vector<8x1xf32>
    %cst_60 = arith.constant 9.99999974E-6 : f32
    %154 = vector.broadcast %cst_60 : f32 to vector<8x1xf32>
    %155 = arith.addf %153, %154 : vector<8x1xf32>
    %156 = math.rsqrt %155 : vector<8x1xf32>
    %157 = vector.broadcast %156 : vector<8x1xf32> to vector<8x128xf32>
    %158 = arith.mulf %148, %157 : vector<8x128xf32>
    %159 = arith.index_cast %arg1 : i32 to index
    %c0_61 = arith.constant 0 : index
    %c0_62 = arith.constant 0 : index
    %160 = vector.load %arg14[%159, %c0_61, %c0_62] : memref<2x1x128xf32, #tpu.memory_space<vmem>>, vector<1x1x128xf32>
    %161 = vector.shape_cast %160 : vector<1x1x128xf32> to vector<1x128xf32>
    %162 = vector.broadcast %161 : vector<1x128xf32> to vector<8x128xf32>
    %163 = arith.mulf %158, %162 : vector<8x128xf32>
    %164 = arith.index_cast %arg1 : i32 to index
    %c0_63 = arith.constant 0 : index
    %c0_64 = arith.constant 0 : index
    %165 = vector.load %arg15[%164, %c0_63, %c0_64] : memref<2x1x128xf32, #tpu.memory_space<vmem>>, vector<1x1x128xf32>
    %166 = vector.shape_cast %165 : vector<1x1x128xf32> to vector<1x128xf32>
    %167 = vector.broadcast %166 : vector<1x128xf32> to vector<8x128xf32>
    %168 = arith.addf %163, %167 : vector<8x128xf32>
    %c0_i32_65 = arith.constant 0 : i32
    %c0_i32_66 = arith.constant 0 : i32
    %169 = tpu.memref_slice %arg17[%arg1, %c0_i32_65, %c0_i32_66] : memref<2x128x256xbf16, #tpu.memory_space<vmem>> -> memref<1x128x256xbf16, #tpu.memory_space<vmem>>
    %170 = tpu.memref_squeeze %169 : memref<1x128x256xbf16, #tpu.memory_space<vmem>> -> memref<128x256xbf16, #tpu.memory_space<vmem>>
    %c8 = arith.constant 8 : index
    %c0_67 = arith.constant 0 : index
    %171 = vector.load %170[%c8, %c0_67] : memref<128x256xbf16, #tpu.memory_space<vmem>>, vector<16x256xbf16>
    %c0_i32_68 = arith.constant 0 : i32
    %c0_i32_69 = arith.constant 0 : i32
    %172 = tpu.memref_slice %arg17[%arg1, %c0_i32_68, %c0_i32_69] : memref<2x128x256xbf16, #tpu.memory_space<vmem>> -> memref<1x128x256xbf16, #tpu.memory_space<vmem>>
    %173 = tpu.memref_squeeze %172 : memref<1x128x256xbf16, #tpu.memory_space<vmem>> -> memref<128x256xbf16, #tpu.memory_space<vmem>>
    %c0_70 = arith.constant 0 : index
    %c0_71 = arith.constant 0 : index
    %174 = vector.load %173[%c0_70, %c0_71] : memref<128x256xbf16, #tpu.memory_space<vmem>>, vector<16x256xbf16>
    tpu.vector_store %173[%c0_70, %c0_71], %171 {strides = array<i32>} : memref<128x256xbf16, #tpu.memory_space<vmem>>, vector<16x256xbf16>,
    %c0_72 = arith.constant 0 : index
    %c0_73 = arith.constant 0 : index
    %175 = vector.load %arg18[%c0_72, %c0_73] : memref<8x128xf32, #tpu.memory_space<vmem>>, vector<8x128xf32>
    tpu.vector_store %arg18[%c0_72, %c0_73], %168 {strides = array<i32>} : memref<8x128xf32, #tpu.memory_space<vmem>>, vector<8x128xf32>,
    %c1_i32 = arith.constant 1 : i32
    %176 = arith.cmpi eq, %arg1, %c1_i32 : i32
    %177 = arith.extui %176 : i1 to i32
    %c0_i32_74 = arith.constant 0 : i32
    %178 = arith.cmpi ne, %177, %c0_i32_74 : i32
    scf.if %178 {
      %c0_75 = arith.constant 0 : index
      %c0_76 = arith.constant 0 : index
      %c0_77 = arith.constant 0 : index
      %179 = vector.load %arg16[%c0_75, %c0_76, %c0_77] : memref<1x8x128xf32, #tpu.memory_space<vmem>>, vector<1x8x128xf32>
      %180 = vector.shape_cast %179 : vector<1x8x128xf32> to vector<8x128xf32>
      %181 = vector.shape_cast %168 : vector<8x128xf32> to vector<1x8x128xf32>
      tpu.vector_store %arg16[%c0_75, %c0_76, %c0_77], %181 {strides = array<i32>} : memref<1x8x128xf32, #tpu.memory_space<vmem>>, vector<1x8x128xf32>,
    } else {
    }
    return
  }
  func.func @transform_0(%arg0: i32, %arg1: i32) -> (i32, i32, i32) {
    %c0_i32 = arith.constant 0 : i32
    %c0_i32_0 = arith.constant 0 : i32
    %c0_i32_1 = arith.constant 0 : i32
    return %arg0, %c0_i32, %c0_i32_0 : i32, i32, i32
  }
  func.func @transform_1(%arg0: i32, %arg1: i32) -> (i32, i32, i32) {
    %c0_i32 = arith.constant 0 : i32
    %c0_i32_0 = arith.constant 0 : i32
    %c0_i32_1 = arith.constant 0 : i32
    %c0_i32_2 = arith.constant 0 : i32
    return %c0_i32, %c0_i32_0, %c0_i32_1 : i32, i32, i32
  }
  func.func @transform_2(%arg0: i32, %arg1: i32) -> (i32, i32, i32) {
    %c0_i32 = arith.constant 0 : i32
    %c0_i32_0 = arith.constant 0 : i32
    %c0_i32_1 = arith.constant 0 : i32
    %c0_i32_2 = arith.constant 0 : i32
    return %c0_i32, %c0_i32_0, %c0_i32_1 : i32, i32, i32
  }
  func.func @transform_3(%arg0: i32, %arg1: i32) -> (i32, i32) {
    %c0_i32 = arith.constant 0 : i32
    %c0_i32_0 = arith.constant 0 : i32
    %c0_i32_1 = arith.constant 0 : i32
    return %c0_i32, %c0_i32_0 : i32, i32
  }
  func.func @transform_4(%arg0: i32, %arg1: i32) -> (i32, i32, i32) {
    %c0_i32 = arith.constant 0 : i32
    %c0_i32_0 = arith.constant 0 : i32
    %c0_i32_1 = arith.constant 0 : i32
    %c0_i32_2 = arith.constant 0 : i32
    return %c0_i32, %c0_i32_0, %c0_i32_1 : i32, i32, i32
  }
  func.func @transform_5(%arg0: i32, %arg1: i32) -> (i32, i32, i32) {
    %c0_i32 = arith.constant 0 : i32
    %c0_i32_0 = arith.constant 0 : i32
    %c0_i32_1 = arith.constant 0 : i32
    %c0_i32_2 = arith.constant 0 : i32
    return %c0_i32, %c0_i32_0, %c0_i32_1 : i32, i32, i32
  }
  func.func @transform_6(%arg0: i32, %arg1: i32) -> (i32, i32, i32) {
    %c0_i32 = arith.constant 0 : i32
    %c0_i32_0 = arith.constant 0 : i32
    %c0_i32_1 = arith.constant 0 : i32
    %c0_i32_2 = arith.constant 0 : i32
    return %c0_i32, %c0_i32_0, %c0_i32_1 : i32, i32, i32
  }
  func.func @transform_7(%arg0: i32, %arg1: i32) -> (i32, i32, i32) {
    %c0_i32 = arith.constant 0 : i32
    %c0_i32_0 = arith.constant 0 : i32
    %c0_i32_1 = arith.constant 0 : i32
    %c0_i32_2 = arith.constant 0 : i32
    return %c0_i32, %c0_i32_0, %c0_i32_1 : i32, i32, i32
  }
  func.func @transform_8(%arg0: i32, %arg1: i32) -> (i32, i32, i32) {
    %c0_i32 = arith.constant 0 : i32
    %c0_i32_0 = arith.constant 0 : i32
    %c0_i32_1 = arith.constant 0 : i32
    %c0_i32_2 = arith.constant 0 : i32
    return %c0_i32, %c0_i32_0, %c0_i32_1 : i32, i32, i32
  }
  func.func @transform_9(%arg0: i32, %arg1: i32) -> (i32, i32, i32) {
    %c0_i32 = arith.constant 0 : i32
    %c0_i32_0 = arith.constant 0 : i32
    %c0_i32_1 = arith.constant 0 : i32
    %c0_i32_2 = arith.constant 0 : i32
    return %c0_i32, %c0_i32_0, %c0_i32_1 : i32, i32, i32
  }
  func.func @transform_10(%arg0: i32, %arg1: i32) -> (i32, i32, i32) {
    %c0_i32 = arith.constant 0 : i32
    %c0_i32_0 = arith.constant 0 : i32
    %c0_i32_1 = arith.constant 0 : i32
    %c0_i32_2 = arith.constant 0 : i32
    return %c0_i32, %c0_i32_0, %c0_i32_1 : i32, i32, i32
  }
  func.func @transform_11(%arg0: i32, %arg1: i32) -> (i32, i32, i32) {
    %c0_i32 = arith.constant 0 : i32
    %c0_i32_0 = arith.constant 0 : i32
    %c0_i32_1 = arith.constant 0 : i32
    %c0_i32_2 = arith.constant 0 : i32
    return %c0_i32, %c0_i32_0, %c0_i32_1 : i32, i32, i32
  }
  func.func @transform_12(%arg0: i32, %arg1: i32) -> (i32, i32, i32) {
    %c0_i32 = arith.constant 0 : i32
    %c0_i32_0 = arith.constant 0 : i32
    %c0_i32_1 = arith.constant 0 : i32
    %c0_i32_2 = arith.constant 0 : i32
    return %c0_i32, %c0_i32_0, %c0_i32_1 : i32, i32, i32
  }
  func.func @transform_13(%arg0: i32, %arg1: i32) -> (i32, i32, i32) {
    %c0_i32 = arith.constant 0 : i32
    %c0_i32_0 = arith.constant 0 : i32
    %c0_i32_1 = arith.constant 0 : i32
    %c0_i32_2 = arith.constant 0 : i32
    return %c0_i32, %c0_i32_0, %c0_i32_1 : i32, i32, i32
  }
  func.func @transform_14(%arg0: i32, %arg1: i32) -> (i32, i32, i32) {
    %c0_i32 = arith.constant 0 : i32
    %c0_i32_0 = arith.constant 0 : i32
    %c0_i32_1 = arith.constant 0 : i32
    return %arg0, %c0_i32, %c0_i32_0 : i32, i32, i32
  }
}

</mosaic_0001>

<bundles_post_ra>
// kernel: tpu_custom_call.1
= control target key start
LH: loop header
LB: loop body
LE: loop exit
PB: predicated region body
PF: predicated region fallthrough
CT: control target
= control target key end

     0   :  { %s3152_s0 = inlined_call_operand.hbm [shape: f32[3,8,128], index: 0, kind: input, shape index: {}]   ;;  %s3153_s1 = inlined_call_operand.hbm [shape: bf16[2,128,128], index: 1, kind: input, shape index: {}]   ;;  %s3154_s2 = inlined_call_operand.vmem [shape: f32[2,1,128], index: 2, kind: input, shape index: {}]   ;;  %s3155_s3 = inlined_call_operand.vmem [shape: f32[1,128], index: 3, kind: input, shape index: {}]   ;;  %s3156_s4 = inlined_call_operand.hbm [shape: bf16[2,128,384], index: 4, kind: input, shape index: {}]   ;;  %s3157_s5 = inlined_call_operand.hbm [shape: bf16[2,128,128], index: 5, kind: input, shape index: {}]   ;;  %s3158_s6 = inlined_call_operand.vmem [shape: f32[2,1,128], index: 6, kind: input, shape index: {}]   ;;  %s3159_s7 = inlined_call_operand.vmem [shape: f32[2,1,128], index: 7, kind: input, shape index: {}]   ;;  %s3160_s8 = inlined_call_operand.hbm [shape: bf16[2,128,128], index: 8, kind: input, shape index: {}]   ;;  %s3161_s9 = inlined_call_operand.vmem [shape: f32[2,1,128], index: 9, kind: input, shape index: {}]   ;;  %s3162_s10 = inlined_call_operand.hbm [shape: bf16[2,128,128], index: 10, kind: input, shape index: {}]   ;;  %s3163_s11 = inlined_call_operand.vmem [shape: f32[2,1,128], index: 11, kind: input, shape index: {}]   ;;  %s3164_s12 = inlined_call_operand.vmem [shape: f32[2,1,128], index: 12, kind: input, shape index: {}]   ;;  %s3165_s13 = inlined_call_operand.vmem [shape: f32[2,1,128], index: 13, kind: input, shape index: {}]   ;;  %s3166_s14 = inlined_call_operand.hbm [shape: f32[3,8,128], index: 14, kind: output, shape index: {}]  }
   0x1   :  { %3178 = sst [smem:[#allocation22_spill]] %s3153_s1 }
   0x2   :  { %3179 = sst [smem:[#allocation23_spill]] %s3154_s2 }
   0x3   :  { %3180 = sst [smem:[#allocation24_spill]] %s3155_s3 }
   0x4   :  { %3181 = sst [smem:[#allocation25_spill]] %s3157_s5 }
   0x5   :  { %3182 = sst [smem:[#allocation26_spill]] %s3158_s6 }
   0x6   :  { %3183 = sst [smem:[#allocation27_spill]] %s3159_s7 }
   0x7   :  { %3184 = sst [smem:[#allocation28_spill]] %s3161_s9 }
   0x8   :  { %3185 = sst [smem:[#allocation29_spill]] %s3163_s11 }
   0x9   :  { %3186 = sst [smem:[#allocation30_spill]] %s3164_s12 }
   0xa   :  { %3187 = sst [smem:[#allocation31_spill]] %s3165_s13 }
   0xb   :  { %3188 = sst [smem:[#allocation32_spill]] %s3166_s14 }
   0xc   :  { %19 = vsyncpa [#allocation5], 0 }
   0xd   :  { %21 = vsyncpa [#allocation5 + $0x1], 0 }
   0xe   :  { %22 = vsyncpa [#allocation8], 0 }
   0xf   :  { %23 = vsyncpa [#allocation11], 0 }
  0x10   :  { %24 = vsyncpa [#allocation14], 0 }
  0x11   :  { %25 = vsyncpa [#allocation6], 0 }
  0x12   :  { %27 = vsyncpa [#allocation6 + $0x1], 0  ;;  %s2597_s29 = smov 0   ;;  %s2599_s30 = smov 0  }
  0x13   :  { %s2601_s15 = smov 0   ;;  %s2603_s16 = smov 0  }
  0x14   :  { %s2605_s17 = smov 0   ;;  %s2607_s18 = smov 0  }
  0x15   :  { %s2609_s19 = smov 0   ;;  %s2611_s20 = smov 0  }
  0x16 LB: > { %3189 = sst [smem:[#allocation21_spill]] %s2488_s16  ;;  %s3167_s21 = sadd.s32 4294967295, %s2504_s20   ;;  %s2504_s20 = sphi %s2611_s20, %s33_s20   ;;  %s2500_s19 = sphi %s2609_s19, %s3227_s19   ;;  %s2496_s18 = sphi %s2607_s18, %s3226_s18   ;;  %s2492_s17 = sphi %s2605_s17, %s3225_s17   ;;  %s2488_s16 = sphi %s2603_s16, %s3224_s16   ;;  %s2484_s15 = sphi %s2601_s15, %s3223_s15   ;;  %s2480_s30 = sphi %s2599_s30, %s3222_s30   ;;  %s2476_s29 = sphi %s2597_s29, %s3221_s29  }
  0x17   : > { %p1708_p0 = scmp.ge.s32.totalorder %s2504_s20, 1  ;;  %p2641_p1 = scmp.eq.s32.totalorder %s3167_s21, 0 }
  0x18   : > { %p375_p2 = scmp.lt.s32.totalorder %s2504_s20, 7  ;;  %s2506_s24 = smov [#allocation7]  }
  0x19   : > { %s3190_s22 = scalar_select %p2641_p1, 1, 0 }
  0x1a   : > { %p2646_p3 = pnand %p1708_p0, %p375_p2  ;;  %s387_s25 = sshll.u32 %s2506_s24, 4  ;;  %s2650_s25 = int_to_ptr.vmem [resolvable:$true] %s387_s25 }
  0x1b   : > { %s2507_s27 = smov [#allocation10]   ;;  %s2508_s21 = smov [#allocation9]  }
  0x1c   : > { %s3191_s23 = scalar_select %p2646_p3, 1, 0 }
  0x1d   : > { %p2038_p4 = pneg %p2646_p3  ;;  %s419_s28 = sshll.u32 %s2507_s27, 4  ;;  %s2660_s28 = int_to_ptr.vmem [resolvable:$true] %s419_s28 }
  0x1e   : > { %s2662_s14 = sshll.u32 %s2508_s21, 4  ;;  %s3193_s1 = sld [smem:[#allocation22_spill]]  ;;  %s407_s14 = int_to_ptr.vmem [resolvable:$true] %s2662_s14 }
  0x1f   : > { %p2656_p5 = pnand %p2038_p4, %p2641_p1 }
  0x21   : > { %p2672_p7 = pneg %p2656_p5 }
  0x24   : > { %s2224_s24 = scalar_lea.hbm %s3193_s1, 2048 }
  0x25   : > { %p2225_p6 = scmp.ne.s32.totalorder %s3193_s1, %s2224_s24  ;;  %p2231_p10 = scmp.lt.u32.totalorder %s2224_s24, %s3193_s1 }
  0x27   : > { %p2227_p8 = pnand %p2672_p7, %p2225_p6 }
  0x29   : > { %p2228_p9 = pneg %p2227_p8 }
  0x2b   : > { %p2233_p11 = pnand %p2231_p10, %p2228_p9 }
  0x2d   : > { %2236 = shalt.err (!%p2233_p11)
}
  0x2e   : > { %s2237_s9 = scalar_lea.vmem %s2650_s25, 2048  ;;  %p2245_p2 = scmp.lt.s32.totalorder %s2650_s25, %s2650_s25 }
  0x2f   : > { %p2238_p12 = scmp.ne.s32.totalorder %s2650_s25, %s2237_s9  ;;  %p2246_p4 = scmp.lt.s32.totalorder %s2237_s9, %s2237_s9 }
  0x31   : > { %p2240_p13 = pnand %p2238_p12, %p2672_p7  ;;  %p2247_p6 = por %p2246_p4, %p2245_p2 }
  0x33   : > { %p2241_p0 = pneg %p2240_p13 }
  0x35   : > { %p2248_p8 = pnand %p2247_p6, %p2241_p0 }
  0x37   : > { %2251 = shalt.err (!%p2248_p8)
}
  0x38   : > { %s3173_s11 = smov 64   ;;  %s3175_s12 = smov 4  }
  0x39   : > { %2041 = dma.hbm_to_vmem [thread:$0]  (!%p2656_p5), %s3193_s1, 2048, %s2650_s25, [#allocation8], %s3173_s11, %s3173_s11, %s3175_s12  }
  0x3a   : > { %s3195_s5 = sld [smem:[#allocation25_spill]] }
  0x40   : > { %s2252_s9 = scalar_lea.hbm %s3195_s5, 2048 }
  0x41   : > { %p2253_p9 = scmp.ne.s32.totalorder %s3195_s5, %s2252_s9  ;;  %p2259_p12 = scmp.lt.u32.totalorder %s2252_s9, %s3195_s5 }
  0x43   : > { %p2255_p10 = pnand %p2253_p9, %p2672_p7 }
  0x45   : > { %p2256_p11 = pneg %p2255_p10 }
  0x47   : > { %p2261_p13 = pnand %p2259_p12, %p2256_p11 }
  0x49   : > { %2264 = shalt.err (!%p2261_p13)
}
  0x4a   : > { %s2265_s25 = scalar_lea.vmem %s2660_s28, 2048  ;;  %p2273_p6 = scmp.lt.s32.totalorder %s2660_s28, %s2660_s28 }
  0x4b   : > { %p2266_p0 = scmp.ne.s32.totalorder %s2660_s28, %s2265_s25  ;;  %p2274_p8 = scmp.lt.s32.totalorder %s2265_s25, %s2265_s25 }
  0x4d   : > { %p2268_p2 = pnand %p2266_p0, %p2672_p7  ;;  %p2275_p9 = por %p2274_p8, %p2273_p6 }
  0x4f   : > { %p2269_p4 = pneg %p2268_p2 }
  0x51   : > { %p2276_p10 = pnand %p2275_p9, %p2269_p4 }
  0x53   : > { %2279 = shalt.err (!%p2276_p10)
}
  0x54   : > { %2047 = dma.hbm_to_vmem [thread:$0]  (!%p2656_p5), %s3195_s5, 2048, %s2660_s28, [#allocation11], %s3173_s11, %s3173_s11, %s3175_s12  }
  0x55   : > { %s2280_s13 = scalar_lea.hbm %s3156_s4, 6144 }
  0x56   : > { %p2281_p11 = scmp.ne.s32.totalorder %s3156_s4, %s2280_s13  ;;  %p2287_p0 = scmp.lt.u32.totalorder %s2280_s13, %s3156_s4 }
  0x58   : > { %p2283_p12 = pnand %p2281_p11, %p2672_p7 }
  0x5a   : > { %p2284_p13 = pneg %p2283_p12 }
  0x5c   : > { %p2289_p2 = pnand %p2287_p0, %p2284_p13 }
  0x5e   : > { %2292 = shalt.err (!%p2289_p2)
}
  0x5f   : > { %s2293_s25 = scalar_lea.vmem %s407_s14, 6144  ;;  %p2301_p9 = scmp.lt.s32.totalorder %s407_s14, %s407_s14 }
  0x60   : > { %p2294_p4 = scmp.ne.s32.totalorder %s407_s14, %s2293_s25  ;;  %p2302_p10 = scmp.lt.s32.totalorder %s2293_s25, %s2293_s25 }
  0x62   : > { %p2296_p6 = pnand %p2294_p4, %p2672_p7  ;;  %p2303_p3 = por %p2302_p10, %p2301_p9 }
  0x64   : > { %p2297_p8 = pneg %p2296_p6 }
  0x66   : > { %p2304_p1 = pnand %p2303_p3, %p2297_p8 }
  0x68   : > { %2307 = shalt.err (!%p2304_p1)
}
  0x69   : > { %s2511_s28 = smov 192   ;;  %s2512_s2 = smov 12  }
  0x6a   : > { %2044 = dma.hbm_to_vmem [thread:$0]  (!%p2656_p5), %s3156_s4, 6144, %s407_s14, [#allocation8], %s2511_s28, %s2511_s28, %s2512_s2  }
  0x6b   : > { %s2513_s16 = smov [#allocation12]   ;;  %s2514_s24 = smov [#allocation13]  }
  0x6c   : > { %s438_s13 = sshll.u32 %s2513_s16, 4  ;;  %s454_s27 = sshll.u32 %s2514_s24, 4  ;;  %s439_s13 = int_to_ptr.vmem [resolvable:$true] %s438_s13  ;;  %s455_s27 = int_to_ptr.vmem [resolvable:$true] %s454_s27 }
  0x6d   : > { %s2308_s25 = scalar_lea.hbm %s3160_s8, 2048 }
  0x6e   : > { %p2309_p1 = scmp.ne.s32.totalorder %s3160_s8, %s2308_s25  ;;  %p2315_p12 = scmp.lt.u32.totalorder %s2308_s25, %s3160_s8 }
  0x70   : > { %p2311_p3 = pnand %p2309_p1, %p2672_p7 }
  0x72   : > { %p2312_p11 = pneg %p2311_p3 }
  0x74   : > { %p2317_p13 = pnand %p2315_p12, %p2312_p11 }
  0x76   : > { %2320 = shalt.err (!%p2317_p13)
}
  0x77   : > { %s2321_s14 = scalar_lea.vmem %s439_s13, 2048  ;;  %p2329_p6 = scmp.lt.s32.totalorder %s439_s13, %s439_s13 }
  0x78   : > { %p2322_p0 = scmp.ne.s32.totalorder %s439_s13, %s2321_s14  ;;  %p2330_p8 = scmp.lt.s32.totalorder %s2321_s14, %s2321_s14 }
  0x7a   : > { %p2324_p2 = pnand %p2322_p0, %p2672_p7  ;;  %p2331_p9 = por %p2330_p8, %p2329_p6 }
  0x7c   : > { %p2325_p4 = pneg %p2324_p2 }
  0x7e   : > { %p2332_p10 = pnand %p2331_p9, %p2325_p4 }
  0x80   : > { %2335 = shalt.err (!%p2332_p10)
}
  0x81   : > { %s3196_s11 = smov 4   ;;  %s3197_s12 = smov 64  }
  0x82   : > { %2050 = dma.hbm_to_vmem [thread:$0]  (!%p2656_p5), %s3160_s8, 2048, %s439_s13, [#allocation11], %s3197_s12, %s3197_s12, %s3196_s11  }
  0x83   : > { %s2336_s3 = scalar_lea.hbm %s3162_s10, 2048 }
  0x84   : > { %p2337_p1 = scmp.ne.s32.totalorder %s3162_s10, %s2336_s3  ;;  %p2343_p12 = scmp.lt.u32.totalorder %s2336_s3, %s3162_s10 }
  0x86   : > { %p2339_p3 = pnand %p2337_p1, %p2672_p7 }
  0x88   : > { %p2340_p11 = pneg %p2339_p3 }
  0x8a   : > { %p2345_p13 = pnand %p2343_p12, %p2340_p11 }
  0x8c   : > { %2348 = shalt.err (!%p2345_p13)
}
  0x8d   : > { %s2349_s9 = scalar_lea.vmem %s455_s27, 2048  ;;  %p2357_p6 = scmp.lt.s32.totalorder %s455_s27, %s455_s27 }
  0x8e   : > { %p2350_p0 = scmp.ne.s32.totalorder %s455_s27, %s2349_s9  ;;  %p2358_p8 = scmp.lt.s32.totalorder %s2349_s9, %s2349_s9 }
  0x90   : > { %p2352_p2 = pnand %p2350_p0, %p2672_p7  ;;  %p2359_p9 = por %p2358_p8, %p2357_p6 }
  0x92   : > { %p2353_p4 = pneg %p2352_p2 }
  0x94   : > { %p2360_p10 = pnand %p2359_p9, %p2353_p4 }
  0x96   : > { %2363 = shalt.err (!%p2360_p10)
}
  0x97   : > { %2053 = dma.hbm_to_vmem [thread:$0]  (!%p2656_p5), %s3162_s10, 2048, %s455_s27, [#allocation14], %s3197_s12, %s3197_s12, %s3196_s11  }
  0x98   : > { %s1707_s7 = sadd.s32 4294967294, %s2504_s20   ;;  %s42_s26 = sadd.s32 1, %s2496_s18 }
  0x99   : > { %s45_s14 = sadd.s32 1, %s2500_s19  ;;  %p43_p7 = scmp.ge.s32.totalorder %s42_s26, 2 }
  0x9a   : > { %s52_s1 = sadd.s32 1, %s2484_s15  ;;  %p59_p1 = scmp.ne.s32.totalorder %s2484_s15, %s2480_s30 }
  0x9b   : > { %p60_p3 = scmp.eq.s32.totalorder %s2504_s20, 0  ;;  %s3229_s26 = smov (%p43_p7, %s42_s26), 0 }
  0x9c   : > { %s3231_s14 = smov (!%p43_p7, %s45_s14), %s2500_s19  ;;  %p65_p5 = scmp.ne.s32.totalorder %s2480_s30, %s2476_s29 }
  0x9d   : > { %p2793_p11 = por %p60_p3, %p59_p1  ;;  %p47_p12 = scmp.ge.s32.totalorder %s3231_s14, 3 }
  0x9e   : > { %s3199_s27 = sadd.s32 4294967295, %s2504_s20   ;;  %p3200_p0 = scmp.ne.s32.totalorder %s3190_s22, 0 }
  0x9f   : > { %p362_p13 = scmp.eq.s32.totalorder %s3199_s27, 5  ;;  %p368_p4 = scmp.eq.s32.totalorder %s1707_s7, 5 }
  0xa0   : > { %p2803_p2 = por %p3200_p0, %p65_p5  ;;  %s3233_s14 = smov (%p47_p12, %s3231_s14), 0 }
  0xa1   : > { %p2809_p6 = por %p362_p13, %p59_p1  ;;  %p2813_p8 = por %p368_p4, %p65_p5 }
  0xa2   : > { %s49_s2 = ssub.s32 %s2500_s19, %s3233_s14  ;;  %p2067_p9 = scmp.lt.s32.totalorder %s2504_s20, 6 }
  0xa3   : > { %s3202_s12 = scalar_select %p2809_p6, 1, 0 }
  0xa4   : > { %s3203_s28 = scalar_select %p2813_p8, 1, 0 }
  0xa5   : > { %p50_p10 = scmp.eq.s32.totalorder %s49_s2, 0  ;;  %s477_s3 = sand.u32 1, %s2484_s15  }
  0xa6   : > { %s1715_s6 = sshll.u32 %s477_s3, 3  ;;  %s1716_s24 = sshll.u32 %s2500_s19, 7 }
  0xa7   : > { %s2822_s16 = scalar_select %p50_p10, %s2484_s15, %s52_s1  }
  0xa8   : > { %s2828_s13 = scalar_lea.hbm %s3152_s0, %s1716_s24  ;;  %s481_s25 = scalar_lea.vmem [#allocation4], %s1715_s6 }
  0xa9   : > { %s488_s7 = sshll.u32 %s481_s25, 4  ;;  %p2834_p7 = pnand %p2067_p9, %p2793_p11  ;;  %s2830_s7 = int_to_ptr.vmem [resolvable:$true] %s488_s7 }
  0xaa   : > { %s478_s1 = scalar_lea.sflag [#allocation5], %s477_s3  ;;  %s2364_s2 = scalar_lea.hbm %s2828_s13, 128 }
  0xab   : > { %p2365_p1 = scmp.ne.s32.totalorder %s2828_s13, %s2364_s2  ;;  %p2366_p3 = pneg %p2834_p7 }
  0xac   : > { %s2369_s21 = scalar_lea.hbm %s3152_s0, 384  ;;  %p2370_p11 = scmp.lt.u32.totalorder %s2828_s13, %s3152_s0 }
  0xad   : > { %p2367_p5 = pnand %p2366_p3, %p2365_p1  ;;  %p2371_p13 = scmp.lt.u32.totalorder %s2369_s21, %s2364_s2 }
  0xae   : > { %p2373_p4 = scmp.lt.u32.totalorder %s2364_s2, %s2828_s13 }
  0xaf   : > { %p2368_p12 = pneg %p2367_p5  ;;  %p2372_p0 = por %p2371_p13, %p2370_p11 }
  0xb1   : > { %p2374_p9 = por %p2373_p4, %p2372_p0 }
  0xb3   : > { %p2375_p10 = pnand %p2374_p9, %p2368_p12 }
  0xb5   : > { %2378 = shalt.err (!%p2375_p10)
}
  0xb6   : > { %s2379_s3 = scalar_lea.vmem %s2830_s7, 128  ;;  %s2515_s25 = smov [#allocation4]  }
  0xb7   : > { %p2380_p1 = scmp.ne.s32.totalorder %s2830_s7, %s2379_s3  ;;  %s2384_s6 = sshll.u32 %s2515_s25, 4  ;;  %s2385_s6 = int_to_ptr.vmem [resolvable:$false] %s2384_s6 }
  0xb8   : > { %s2386_s24 = scalar_lea.vmem %s2385_s6, 256  ;;  %p2387_p6 = scmp.lt.s32.totalorder %s2830_s7, %s2385_s6 }
  0xb9   : > { %p2382_p5 = pnand %p2380_p1, %p2366_p3  ;;  %p2388_p11 = scmp.lt.s32.totalorder %s2386_s24, %s2379_s3 }
  0xbb   : > { %p2383_p8 = pneg %p2382_p5  ;;  %p2389_p13 = por %p2388_p11, %p2387_p6 }
  0xbd   : > { %p2390_p0 = pnand %p2389_p13, %p2383_p8 }
  0xbf   : > { %2393 = shalt.err (!%p2390_p0)
}
  0xc0   : > { %2057 = dma.hbm_to_vmem [thread:$0]  (!%p2834_p7), %s2828_s13, 128, %s2830_s7, %s478_s1  }
  0xc1   : > { %p3205_p12 = scmp.ne.s32.totalorder %s3191_s23, 0 }
  0xc2   : > { %s2866_s2 = sand.u32 (!%p3205_p12), 1, %s2480_s30  }
  0xc3   : > { %497 = sbr.rel (%p3205_p12) target bundleno = 2623 (0xa3f), region = 76  ;;  %s1718_s21 = sshll.u32 (!%p3205_p12), %s2866_s2, 3 }
  0xc4   : > { %s500_s5 = scalar_lea.sflag (!%p3205_p12), [#allocation5], %s2866_s2  ;;  %s2870_s9 = scalar_lea.vmem (!%p3205_p12), [#allocation4], %s1718_s21 }
  0xca   : > { %2455 = dma.done.wait (%p2803_p2), %s500_s5, 128  }
  0xcb   : > { %2457 = vsyncadd (%p2803_p2), %s500_s5, 4294967168  ;;  %p3206_p6 = scmp.ne.s32.totalorder %s3190_s22, 0 }
  0xcd   : > { %2459 = dma.done.wait (%p3206_p6), [#allocation8], 8192  }
  0xce   : > { %2461 = vsyncadd (%p3206_p6), [#allocation8], 4294959104 }
  0xcf   : > { %2463 = dma.done.wait (%p3206_p6), [#allocation11], 4096  }
  0xd0   : > { %2465 = vsyncadd (%p3206_p6), [#allocation11], 4294963200 }
  0xd1   : > { %2467 = dma.done.wait (%p3206_p6), [#allocation14], 2048  }
  0xd2   : > { %2469 = vsyncadd (%p3206_p6), [#allocation14], 4294965248  ;;  %s3207_s23 = sld [smem:[#allocation21_spill]]  ;;  %p569_p2 = scmp.eq.s32.totalorder %s2492_s17, 0 }
  0xd3   : > { %s2890_s11 = scalar_lea.vmem [#allocation15], %s1718_s21 }
  0xd8   : > { %p570_p8 = scmp.eq.s32.totalorder %s3207_s23, 0 }
  0xda   : > { %p571_p7 = pnand %p570_p8, %p569_p2 }
  0xdb   : > { %v2516_v0 = vmov (!%p571_p7), 0  }
  0xdc   : > { %574 = sbr.rel (%p571_p7) target bundleno = 236 (0xec), region = 104  ;;  %575 = vst [vmem:[#allocation2] sm:$0xff] (!%p571_p7), %v2516_v0  ;;  %576 = vst [vmem:[#allocation2 + $0x8] sm:$0xff] (!%p571_p7), %v2516_v0 }
  0xdd   : > { %577 = vst [vmem:[#allocation2 + $0x10] sm:$0xff] (!%p571_p7), %v2516_v0  ;;  %578 = vst [vmem:[#allocation2 + $0x18] sm:$0xff] (!%p571_p7), %v2516_v0 }
  0xde   : > { %579 = vst [vmem:[#allocation2 + $0x20] sm:$0xff] (!%p571_p7), %v2516_v0  ;;  %580 = vst [vmem:[#allocation2 + $0x28] sm:$0xff] (!%p571_p7), %v2516_v0 }
  0xdf   : > { %581 = vst [vmem:[#allocation2 + $0x30] sm:$0xff] (!%p571_p7), %v2516_v0  ;;  %582 = vst [vmem:[#allocation2 + $0x38] sm:$0xff] (!%p571_p7), %v2516_v0 }
  0xe0   : > { %583 = vst [vmem:[#allocation2 + $0x40] sm:$0xff] (!%p571_p7), %v2516_v0  ;;  %584 = vst [vmem:[#allocation2 + $0x48] sm:$0xff] (!%p571_p7), %v2516_v0 }
  0xe1   : > { %585 = vst [vmem:[#allocation2 + $0x50] sm:$0xff] (!%p571_p7), %v2516_v0  ;;  %586 = vst [vmem:[#allocation2 + $0x58] sm:$0xff] (!%p571_p7), %v2516_v0 }
  0xe2   : > { %587 = vst [vmem:[#allocation2 + $0x60] sm:$0xff] (!%p571_p7), %v2516_v0  ;;  %588 = vst [vmem:[#allocation2 + $0x68] sm:$0xff] (!%p571_p7), %v2516_v0 }
  0xe3   : > { %589 = vst [vmem:[#allocation2 + $0x70] sm:$0xff] %v2516_v0  ;;  %590 = vst [vmem:[#allocation2 + $0x78] sm:$0xff] %v2516_v0 }
  0xe4   : > { %591 = vst [vmem:[#allocation2 + $0x80] sm:$0xff] %v2516_v0  ;;  %592 = vst [vmem:[#allocation2 + $0x88] sm:$0xff] %v2516_v0 }
  0xe5   : > { %593 = vst [vmem:[#allocation2 + $0x90] sm:$0xff] %v2516_v0  ;;  %594 = vst [vmem:[#allocation2 + $0x98] sm:$0xff] %v2516_v0 }
  0xe6   : > { %595 = vst [vmem:[#allocation2 + $0xa0] sm:$0xff] %v2516_v0  ;;  %596 = vst [vmem:[#allocation2 + $0xa8] sm:$0xff] %v2516_v0 }
  0xe7   : > { %597 = vst [vmem:[#allocation2 + $0xb0] sm:$0xff] %v2516_v0  ;;  %598 = vst [vmem:[#allocation2 + $0xb8] sm:$0xff] %v2516_v0 }
  0xe8   : > { %599 = vst [vmem:[#allocation2 + $0xc0] sm:$0xff] %v2516_v0  ;;  %600 = vst [vmem:[#allocation2 + $0xc8] sm:$0xff] %v2516_v0 }
  0xe9   : > { %601 = vst [vmem:[#allocation2 + $0xd0] sm:$0xff] %v2516_v0  ;;  %602 = vst [vmem:[#allocation2 + $0xd8] sm:$0xff] %v2516_v0 }
  0xea   : > { %603 = vst [vmem:[#allocation2 + $0xe0] sm:$0xff] %v2516_v0  ;;  %604 = vst [vmem:[#allocation2 + $0xe8] sm:$0xff] %v2516_v0 }
  0xeb   : > { %605 = vst [vmem:[#allocation2 + $0xf0] sm:$0xff] %v2516_v0  ;;  %606 = vst [vmem:[#allocation2 + $0xf8] sm:$0xff] %v2516_v0 }
  0xec PF: > { %s3208_s22 = sld [smem:[#allocation21_spill]] }
  0xf2   : > { %p1725_p3 = scmp.ne.s32.totalorder %s3208_s22, 0 }
  0xf3   : > { %v610_v1 = vld [vmem:[%s2870_s9] sm:$0xff] (!%p1725_p3) }
  0xf4   : > { %609 = sbr.rel (%p1725_p3) target bundleno = 251 (0xfb), region = 108  ;;  %611 = vst [vmem:[#allocation3] sm:$0xff] (!%p1725_p3), %v610_v1 }
  0xfb PF: > { %s3209_s13 = sld [smem:[#allocation21_spill]]  ;;  %v2517_v2 = vmov 0   ;;  %v2518_v3 = vmov 0.0   ;;  %v2927_v24 = vld [vmem:[#allocation3] sm:$0xff]  ;;  %vm2519_vm0 = vmmov 0   ;;  %vm1527_vm1 = vcmask 1043456  }
  0xfc   : > { %809 = vmatprep.mubr.bf16.mxu0 %v2517_v2  ;;  %1874 = vmatprep.subr.bf16.mxu1 %v2518_v3  ;;  %v613_v26 = vpack.c.bf16 %v2927_v24, %v2927_v24  ;;  %s3210_s5 = sld [smem:[#allocation24_spill]]  ;;  %s1002_s9 = ssub.s32 2, %s2492_s17 }
  0xfd   : > { %1890 = vmatprep.mubr.msk.bf16.mxu1 %vm2519_vm0, %v2518_v3  ;;  %s1763_s23 = sshll.u32 %s1002_s9, 3 }
 0x101   : > { %s1805_s7 = smul.u32 192, %s3209_s13  ;;  %s2896_s27 = sshll.u32 %s3209_s13, 6 }
 0x102   : > { %s2900_s1 = scalar_lea.vmem [#allocation7], %s2896_s27  ;;  %s1806_s25 = sshll.u32 %s3209_s13, 7  ;;  %v1753_v57 = vld [vmem:[%s3210_s5] ss:$0 sm:$0xff] }
 0x103   : > { %s2902_s3 = scalar_lea.vmem [#allocation9], %s1805_s7  ;;  %v2176_v28 = vld [vmem:[%s2900_s1] sm:$0xff]   ;;  %v2177_v31 = vld [vmem:[%s2900_s1 + $0x8] sm:$0xff]   ;;  %v2178_v32 = vld [vmem:[%s2900_s1 + $0x10] sm:$0xff]   ;;  %s2964_s6 = scalar_lea.vmem [#allocation2], %s1806_s25 }
 0x104   : > { %v2152_v4 = vld [vmem:[%s2902_s3 + $0x4] ss:$12 sps:$4 sm:$0xff]   ;;  %v2154_v5 = vld [vmem:[%s2902_s3] ss:$12 sps:$4 sm:$0xff]   ;;  %v2155_v6 = vld [vmem:[%s2902_s3 + $0x1c] ss:$12 sps:$4 sm:$0xff]  }
 0x105   : > { %777 = vmatprep.subr.bf16.mxu0 %v2152_v4  ;;  %v2157_v7 = vld [vmem:[%s2902_s3 + $0x18] ss:$12 sps:$4 sm:$0xff]   ;;  %v2158_v8 = vld [vmem:[%s2902_s3 + $0x34] ss:$12 sps:$4 sm:$0xff]   ;;  %v2160_v9 = vld [vmem:[%s2902_s3 + $0x30] ss:$12 sps:$4 sm:$0xff]  }
 0x106   : > { %778 = vmatpush1.bf16.msra.mxu0 %v2154_v5  ;;  %v2161_v10 = vld [vmem:[%s2902_s3 + $0x4c] ss:$12 sps:$4 sm:$0xff]   ;;  %v2163_v11 = vld [vmem:[%s2902_s3 + $0x48] ss:$12 sps:$4 sm:$0xff]   ;;  %v2164_v12 = vld [vmem:[%s2902_s3 + $0x64] ss:$12 sps:$4 sm:$0xff]  }
 0x107   : > { %779 = vmatprep.subr.bf16.mxu0 %v2155_v6  ;;  %v2166_v13 = vld [vmem:[%s2902_s3 + $0x60] ss:$12 sps:$4 sm:$0xff]   ;;  %v2180_v14 = vld [vmem:[%s2902_s3 + $0x8] ss:$12 sps:$4 sm:$0xff]   ;;  %v2169_v17 = vld [vmem:[%s2902_s3 + $0x78] ss:$12 sps:$4 sm:$0xff]  }
 0x108   : > { %v2167_v15 = vld [vmem:[%s2902_s3 + $0x7c] ss:$12 sps:$4 sm:$0xff]   ;;  %1875 = vmatpush3.bf16.msra.mxu1 %v2180_v14  ;;  %v2181_v16 = vld [vmem:[%s2902_s3 + $0x20] ss:$12 sps:$4 sm:$0xff]   ;;  %v2183_v19 = vld [vmem:[%s2902_s3 + $0x38] ss:$12 sps:$4 sm:$0xff]  }
 0x109   : > { %1876 = vmatprep.subr.bf16.mxu1 %v2518_v3  ;;  %v2170_v18 = vld [vmem:[%s2902_s3 + $0x94] ss:$12 sps:$4 sm:$0xff]   ;;  %v2172_v20 = vld [vmem:[%s2902_s3 + $0x90] ss:$12 sps:$4 sm:$0xff]   ;;  %v2173_v21 = vld [vmem:[%s2902_s3 + $0xac] ss:$12 sps:$4 sm:$0xff]  }
 0x10a   : > { %780 = vmatpush1.bf16.msra.mxu0 %v2157_v7  ;;  %v2184_v22 = vld [vmem:[%s2902_s3 + $0x50] ss:$12 sps:$4 sm:$0xff]   ;;  %v2175_v23 = vld [vmem:[%s2902_s3 + $0xa8] ss:$12 sps:$4 sm:$0xff]   ;;  %v2187_v27 = vld [vmem:[%s2902_s3 + $0x80] ss:$12 sps:$4 sm:$0xff]  }
 0x10b   : > { %781 = vmatprep.subr.bf16.mxu0 %v2158_v8  ;;  %v2186_v25 = vld [vmem:[%s2902_s3 + $0x68] ss:$12 sps:$4 sm:$0xff]   ;;  %v2189_v29 = vld [vmem:[%s2902_s3 + $0x98] ss:$12 sps:$4 sm:$0xff]   ;;  %v2190_v30 = vld [vmem:[%s2902_s3 + $0xb0] ss:$12 sps:$4 sm:$0xff]  }
 0x10c   : > { %1877 = vmatpush3.bf16.msra.mxu1 %v2181_v16  ;;  %v2179_v33 = vld [vmem:[%s2900_s1 + $0x18] sm:$0xff]   ;;  %v2182_v34 = vld [vmem:[%s2900_s1 + $0x20] sm:$0xff]   ;;  %v2185_v35 = vld [vmem:[%s2900_s1 + $0x28] sm:$0xff]   ;;  %v1004_v16 = vstv %s1763_s23  ;;  %s1118_s25 = scalar_lea.vmem [#allocation10], %s2896_s27  ;;  %s3055_s24 = scalar_lea.vmem [#allocation13], %s2896_s27 }
 0x10d   : > { %1878 = vmatprep.subr.bf16.mxu1 %v2518_v3  ;;  %v2188_v36 = vld [vmem:[%s2900_s1 + $0x30] sm:$0xff]   ;;  %v2191_v37 = vld [vmem:[%s2900_s1 + $0x38] sm:$0xff]   ;;  %v865_v38 = vld [vmem:[%s2964_s6] sm:$0xff]  ;;  %s3211_s1 = sld [smem:[#allocation23_spill]]  ;;  %s3212_s5 = sld [smem:[#allocation26_spill]] }
 0x10e   : > { %782 = vmatpush1.bf16.msra.mxu0 %v2160_v9  ;;  %v1519_v45 = vld [vmem:[%s2964_s6] sm:$0xf0]  ;;  %v868_v52 = vld [vmem:[%s2964_s6 + $0x30] sm:$0xff]  ;;  %v873_v1 = vld [vmem:[%s2964_s6 + $0x8] sm:$0xff]  ;;  %s3213_s7 = sld [smem:[#allocation27_spill]]  ;;  %p1800_p4 = scmp.ne.s32.totalorder %s3209_s13, 1 }
 0x10f   : > { %783 = vmatprep.subr.bf16.mxu0 %v2161_v10  ;;  %v1528_v46 = vrot.slane %v1519_v45, 4  ;;  %v867_v51 = vld [vmem:[%s2964_s6 + $0x20] sm:$0xff]  ;;  %v870_v54 = vld [vmem:[%s2964_s6 + $0x50] sm:$0xff]  ;;  %v1520_v2 = vld [vmem:[%s2964_s6 + $0x8] sm:$0xf0] }
 0x110   : > { %1879 = vmatpush3.bf16.msra.mxu1 %v2183_v19  ;;  %v869_v53 = vld [vmem:[%s2964_s6 + $0x40] sm:$0xff]  ;;  %v872_v56 = vld [vmem:[%s2964_s6 + $0x70] sm:$0xff]  ;;  %v1531_v4 = vrot.slane %v1520_v2, 4  ;;  %v2197_v45 = vld [vmem:[%s1118_s25 + $0x28] sm:$0xff]  }
 0x111   : > { %1880 = vmatprep.subr.bf16.mxu1 %v2518_v3  ;;  %v871_v55 = vld [vmem:[%s2964_s6 + $0x60] sm:$0xff] }
 0x112   : > { %784 = vmatpush1.bf16.msra.mxu0 %v2163_v11 }
 0x113   : > { %785 = vmatprep.subr.bf16.mxu0 %v2164_v12  ;;  %s1055_s3 = scalar_lea.vmem %s3211_s1, %s3209_s13  ;;  %s1239_s9 = scalar_lea.vmem %s3212_s5, %s3209_s13 }
 0x114   : > { %1881 = vmatpush3.bf16.msra.mxu1 %v2184_v22  ;;  %v1765_v19 = vld [vmem:[%s1055_s3] ss:$0 sm:$0xff]  ;;  %s1248_s1 = scalar_lea.vmem %s3213_s7, %s3209_s13  ;;  %s3216_s7 = sld [smem:[#allocation30_spill]] }
 0x115   : > { %1882 = vmatprep.subr.bf16.mxu1 %v2518_v3 }
 0x116   : > { %786 = vmatpush1.bf16.msra.mxu0 %v2166_v13  ;;  %v997_v13 = vlaneseq }
 0x117   : > { %787 = vmatprep.subr.bf16.mxu0 %v2167_v15 }
 0x118   : > { %1883 = vmatpush3.bf16.msra.mxu1 %v2186_v25  ;;  %v3004_v14 = vand.u32 127, %v997_v13  ;;  %v1000_v15 = vshrl.u32 %v997_v13, 7  ;;  %v2209_v13 = vld [vmem:[%s3055_s24 + $0x8] sm:$0xff]  }
 0x119   : > { %1884 = vmatprep.subr.bf16.mxu1 %v2518_v3 }
 0x11a   : > { %788 = vmatpush1.bf16.msra.mxu0 %v2169_v17  ;;  %v1764_v17 = vadd.s32 4294967280, %v3004_v14  ;;  %vm1007_vm2 = vcmp.ge.s32.totalorder %v3004_v14, 16  ;;  %vm1008_vm3 = vcmp.lt.s32.totalorder %v3004_v14, 24  ;;  %vm1001_vm4 = vcmp.lt.s32.totalorder %v3004_v14, 16 }
 0x11b   : > { %789 = vmatprep.subr.bf16.mxu0 %v2170_v18  ;;  %vm1005_vm5 = vcmp.ge.s32.totalorder %v3004_v14, %v1004_v16  ;;  %vm1009_vm6 = vmand %vm1007_vm2, %vm1008_vm3  ;;  %vm1223_vm11 = vcmp.lt.s32.totalorder %v3004_v14, 32  ;;  %v2210_v14 = vld [vmem:[%s3055_s24 + $0x10] sm:$0xff]   ;;  %v2212_v16 = vld [vmem:[%s3055_s24 + $0x20] sm:$0xff]  }
 0x11c   : > { %1885 = vmatpush3.bf16.msra.mxu1 %v2187_v27  ;;  %vm1011_vm7 = vcmp.le.s32.totalorder %v1764_v17, %v1000_v15  ;;  %vm1006_vm8 = vmand %vm1001_vm4, %vm1005_vm5  ;;  %v3046_v2 = vsel %vm1223_vm11, 1.0, %v2518_v3  ;;  %v2211_v15 = vld [vmem:[%s3055_s24 + $0x18] sm:$0xff]   ;;  %v2213_v17 = vld [vmem:[%s3055_s24 + $0x28] sm:$0xff]  }
 0x11d   : > { %1886 = vmatprep.subr.bf16.mxu1 %v2518_v3  ;;  %vm1012_vm9 = vmand %vm1009_vm6, %vm1011_vm7 }
 0x11e   : > { %790 = vmatpush1.bf16.msra.mxu0 %v2172_v20  ;;  %vm1013_vm10 = vmor %vm1006_vm8, %vm1012_vm9 }
 0x11f   : > { %791 = vmatprep.subr.bf16.mxu0 %v2173_v21 }
 0x120   : > { %1887 = vmatpush3.bf16.msra.mxu1 %v2189_v29 }
 0x121   : > { %1888 = vmatprep.subr.bf16.mxu1 %v2518_v3 }
 0x122   : > { %792 = vmatpush1.bf16.msra.mxu0 %v2175_v23 }
 0x123   : > { %1894 = vmatprep.subr.bf16.mxu0 %v2518_v3 }
 0x124   : > { %1889 = vmatpush3.bf16.msra.mxu1 %v2190_v30  ;;  %v875_v30 = vld [vmem:[%s2964_s6 + $0x28] sm:$0xff] }
 0x125   : > { %810 = vmatmul.mubr.bf16.vlgmr.msra.gmra.mrb[0].mxu0 %v613_v26  ;;  %1914 = vmatprep.subr.bf16.mxu1 %v2518_v3 }
 0x126   : > { %1910 = vmatprep.mubr.msk.bf16.mxu0 %vm2519_vm0, %v2518_v3 }
 0x127   : > { %1891 = vmatmul.mubr.bf16.vlgmr.msra.gmra.mrb[0].mxu1 %v613_v26  ;;  %v2520_v26 = vmov -1e+09  }
 0x128   : > { %1930 = vmatprep.mubr.msk.bf16.mxu1 %vm2519_vm0, %v2518_v3  ;;  %v1014_v27 = vsel %vm1013_vm10, 0.0, %v2520_v26 }
 0x12b   : > { %1895 = vmatpush3.bf16.xpose.msra.mxu0 %v2176_v28 }
 0x12c   : > { %1896 = vmatprep.subr.bf16.mxu0 %v2518_v3 }
 0x12d   : > { %1915 = vmatpush3.bf16.xpose.msra.mxu1 %v865_v38  ;;  %v879_v38 = vld [vmem:[%s2964_s6 + $0x68] sm:$0xff] }
 0x12e   : > { %1916 = vmatprep.subr.bf16.mxu1 %v2518_v3 }
 0x133   : > { %1897 = vmatpush3.bf16.xpose.msra.mxu0 %v2177_v31  ;;  %v876_v31 = vld [vmem:[%s2964_s6 + $0x38] sm:$0xff] }
 0x134   : > { %1898 = vmatprep.subr.bf16.mxu0 %v2518_v3 }
 0x13b   : > { %1899 = vmatpush3.bf16.xpose.msra.mxu0 %v2178_v32 }
 0x13c   : > { %1900 = vmatprep.subr.bf16.mxu0 %v2518_v3 }
 0x143   : > { %1901 = vmatpush3.bf16.xpose.msra.mxu0 %v2179_v33 }
 0x144   : > { %1902 = vmatprep.subr.bf16.mxu0 %v2518_v3 }
 0x14b   : > { %1903 = vmatpush3.bf16.xpose.msra.mxu0 %v2182_v34 }
 0x14c   : > { %1904 = vmatprep.subr.bf16.mxu0 %v2518_v3 }
 0x153   : > { %1905 = vmatpush3.bf16.xpose.msra.mxu0 %v2185_v35 }
 0x154   : > { %1906 = vmatprep.subr.bf16.mxu0 %v2518_v3 }
 0x15b   : > { %1907 = vmatpush3.bf16.xpose.msra.mxu0 %v2188_v36  ;;  %v877_v36 = vld [vmem:[%s2964_s6 + $0x48] sm:$0xff] }
 0x15c   : > { %1908 = vmatprep.subr.bf16.mxu0 %v2518_v3 }
 0x163   : > { %1909 = vmatpush3.bf16.xpose.msra.mxu0 %v2191_v37  ;;  %v878_v37 = vld [vmem:[%s2964_s6 + $0x58] sm:$0xff] }
 0x164   : > { %1934 = vmatprep.subr.bf16.mxu0 %v2518_v3 }
 0x1f8   : > { %v811_v39 = vpop.f32.mrb[0].mxu0 }
 0x1f9   : > { %v890_v40 = vpack.c.bf16 %v811_v39, %v811_v39  ;;  %v813_v41 = vpop.f32.mrb[1].mxu0  ;;  %v888_v58 = vadd.f32 %v1753_v57, %v811_v39  ;;  %v880_v39 = vld [vmem:[%s2964_s6 + $0x78] sm:$0xff] }
 0x1fa   : > { %v858_v42 = vpack.c.bf16 %v813_v41, %v813_v41  ;;  %v815_v43 = vpop.f32.mrb[2].mxu0  ;;  %v852_v60 = vpop.f32.mrb[0].mxu1  ;;  %v2193_v41 = vld [vmem:[%s1118_s25 + $0x8] sm:$0xff]  }
 0x1fb   : > { %v816_v44 = vpop.f32.mrb[3].mxu0  ;;  %1911 = vmatmul.mubr.bf16.vlgmr.msra.gmra.mrb[4].mxu0 %v890_v40  ;;  %v889_v59 = vpack.c.bf16 %v888_v58, %v888_v58  ;;  %v859_v61 = vpack.c.bf16 %v852_v60, %v852_v60  ;;  %v1892_v62 = vpop.f32.mrb[1].mxu1  ;;  %v2192_v40 = vld [vmem:[%s1118_s25] sm:$0xff]   ;;  %v2195_v43 = vld [vmem:[%s1118_s25 + $0x18] sm:$0xff]  }
 0x1fc   : > { %863 = vst [vmem:[%s2964_s6 + $0x10] sm:$0xf] %v858_v42  ;;  %1950 = vmatprep.mubr.msk.bf16.mxu0 %vm2519_vm0, %v2518_v3  ;;  %v855_v63 = vpop.f32.mrb[2].mxu1  ;;  %1935 = vmatpush3.bf16.msra.mxu0 %v873_v1  ;;  %v2194_v42 = vld [vmem:[%s1118_s25 + $0x10] sm:$0xff]   ;;  %v2196_v44 = vld [vmem:[%s1118_s25 + $0x20] sm:$0xff]  }
 0x1fd   : > { %864 = vst [vmem:[%s2964_s6 + $0x18] sm:$0xf] %v859_v61  ;;  %v1893_v0 = vpop.f32.mrb[3].mxu1  ;;  %1936 = vmatprep.subr.bf16.mxu0 %v2518_v3 }
 0x203   : > { %v1521_v47 = vld [vmem:[%s2964_s6 + $0x10] sm:$0xf] }
 0x204   : > { %v866_v48 = vld [vmem:[%s2964_s6 + $0x10] sm:$0xff]  ;;  %v1529_v49 = vrot.slane %v1521_v47, 4  ;;  %v1522_v5 = vld [vmem:[%s2964_s6 + $0x18] sm:$0xf] }
 0x205   : > { %1917 = vmatpush3.bf16.xpose.msra.mxu1 %v866_v48  ;;  %v874_v6 = vld [vmem:[%s2964_s6 + $0x18] sm:$0xff]  ;;  %v1532_v7 = vrot.slane %v1522_v5, 4 }
 0x206   : > { %1918 = vmatprep.subr.bf16.mxu1 %v2518_v3  ;;  %v1530_v50 = vsel %vm1527_vm1, %v1528_v46, %v1529_v49  ;;  %1937 = vmatpush3.bf16.msra.mxu0 %v874_v6  ;;  %v2198_v46 = vld [vmem:[%s1118_s25 + $0x30] sm:$0xff]  }
 0x207   : > { %1536 = vst [vmem:[%s2964_s6] sm:$0xff] %v1530_v50  ;;  %1938 = vmatprep.subr.bf16.mxu0 %v2518_v3  ;;  %v1533_v8 = vsel %vm1527_vm1, %v1531_v4, %v1532_v7 }
 0x208   : > { %1537 = vst [vmem:[%s2964_s6 + $0x8] sm:$0xff] %v1533_v8  ;;  %s1259_s6 = scalar_lea.vmem [#allocation12], %s2896_s27 }
 0x209   : > { %v2200_v62 = vld [vmem:[%s1259_s6] sm:$0xff]   ;;  %v2201_v63 = vld [vmem:[%s1259_s6 + $0x8] sm:$0xff]   ;;  %v2202_v6 = vld [vmem:[%s1259_s6 + $0x10] sm:$0xff]  }
 0x20a   : > { %1939 = vmatpush3.bf16.msra.mxu0 %v875_v30  ;;  %v2203_v7 = vld [vmem:[%s1259_s6 + $0x18] sm:$0xff]   ;;  %v2204_v8 = vld [vmem:[%s1259_s6 + $0x20] sm:$0xff]  }
 0x20b   : > { %1940 = vmatprep.subr.bf16.mxu0 %v2518_v3  ;;  %v2215_v30 = vld [vmem:[%s3055_s24 + $0x38] sm:$0xff]  }
 0x20d   : > { %1919 = vmatpush3.bf16.xpose.msra.mxu1 %v867_v51  ;;  %v2199_v51 = vld [vmem:[%s1118_s25 + $0x38] sm:$0xff]  }
 0x20e   : > { %1920 = vmatprep.subr.bf16.mxu1 %v2518_v3  ;;  %1941 = vmatpush3.bf16.msra.mxu0 %v876_v31 }
 0x20f   : > { %1942 = vmatprep.subr.bf16.mxu0 %v2518_v3 }
 0x212   : > { %1943 = vmatpush3.bf16.msra.mxu0 %v877_v36 }
 0x213   : > { %1944 = vmatprep.subr.bf16.mxu0 %v2518_v3 }
 0x215   : > { %1921 = vmatpush3.bf16.xpose.msra.mxu1 %v868_v52 }
 0x216   : > { %1922 = vmatprep.subr.bf16.mxu1 %v2518_v3  ;;  %1945 = vmatpush3.bf16.msra.mxu0 %v878_v37 }
 0x217   : > { %1946 = vmatprep.subr.bf16.mxu0 %v2518_v3 }
 0x21a   : > { %1947 = vmatpush3.bf16.msra.mxu0 %v879_v38 }
 0x21b   : > { %1948 = vmatprep.subr.bf16.mxu0 %v2518_v3 }
 0x21d   : > { %1923 = vmatpush3.bf16.xpose.msra.mxu1 %v869_v53 }
 0x21e   : > { %1924 = vmatprep.subr.bf16.mxu1 %v2518_v3  ;;  %1949 = vmatpush3.bf16.msra.mxu0 %v880_v39 }
 0x21f   : > { %1974 = vmatprep.subr.bf16.mxu0 %v2518_v3 }
 0x225   : > { %1925 = vmatpush3.bf16.xpose.msra.mxu1 %v870_v54 }
 0x226   : > { %1926 = vmatprep.subr.bf16.mxu1 %v2518_v3 }
 0x22d   : > { %1927 = vmatpush3.bf16.xpose.msra.mxu1 %v871_v55 }
 0x22e   : > { %1928 = vmatprep.subr.bf16.mxu1 %v2518_v3 }
 0x235   : > { %1929 = vmatpush3.bf16.xpose.msra.mxu1 %v872_v56 }
 0x236   : > { %1954 = vmatprep.subr.bf16.mxu1 %v2518_v3 }
 0x23c   : > { %1931 = vmatmul.mubr.bf16.vlgmr.msra.gmra.mrb[4].mxu1 %v889_v59 }
 0x23d   : > { %1970 = vmatprep.mubr.msk.bf16.mxu1 %vm2519_vm0, %v2518_v3  ;;  %1955 = vmatpush3.bf16.msra.mxu1 %v2192_v40 }
 0x23e   : > { %1956 = vmatprep.subr.bf16.mxu1 %v2518_v3 }
 0x241   : > { %1957 = vmatpush3.bf16.msra.mxu1 %v2193_v41 }
 0x242   : > { %1958 = vmatprep.subr.bf16.mxu1 %v2518_v3 }
 0x245   : > { %1959 = vmatpush3.bf16.msra.mxu1 %v2194_v42 }
 0x246   : > { %1960 = vmatprep.subr.bf16.mxu1 %v2518_v3 }
 0x249   : > { %1961 = vmatpush3.bf16.msra.mxu1 %v2195_v43 }
 0x24a   : > { %1962 = vmatprep.subr.bf16.mxu1 %v2518_v3 }
 0x24d   : > { %1963 = vmatpush3.bf16.msra.mxu1 %v2196_v44 }
 0x24e   : > { %1964 = vmatprep.subr.bf16.mxu1 %v2518_v3 }
 0x251   : > { %1965 = vmatpush3.bf16.msra.mxu1 %v2197_v45 }
 0x252   : > { %1966 = vmatprep.subr.bf16.mxu1 %v2518_v3 }
 0x255   : > { %1967 = vmatpush3.bf16.msra.mxu1 %v2198_v46 }
 0x256   : > { %1968 = vmatprep.subr.bf16.mxu1 %v2518_v3 }
 0x259   : > { %1969 = vmatpush3.bf16.msra.mxu1 %v2199_v51 }
 0x25a   : > { %1994 = vmatprep.subr.bf16.mxu1 %v2518_v3 }
 0x2ce   : > { %v991_v9 = vpop.f32.mrb[4].mxu0 }
 0x2cf   : > { %v1912_v10 = vpop.f32.mrb[5].mxu0 }
 0x2d0   : > { %v994_v11 = vpop.f32.mrb[6].mxu0  ;;  %v2206_v10 = vld [vmem:[%s1259_s6 + $0x30] sm:$0xff]  }
 0x2d1   : > { %v1913_v12 = vpop.f32.mrb[7].mxu0  ;;  %v2207_v11 = vld [vmem:[%s1259_s6 + $0x38] sm:$0xff]  }
 0x2d2   : > { %v2208_v12 = vld [vmem:[%s3055_s24] sm:$0xff]  }
 0x30f   : > { %v1049_v18 = vpop.f32.mrb[4].mxu1 }
 0x310   : > { %v1050_v20 = vadd.f32 %v1049_v18, %v991_v9  ;;  %v1932_v21 = vpop.f32.mrb[5].mxu1  ;;  %v2205_v9 = vld [vmem:[%s1259_s6 + $0x28] sm:$0xff]   ;;  %s3214_s6 = sld [smem:[#allocation28_spill]] }
 0x311   : > { %v1052_v22 = vpop.f32.mrb[6].mxu1 }
 0x312   : > { %v1063_v23 = vadd.f32 %v1765_v19, %v1050_v20  ;;  %v1933_v25 = vpop.f32.mrb[7].mxu1  ;;  %v1776_v22 = vld [vmem:[%s1239_s9] ss:$0 sm:$0xff]  ;;  %s3215_s9 = sld [smem:[#allocation29_spill]] }
 0x313   : > { %v1777_v25 = vld [vmem:[%s1248_s1] ss:$0 sm:$0xff]  ;;  %s1501_s1 = scalar_lea.vmem %s3216_s7, %s3209_s13 }
 0x314   : > { %v1064_v28 = vmul.f32 0.17677669, %v1063_v23 }
 0x316   : > { %v1065_v29 = vadd.f32 %v1064_v28, %v1014_v27  ;;  %s1276_s27 = scalar_lea.vmem %s3214_s6, %s3209_s13  ;;  %s3217_s6 = sld [smem:[#allocation31_spill]] }
 0x317   : > { %v1779_v31 = vld [vmem:[%s1276_s27] ss:$0 sm:$0xff] }
 0x318   : > { %1066 = vmax.xlane.f32.xlu0 %v1065_v29  ;;  %s1392_s23 = scalar_lea.vmem %s3215_s9, %s3209_s13 }
 0x31c   : > { %s1510_s27 = scalar_lea.vmem %s3217_s6, %s3209_s13 }
 0x3a5   : > { %v1067_v32 = vpop.xlane.xlu0 %1066 }
 0x3a6   : > { %v1068_v33 = vsub.f32 %v1065_v29, %v1067_v32  ;;  %v2214_v29 = vld [vmem:[%s3055_s24 + $0x30] sm:$0xff]  }
 0x3a8   : > { %v1069_v34 = vmul.f32 1.442695, %v1068_v33 }
 0x3aa   : > { %2216 = vpow2.f32 %v1069_v34 }
 0x3b4   : > { %v2217_v35 = vpop.eup %2216 }
 0x3b5   : > { %1071 = vadd.xlane.f32.xlu0 %v2217_v35 }
 0x442   : > { %v1072_v47 = vpop.xlane.xlu0 %1071 }
 0x443   : > { %2218 = vrcp.f32 %v1072_v47 }
 0x44d   : > { %v2219_v48 = vpop.eup %2218 }
 0x44e   : > { %v1074_v49 = vmul.f32 %v2219_v48, %v2217_v35 }
 0x450   : > { %v1075_v50 = vpack.c.bf16 %v1074_v49, %v1074_v49 }
 0x452   : > { %1951 = vmatmul.mubr.bf16.vlgmr.msra.gmra.mrb[8].mxu0 %v1075_v50 }
 0x453   : > { %1990 = vmatprep.mubr.msk.bf16.mxu0 %vm2519_vm0, %v2518_v3  ;;  %1975 = vmatpush3.bf16.msra.mxu0 %v2200_v62 }
 0x454   : > { %1976 = vmatprep.subr.bf16.mxu0 %v2518_v3 }
 0x457   : > { %1977 = vmatpush3.bf16.msra.mxu0 %v2201_v63 }
 0x458   : > { %1978 = vmatprep.subr.bf16.mxu0 %v2518_v3 }
 0x45b   : > { %1979 = vmatpush3.bf16.msra.mxu0 %v2202_v6 }
 0x45c   : > { %1980 = vmatprep.subr.bf16.mxu0 %v2518_v3 }
 0x45f   : > { %1981 = vmatpush3.bf16.msra.mxu0 %v2203_v7 }
 0x460   : > { %1982 = vmatprep.subr.bf16.mxu0 %v2518_v3 }
 0x463   : > { %1983 = vmatpush3.bf16.msra.mxu0 %v2204_v8 }
 0x464   : > { %1984 = vmatprep.subr.bf16.mxu0 %v2518_v3 }
 0x467   : > { %1985 = vmatpush3.bf16.msra.mxu0 %v2205_v9 }
 0x468   : > { %1986 = vmatprep.subr.bf16.mxu0 %v2518_v3 }
 0x46b   : > { %1987 = vmatpush3.bf16.msra.mxu0 %v2206_v10 }
 0x46c   : > { %1988 = vmatprep.subr.bf16.mxu0 %v2518_v3 }
 0x46f   : > { %1989 = vmatpush3.bf16.msra.mxu0 %v2207_v11 }
 0x525   : > { %v1110_v52 = vpop.f32.mrb[8].mxu0 }
 0x526   : > { %v1116_v53 = vpack.c.bf16 %v1110_v52, %v1110_v52  ;;  %v1952_v54 = vpop.f32.mrb[9].mxu0 }
 0x527   : > { %v1113_v55 = vpop.f32.mrb[10].mxu0  ;;  %v1798_v54 = vld [vmem:[%s1501_s1] ss:$0 sm:$0xff] }
 0x528   : > { %v1953_v56 = vpop.f32.mrb[11].mxu0  ;;  %1971 = vmatmul.mubr.bf16.vlgmr.msra.gmra.mrb[8].mxu1 %v1116_v53 }
 0x529   : > { %2010 = vmatprep.mubr.msk.bf16.mxu1 %vm2519_vm0, %v2518_v3  ;;  %1995 = vmatpush3.bf16.msra.mxu1 %v2208_v12  ;;  %v1799_v56 = vld [vmem:[%s1510_s27] ss:$0 sm:$0xff] }
 0x52a   : > { %1996 = vmatprep.subr.bf16.mxu1 %v2518_v3 }
 0x52d   : > { %1997 = vmatpush3.bf16.msra.mxu1 %v2209_v13 }
 0x52e   : > { %1998 = vmatprep.subr.bf16.mxu1 %v2518_v3 }
 0x531   : > { %1999 = vmatpush3.bf16.msra.mxu1 %v2210_v14 }
 0x532   : > { %2000 = vmatprep.subr.bf16.mxu1 %v2518_v3 }
 0x535   : > { %2001 = vmatpush3.bf16.msra.mxu1 %v2211_v15 }
 0x536   : > { %2002 = vmatprep.subr.bf16.mxu1 %v2518_v3 }
 0x539   : > { %2003 = vmatpush3.bf16.msra.mxu1 %v2212_v16 }
 0x53a   : > { %2004 = vmatprep.subr.bf16.mxu1 %v2518_v3 }
 0x53d   : > { %2005 = vmatpush3.bf16.msra.mxu1 %v2213_v17 }
 0x53e   : > { %2006 = vmatprep.subr.bf16.mxu1 %v2518_v3 }
 0x541   : > { %2007 = vmatpush3.bf16.msra.mxu1 %v2214_v29 }
 0x542   : > { %2008 = vmatprep.subr.bf16.mxu1 %v2518_v3  ;;  %v1789_v3 = vld [vmem:[%s1392_s23] ss:$0 sm:$0xff] }
 0x545   : > { %2009 = vmatpush3.bf16.msra.mxu1 %v2215_v30 }
 0x5fb   : > { %v1217_v57 = vpop.f32.mrb[8].mxu1 }
 0x5fc   : > { %v1226_v58 = vadd.f32 %v1217_v57, %v2927_v24  ;;  %v1972_v59 = vpop.f32.mrb[9].mxu1 }
 0x5fd   : > { %v1220_v60 = vpop.f32.mrb[10].mxu1 }
 0x5fe   : > { %1227 = vadd.xlane.f32.xlu1 %v1226_v58  ;;  %v1973_v61 = vpop.f32.mrb[11].mxu1 }
 0x68b   : > { %v1228_v0 = vpop.xlane.xlu1 %1227 }
 0x68c   : > { %v1229_v1 = vmul.f32 0.03125, %v1228_v0 }
 0x68e   : > { %v1230_v24 = vsub.f32 %v1226_v58, %v1229_v1 }
 0x690   : > { %v1231_v4 = vmul.f32 %v3046_v2, %v1230_v24 }
 0x692   : > { %v1232_v5 = vmul.f32 %v1231_v4, %v1231_v4 }
 0x694   : > { %1233 = vadd.xlane.f32.xlu1 %v1232_v5 }
 0x721   : > { %v1234_v18 = vpop.xlane.xlu1 %1233 }
 0x722   : > { %v1235_v19 = vmul.f32 0.03125, %v1234_v18 }
 0x724   : > { %v1236_v20 = vadd.f32 1e-05, %v1235_v19 }
 0x726   : > { %2220 = vrsqrt.f32 %v1236_v20 }
 0x730   : > { %v2221_v21 = vpop.eup %2220 }
 0x731   : > { %v1238_v23 = vmul.f32 %v2221_v21, %v1231_v4 }
 0x733   : > { %v1247_v26 = vmul.f32 %v1776_v22, %v1238_v23 }
 0x735   : > { %v1256_v27 = vadd.f32 %v1777_v25, %v1247_v26 }
 0x737   : > { %v1257_v28 = vpack.c.bf16 %v1256_v27, %v1256_v27 }
 0x739   : > { %1991 = vmatmul.mubr.bf16.vlgmr.msra.gmra.mrb[12].mxu0 %v1257_v28 }
 0x80c   : > { %v1366_v32 = vpop.f32.mrb[12].mxu0 }
 0x80d   : > { %v1367_v33 = vadd.f32 %v1779_v31, %v1366_v32  ;;  %v1992_v34 = vpop.f32.mrb[13].mxu0 }
 0x80e   : > { %v1369_v35 = vpop.f32.mrb[14].mxu0 }
 0x80f   : > { %v1372_v36 = vmax.f32 %v1367_v33, 0.0  ;;  %v1993_v37 = vpop.f32.mrb[15].mxu0 }
 0x811   : > { %v1373_v38 = vpack.c.bf16 %v1372_v36, %v1372_v36 }
 0x813   : > { %2011 = vmatmul.mubr.bf16.vlgmr.msra.gmra.mrb[12].mxu1 %v1373_v38 }
 0x8e6   : > { %v1482_v39 = vpop.f32.mrb[12].mxu1 }
 0x8e7   : > { %v1483_v40 = vadd.f32 %v1789_v3, %v1482_v39  ;;  %v2012_v41 = vpop.f32.mrb[13].mxu1 }
 0x8e8   : > { %v1485_v42 = vpop.f32.mrb[14].mxu1 }
 0x8e9   : > { %v2013_v43 = vpop.f32.mrb[15].mxu1  ;;  %v1488_v44 = vadd.f32 %v1483_v40, %v1256_v27 }
 0x8eb   : > { %1489 = vadd.xlane.f32.xlu0 %v1488_v44 }
 0x978   : > { %v1490_v45 = vpop.xlane.xlu0 %1489 }
 0x979   : > { %v1491_v46 = vmul.f32 0.03125, %v1490_v45 }
 0x97b   : > { %v1492_v47 = vsub.f32 %v1488_v44, %v1491_v46 }
 0x97d   : > { %v1493_v48 = vmul.f32 %v3046_v2, %v1492_v47 }
 0x97f   : > { %v1494_v49 = vmul.f32 %v1493_v48, %v1493_v48 }
 0x981   : > { %1495 = vadd.xlane.f32.xlu1 %v1494_v49 }
 0xa0e   : > { %v1496_v50 = vpop.xlane.xlu1 %1495 }
 0xa0f   : > { %v1497_v51 = vmul.f32 0.03125, %v1496_v50 }
 0xa11   : > { %v1498_v52 = vadd.f32 1e-05, %v1497_v51 }
 0xa13   : > { %2222 = vrsqrt.f32 %v1498_v52 }
 0xa1d   : > { %v2223_v53 = vpop.eup %2222 }
 0xa1e   : > { %v1500_v55 = vmul.f32 %v2223_v53, %v1493_v48  ;;  %1542 = sbr.rel (%p1800_p4) target bundleno = 2597 (0xa25), region = 112 }
 0xa20   : > { %v1509_v57 = vmul.f32 %v1798_v54, %v1500_v55 }
 0xa22   : > { %v1518_v58 = vadd.f32 %v1799_v56, %v1509_v57 }
 0xa24   : > { %1538 = vst [vmem:[#allocation3] sm:$0xff] %v1518_v58  ;;  %1543 = vst [vmem:[%s2890_s11] sm:$0xff] (!%p1800_p4), %v1518_v58 }
 0xa25 PF: > { %s1802_s21 = sshll.u32 %s2492_s17, 7  ;;  %s3218_s23 = sld [smem:[#allocation32_spill]] }
 0xa26   : > { %s1558_s22 = sshll.u32 %s2890_s11, 4  ;;  %s1545_s7 = scalar_lea.sflag [#allocation6], %s2866_s2  ;;  %s1559_s22 = int_to_ptr.vmem [resolvable:$true] %s1558_s22 }
 0xa27   : > { %s2394_s1 = scalar_lea.vmem %s1559_s22, 128  ;;  %p3219_p10 = scmp.ne.s32.totalorder %s3202_s12, 0 }
 0xa28   : > { %p2395_p9 = scmp.ne.s32.totalorder %s1559_s22, %s2394_s1  ;;  %s2521_s13 = smov [#allocation15]  }
 0xa29   : > { %s2398_s3 = sshll.u32 %s2521_s13, 4  ;;  %s2399_s3 = int_to_ptr.vmem [resolvable:$false] %s2398_s3 }
 0xa2a   : > { %p2396_p1 = pnand %p2395_p9, %p3219_p10  ;;  %s2400_s25 = scalar_lea.vmem %s2399_s3, 256 }
 0xa2b   : > { %s3103_s24 = scalar_lea.hbm %s3218_s23, %s1802_s21  ;;  %p2401_p11 = scmp.lt.s32.totalorder %s1559_s22, %s2399_s3 }
 0xa2c   : > { %p2397_p5 = pneg %p2396_p1  ;;  %p2402_p13 = scmp.lt.s32.totalorder %s2400_s25, %s2394_s1 }
 0xa2e   : > { %p2403_p0 = por %p2402_p13, %p2401_p11 }
 0xa30   : > { %p2404_p12 = pnand %p2403_p0, %p2397_p5 }
 0xa32   : > { %2407 = shalt.err (!%p2404_p12)
}
 0xa33   : > { %s2408_s17 = scalar_lea.hbm %s3103_s24, 128  ;;  %s2412_s6 = scalar_lea.hbm %s3218_s23, 384 }
 0xa34   : > { %p2409_p6 = scmp.ne.s32.totalorder %s3103_s24, %s2408_s17  ;;  %p2413_p7 = scmp.lt.u32.totalorder %s3103_s24, %s3218_s23 }
 0xa35   : > { %p2414_p3 = scmp.lt.u32.totalorder %s2412_s6, %s2408_s17  ;;  %p2416_p9 = scmp.lt.u32.totalorder %s2408_s17, %s3103_s24 }
 0xa36   : > { %p2410_p2 = pnand %p2409_p6, %p3219_p10 }
 0xa37   : > { %p2415_p4 = por %p2414_p3, %p2413_p7 }
 0xa38   : > { %p2411_p8 = pneg %p2410_p2 }
 0xa39   : > { %p2417_p1 = por %p2416_p9, %p2415_p4 }
 0xa3b   : > { %p2418_p5 = pnand %p2417_p1, %p2411_p8 }
 0xa3d   : > { %2421 = shalt.err (!%p2418_p5)
}
 0xa3e   : > { %2036 = dma.vmem_to_hbm [thread:$0]  (%p3219_p10), %s1559_s22, 128, %s3103_s24, %s1545_s7  }
 0xa3f PF: > { %p2073_p11 = scmp.ge.s32.totalorder %s2504_s20, 2  ;;  %s1570_s5 = sand.u32 1, %s2476_s29  }
 0xa40   : > { %p3220_p13 = scmp.ne.s32.totalorder %s3203_s28, 0  ;;  %s1571_s9 = scalar_lea.sflag [#allocation6], %s1570_s5 }
 0xa42   : > { %p2059_p0 = pnand %p2073_p11, %p3220_p13 }
 0xa44   : > { %2471 = dma.done.wait (!%p2059_p0), %s1571_s9, 128  }
 0xa45   : > { %2473 = vsyncadd (!%p2059_p0), %s1571_s9, 4294967168  ;;  %s33_s20 = sadd.s32 1, %s2504_s20   ;;  %s3221_s29 = smov %s2480_s30 }
 0xa46   : > { %p30_p12 = scmp.ge.s32.totalorder %s33_s20, 8   ;;  %s3222_s30 = smov %s2484_s15 }
 0xa47   : > { %s3223_s15 = smov %s2822_s16  ;;  %s3224_s16 = smov %s2496_s18 }
 0xa48   : > { %s3225_s17 = smov %s2500_s19  ;;  %s3226_s18 = smov %s3229_s26 }
 0xa49   : > { %s3227_s19 = smov %s3233_s14  ;;  %32 = sbr.rel (!%p30_p12) target bundleno = 22 (0x16), region = 166 }
 0xa50   :  { %1576 = vsyncpa [#allocation5], 1 }
 0xa51   :  { %1578 = vsyncpa [#allocation5 + $0x1], 1 }
 0xa52   :  { %1579 = vsyncpa [#allocation8], 1 }
 0xa53   :  { %1580 = vsyncpa [#allocation11], 1 }
 0xa54   :  { %1581 = vsyncpa [#allocation14], 1 }
 0xa55   :  { %1582 = vsyncpa [#allocation6], 1 }
 0xa56   :  { %1584 = vsyncpa [#allocation6 + $0x1], 1 }

// kernel: tpu_custom_call.1
= control target key start
LH: loop header
LB: loop body
LE: loop exit
PB: predicated region body
PF: predicated region fallthrough
CT: control target
= control target key end

     0   :  { %s3152_s0 = inlined_call_operand.hbm [shape: f32[3,8,128], index: 0, kind: input, shape index: {}]   ;;  %s3153_s1 = inlined_call_operand.hbm [shape: bf16[2,128,128], index: 1, kind: input, shape index: {}]   ;;  %s3154_s2 = inlined_call_operand.vmem [shape: f32[2,1,128], index: 2, kind: input, shape index: {}]   ;;  %s3155_s3 = inlined_call_operand.vmem [shape: f32[1,128], index: 3, kind: input, shape index: {}]   ;;  %s3156_s4 = inlined_call_operand.hbm [shape: bf16[2,128,384], index: 4, kind: input, shape index: {}]   ;;  %s3157_s5 = inlined_call_operand.hbm [shape: bf16[2,128,128], index: 5, kind: input, shape index: {}]   ;;  %s3158_s6 = inlined_call_operand.vmem [shape: f32[2,1,128], index: 6, kind: input, shape index: {}]   ;;  %s3159_s7 = inlined_call_operand.vmem [shape: f32[2,1,128], index: 7, kind: input, shape index: {}]   ;;  %s3160_s8 = inlined_call_operand.hbm [shape: bf16[2,128,128], index: 8, kind: input, shape index: {}]   ;;  %s3161_s9 = inlined_call_operand.vmem [shape: f32[2,1,128], index: 9, kind: input, shape index: {}]   ;;  %s3162_s10 = inlined_call_operand.hbm [shape: bf16[2,128,128], index: 10, kind: input, shape index: {}]   ;;  %s3163_s11 = inlined_call_operand.vmem [shape: f32[2,1,128], index: 11, kind: input, shape index: {}]   ;;  %s3164_s12 = inlined_call_operand.vmem [shape: f32[2,1,128], index: 12, kind: input, shape index: {}]   ;;  %s3165_s13 = inlined_call_operand.vmem [shape: f32[2,1,128], index: 13, kind: input, shape index: {}]   ;;  %s3166_s14 = inlined_call_operand.hbm [shape: f32[3,8,128], index: 14, kind: output, shape index: {}]  }
   0x1   :  { %3178 = sst [smem:[#allocation22_spill]] %s3153_s1 }
   0x2   :  { %3179 = sst [smem:[#allocation23_spill]] %s3154_s2 }
   0x3   :  { %3180 = sst [smem:[#allocation24_spill]] %s3155_s3 }
   0x4   :  { %3181 = sst [smem:[#allocation25_spill]] %s3157_s5 }
   0x5   :  { %3182 = sst [smem:[#allocation26_spill]] %s3158_s6 }
   0x6   :  { %3183 = sst [smem:[#allocation27_spill]] %s3159_s7 }
   0x7   :  { %3184 = sst [smem:[#allocation28_spill]] %s3161_s9 }
   0x8   :  { %3185 = sst [smem:[#allocation29_spill]] %s3163_s11 }
   0x9   :  { %3186 = sst [smem:[#allocation30_spill]] %s3164_s12 }
   0xa   :  { %3187 = sst [smem:[#allocation31_spill]] %s3165_s13 }
   0xb   :  { %3188 = sst [smem:[#allocation32_spill]] %s3166_s14 }
   0xc   :  { %19 = vsyncpa [#allocation5], 0 }
   0xd   :  { %21 = vsyncpa [#allocation5 + $0x1], 0 }
   0xe   :  { %22 = vsyncpa [#allocation8], 0 }
   0xf   :  { %23 = vsyncpa [#allocation11], 0 }
  0x10   :  { %24 = vsyncpa [#allocation14], 0 }
  0x11   :  { %25 = vsyncpa [#allocation6], 0 }
  0x12   :  { %27 = vsyncpa [#allocation6 + $0x1], 0  ;;  %s2597_s29 = smov 0   ;;  %s2599_s30 = smov 0  }
  0x13   :  { %s2601_s15 = smov 0   ;;  %s2603_s16 = smov 0  }
  0x14   :  { %s2605_s17 = smov 0   ;;  %s2607_s18 = smov 0  }
  0x15   :  { %s2609_s19 = smov 0   ;;  %s2611_s20 = smov 0  }
  0x16 LB: > { %3189 = sst [smem:[#allocation21_spill]] %s2488_s16  ;;  %s3167_s21 = sadd.s32 4294967295, %s2504_s20   ;;  %s2504_s20 = sphi %s2611_s20, %s33_s20   ;;  %s2500_s19 = sphi %s2609_s19, %s3227_s19   ;;  %s2496_s18 = sphi %s2607_s18, %s3226_s18   ;;  %s2492_s17 = sphi %s2605_s17, %s3225_s17   ;;  %s2488_s16 = sphi %s2603_s16, %s3224_s16   ;;  %s2484_s15 = sphi %s2601_s15, %s3223_s15   ;;  %s2480_s30 = sphi %s2599_s30, %s3222_s30   ;;  %s2476_s29 = sphi %s2597_s29, %s3221_s29  }
  0x17   : > { %p1708_p0 = scmp.ge.s32.totalorder %s2504_s20, 1  ;;  %p2641_p1 = scmp.eq.s32.totalorder %s3167_s21, 0 }
  0x18   : > { %p375_p2 = scmp.lt.s32.totalorder %s2504_s20, 7  ;;  %s2506_s24 = smov [#allocation7]  }
  0x19   : > { %s3190_s22 = scalar_select %p2641_p1, 1, 0 }
  0x1a   : > { %p2646_p3 = pnand %p1708_p0, %p375_p2  ;;  %s387_s25 = sshll.u32 %s2506_s24, 4  ;;  %s2650_s25 = int_to_ptr.vmem [resolvable:$true] %s387_s25 }
  0x1b   : > { %s2507_s27 = smov [#allocation10]   ;;  %s2508_s21 = smov [#allocation9]  }
  0x1c   : > { %s3191_s23 = scalar_select %p2646_p3, 1, 0 }
  0x1d   : > { %p2038_p4 = pneg %p2646_p3  ;;  %s419_s28 = sshll.u32 %s2507_s27, 4  ;;  %s2660_s28 = int_to_ptr.vmem [resolvable:$true] %s419_s28 }
  0x1e   : > { %s2662_s14 = sshll.u32 %s2508_s21, 4  ;;  %s3193_s1 = sld [smem:[#allocation22_spill]]  ;;  %s407_s14 = int_to_ptr.vmem [resolvable:$true] %s2662_s14 }
  0x1f   : > { %p2656_p5 = pnand %p2038_p4, %p2641_p1 }
  0x21   : > { %p2672_p7 = pneg %p2656_p5 }
  0x24   : > { %s2224_s24 = scalar_lea.hbm %s3193_s1, 2048 }
  0x25   : > { %p2225_p6 = scmp.ne.s32.totalorder %s3193_s1, %s2224_s24  ;;  %p2231_p10 = scmp.lt.u32.totalorder %s2224_s24, %s3193_s1 }
  0x27   : > { %p2227_p8 = pnand %p2672_p7, %p2225_p6 }
  0x29   : > { %p2228_p9 = pneg %p2227_p8 }
  0x2b   : > { %p2233_p11 = pnand %p2231_p10, %p2228_p9 }
  0x2d   : > { %2236 = shalt.err (!%p2233_p11)
}
  0x2e   : > { %s2237_s9 = scalar_lea.vmem %s2650_s25, 2048  ;;  %p2245_p2 = scmp.lt.s32.totalorder %s2650_s25, %s2650_s25 }
  0x2f   : > { %p2238_p12 = scmp.ne.s32.totalorder %s2650_s25, %s2237_s9  ;;  %p2246_p4 = scmp.lt.s32.totalorder %s2237_s9, %s2237_s9 }
  0x31   : > { %p2240_p13 = pnand %p2238_p12, %p2672_p7  ;;  %p2247_p6 = por %p2246_p4, %p2245_p2 }
  0x33   : > { %p2241_p0 = pneg %p2240_p13 }
  0x35   : > { %p2248_p8 = pnand %p2247_p6, %p2241_p0 }
  0x37   : > { %2251 = shalt.err (!%p2248_p8)
}
  0x38   : > { %s3173_s11 = smov 64   ;;  %s3175_s12 = smov 4  }
  0x39   : > { %2041 = dma.hbm_to_vmem [thread:$0]  (!%p2656_p5), %s3193_s1, 2048, %s2650_s25, [#allocation8], %s3173_s11, %s3173_s11, %s3175_s12  }
  0x3a   : > { %s3195_s5 = sld [smem:[#allocation25_spill]] }
  0x40   : > { %s2252_s9 = scalar_lea.hbm %s3195_s5, 2048 }
  0x41   : > { %p2253_p9 = scmp.ne.s32.totalorder %s3195_s5, %s2252_s9  ;;  %p2259_p12 = scmp.lt.u32.totalorder %s2252_s9, %s3195_s5 }
  0x43   : > { %p2255_p10 = pnand %p2253_p9, %p2672_p7 }
  0x45   : > { %p2256_p11 = pneg %p2255_p10 }
  0x47   : > { %p2261_p13 = pnand %p2259_p12, %p2256_p11 }
  0x49   : > { %2264 = shalt.err (!%p2261_p13)
}
  0x4a   : > { %s2265_s25 = scalar_lea.vmem %s2660_s28, 2048  ;;  %p2273_p6 = scmp.lt.s32.totalorder %s2660_s28, %s2660_s28 }
  0x4b   : > { %p2266_p0 = scmp.ne.s32.totalorder %s2660_s28, %s2265_s25  ;;  %p2274_p8 = scmp.lt.s32.totalorder %s2265_s25, %s2265_s25 }
  0x4d   : > { %p2268_p2 = pnand %p2266_p0, %p2672_p7  ;;  %p2275_p9 = por %p2274_p8, %p2273_p6 }
  0x4f   : > { %p2269_p4 = pneg %p2268_p2 }
  0x51   : > { %p2276_p10 = pnand %p2275_p9, %p2269_p4 }
  0x53   : > { %2279 = shalt.err (!%p2276_p10)
}
  0x54   : > { %2047 = dma.hbm_to_vmem [thread:$0]  (!%p2656_p5), %s3195_s5, 2048, %s2660_s28, [#allocation11], %s3173_s11, %s3173_s11, %s3175_s12  }
  0x55   : > { %s2280_s13 = scalar_lea.hbm %s3156_s4, 6144 }
  0x56   : > { %p2281_p11 = scmp.ne.s32.totalorder %s3156_s4, %s2280_s13  ;;  %p2287_p0 = scmp.lt.u32.totalorder %s2280_s13, %s3156_s4 }
  0x58   : > { %p2283_p12 = pnand %p2281_p11, %p2672_p7 }
  0x5a   : > { %p2284_p13 = pneg %p2283_p12 }
  0x5c   : > { %p2289_p2 = pnand %p2287_p0, %p2284_p13 }
  0x5e   : > { %2292 = shalt.err (!%p2289_p2)
}
  0x5f   : > { %s2293_s25 = scalar_lea.vmem %s407_s14, 6144  ;;  %p2301_p9 = scmp.lt.s32.totalorder %s407_s14, %s407_s14 }
  0x60   : > { %p2294_p4 = scmp.ne.s32.totalorder %s407_s14, %s2293_s25  ;;  %p2302_p10 = scmp.lt.s32.totalorder %s2293_s25, %s2293_s25 }
  0x62   : > { %p2296_p6 = pnand %p2294_p4, %p2672_p7  ;;  %p2303_p3 = por %p2302_p10, %p2301_p9 }
  0x64   : > { %p2297_p8 = pneg %p2296_p6 }
  0x66   : > { %p2304_p1 = pnand %p2303_p3, %p2297_p8 }
  0x68   : > { %2307 = shalt.err (!%p2304_p1)
}
  0x69   : > { %s2511_s28 = smov 192   ;;  %s2512_s2 = smov 12  }
  0x6a   : > { %2044 = dma.hbm_to_vmem [thread:$0]  (!%p2656_p5), %s3156_s4, 6144, %s407_s14, [#allocation8], %s2511_s28, %s2511_s28, %s2512_s2  }
  0x6b   : > { %s2513_s16 = smov [#allocation12]   ;;  %s2514_s24 = smov [#allocation13]  }
  0x6c   : > { %s438_s13 = sshll.u32 %s2513_s16, 4  ;;  %s454_s27 = sshll.u32 %s2514_s24, 4  ;;  %s439_s13 = int_to_ptr.vmem [resolvable:$true] %s438_s13  ;;  %s455_s27 = int_to_ptr.vmem [resolvable:$true] %s454_s27 }
  0x6d   : > { %s2308_s25 = scalar_lea.hbm %s3160_s8, 2048 }
  0x6e   : > { %p2309_p1 = scmp.ne.s32.totalorder %s3160_s8, %s2308_s25  ;;  %p2315_p12 = scmp.lt.u32.totalorder %s2308_s25, %s3160_s8 }
  0x70   : > { %p2311_p3 = pnand %p2309_p1, %p2672_p7 }
  0x72   : > { %p2312_p11 = pneg %p2311_p3 }
  0x74   : > { %p2317_p13 = pnand %p2315_p12, %p2312_p11 }
  0x76   : > { %2320 = shalt.err (!%p2317_p13)
}
  0x77   : > { %s2321_s14 = scalar_lea.vmem %s439_s13, 2048  ;;  %p2329_p6 = scmp.lt.s32.totalorder %s439_s13, %s439_s13 }
  0x78   : > { %p2322_p0 = scmp.ne.s32.totalorder %s439_s13, %s2321_s14  ;;  %p2330_p8 = scmp.lt.s32.totalorder %s2321_s14, %s2321_s14 }
  0x7a   : > { %p2324_p2 = pnand %p2322_p0, %p2672_p7  ;;  %p2331_p9 = por %p2330_p8, %p2329_p6 }
  0x7c   : > { %p2325_p4 = pneg %p2324_p2 }
  0x7e   : > { %p2332_p10 = pnand %p2331_p9, %p2325_p4 }
  0x80   : > { %2335 = shalt.err (!%p2332_p10)
}
  0x81   : > { %s3196_s11 = smov 4   ;;  %s3197_s12 = smov 64  }
  0x82   : > { %2050 = dma.hbm_to_vmem [thread:$0]  (!%p2656_p5), %s3160_s8, 2048, %s439_s13, [#allocation11], %s3197_s12, %s3197_s12, %s3196_s11  }
  0x83   : > { %s2336_s3 = scalar_lea.hbm %s3162_s10, 2048 }
  0x84   : > { %p2337_p1 = scmp.ne.s32.totalorder %s3162_s10, %s2336_s3  ;;  %p2343_p12 = scmp.lt.u32.totalorder %s2336_s3, %s3162_s10 }
  0x86   : > { %p2339_p3 = pnand %p2337_p1, %p2672_p7 }
  0x88   : > { %p2340_p11 = pneg %p2339_p3 }
  0x8a   : > { %p2345_p13 = pnand %p2343_p12, %p2340_p11 }
  0x8c   : > { %2348 = shalt.err (!%p2345_p13)
}
  0x8d   : > { %s2349_s9 = scalar_lea.vmem %s455_s27, 2048  ;;  %p2357_p6 = scmp.lt.s32.totalorder %s455_s27, %s455_s27 }
  0x8e   : > { %p2350_p0 = scmp.ne.s32.totalorder %s455_s27, %s2349_s9  ;;  %p2358_p8 = scmp.lt.s32.totalorder %s2349_s9, %s2349_s9 }
  0x90   : > { %p2352_p2 = pnand %p2350_p0, %p2672_p7  ;;  %p2359_p9 = por %p2358_p8, %p2357_p6 }
  0x92   : > { %p2353_p4 = pneg %p2352_p2 }
  0x94   : > { %p2360_p10 = pnand %p2359_p9, %p2353_p4 }
  0x96   : > { %2363 = shalt.err (!%p2360_p10)
}
  0x97   : > { %2053 = dma.hbm_to_vmem [thread:$0]  (!%p2656_p5), %s3162_s10, 2048, %s455_s27, [#allocation14], %s3197_s12, %s3197_s12, %s3196_s11  }
  0x98   : > { %s1707_s7 = sadd.s32 4294967294, %s2504_s20   ;;  %s42_s26 = sadd.s32 1, %s2496_s18 }
  0x99   : > { %s45_s14 = sadd.s32 1, %s2500_s19  ;;  %p43_p7 = scmp.ge.s32.totalorder %s42_s26, 2 }
  0x9a   : > { %s52_s1 = sadd.s32 1, %s2484_s15  ;;  %p59_p1 = scmp.ne.s32.totalorder %s2484_s15, %s2480_s30 }
  0x9b   : > { %p60_p3 = scmp.eq.s32.totalorder %s2504_s20, 0  ;;  %s3229_s26 = smov (%p43_p7, %s42_s26), 0 }
  0x9c   : > { %s3231_s14 = smov (!%p43_p7, %s45_s14), %s2500_s19  ;;  %p65_p5 = scmp.ne.s32.totalorder %s2480_s30, %s2476_s29 }
  0x9d   : > { %p2793_p11 = por %p60_p3, %p59_p1  ;;  %p47_p12 = scmp.ge.s32.totalorder %s3231_s14, 3 }
  0x9e   : > { %s3199_s27 = sadd.s32 4294967295, %s2504_s20   ;;  %p3200_p0 = scmp.ne.s32.totalorder %s3190_s22, 0 }
  0x9f   : > { %p362_p13 = scmp.eq.s32.totalorder %s3199_s27, 5  ;;  %p368_p4 = scmp.eq.s32.totalorder %s1707_s7, 5 }
  0xa0   : > { %p2803_p2 = por %p3200_p0, %p65_p5  ;;  %s3233_s14 = smov (%p47_p12, %s3231_s14), 0 }
  0xa1   : > { %p2809_p6 = por %p362_p13, %p59_p1  ;;  %p2813_p8 = por %p368_p4, %p65_p5 }
  0xa2   : > { %s49_s2 = ssub.s32 %s2500_s19, %s3233_s14  ;;  %p2067_p9 = scmp.lt.s32.totalorder %s2504_s20, 6 }
  0xa3   : > { %s3202_s12 = scalar_select %p2809_p6, 1, 0 }
  0xa4   : > { %s3203_s28 = scalar_select %p2813_p8, 1, 0 }
  0xa5   : > { %p50_p10 = scmp.eq.s32.totalorder %s49_s2, 0  ;;  %s477_s3 = sand.u32 1, %s2484_s15  }
  0xa6   : > { %s1715_s6 = sshll.u32 %s477_s3, 3  ;;  %s1716_s24 = sshll.u32 %s2500_s19, 7 }
  0xa7   : > { %s2822_s16 = scalar_select %p50_p10, %s2484_s15, %s52_s1  }
  0xa8   : > { %s2828_s13 = scalar_lea.hbm %s3152_s0, %s1716_s24  ;;  %s481_s25 = scalar_lea.vmem [#allocation4], %s1715_s6 }
  0xa9   : > { %s488_s7 = sshll.u32 %s481_s25, 4  ;;  %p2834_p7 = pnand %p2067_p9, %p2793_p11  ;;  %s2830_s7 = int_to_ptr.vmem [resolvable:$true] %s488_s7 }
  0xaa   : > { %s478_s1 = scalar_lea.sflag [#allocation5], %s477_s3  ;;  %s2364_s2 = scalar_lea.hbm %s2828_s13, 128 }
  0xab   : > { %p2365_p1 = scmp.ne.s32.totalorder %s2828_s13, %s2364_s2  ;;  %p2366_p3 = pneg %p2834_p7 }
  0xac   : > { %s2369_s21 = scalar_lea.hbm %s3152_s0, 384  ;;  %p2370_p11 = scmp.lt.u32.totalorder %s2828_s13, %s3152_s0 }
  0xad   : > { %p2367_p5 = pnand %p2366_p3, %p2365_p1  ;;  %p2371_p13 = scmp.lt.u32.totalorder %s2369_s21, %s2364_s2 }
  0xae   : > { %p2373_p4 = scmp.lt.u32.totalorder %s2364_s2, %s2828_s13 }
  0xaf   : > { %p2368_p12 = pneg %p2367_p5  ;;  %p2372_p0 = por %p2371_p13, %p2370_p11 }
  0xb1   : > { %p2374_p9 = por %p2373_p4, %p2372_p0 }
  0xb3   : > { %p2375_p10 = pnand %p2374_p9, %p2368_p12 }
  0xb5   : > { %2378 = shalt.err (!%p2375_p10)
}
  0xb6   : > { %s2379_s3 = scalar_lea.vmem %s2830_s7, 128  ;;  %s2515_s25 = smov [#allocation4]  }
  0xb7   : > { %p2380_p1 = scmp.ne.s32.totalorder %s2830_s7, %s2379_s3  ;;  %s2384_s6 = sshll.u32 %s2515_s25, 4  ;;  %s2385_s6 = int_to_ptr.vmem [resolvable:$false] %s2384_s6 }
  0xb8   : > { %s2386_s24 = scalar_lea.vmem %s2385_s6, 256  ;;  %p2387_p6 = scmp.lt.s32.totalorder %s2830_s7, %s2385_s6 }
  0xb9   : > { %p2382_p5 = pnand %p2380_p1, %p2366_p3  ;;  %p2388_p11 = scmp.lt.s32.totalorder %s2386_s24, %s2379_s3 }
  0xbb   : > { %p2383_p8 = pneg %p2382_p5  ;;  %p2389_p13 = por %p2388_p11, %p2387_p6 }
  0xbd   : > { %p2390_p0 = pnand %p2389_p13, %p2383_p8 }
  0xbf   : > { %2393 = shalt.err (!%p2390_p0)
}
  0xc0   : > { %2057 = dma.hbm_to_vmem [thread:$0]  (!%p2834_p7), %s2828_s13, 128, %s2830_s7, %s478_s1  }
  0xc1   : > { %p3205_p12 = scmp.ne.s32.totalorder %s3191_s23, 0 }
  0xc2   : > { %s2866_s2 = sand.u32 (!%p3205_p12), 1, %s2480_s30  }
  0xc3   : > { %497 = sbr.rel (%p3205_p12) target bundleno = 2623 (0xa3f), region = 76  ;;  %s1718_s21 = sshll.u32 (!%p3205_p12), %s2866_s2, 3 }
  0xc4   : > { %s500_s5 = scalar_lea.sflag (!%p3205_p12), [#allocation5], %s2866_s2  ;;  %s2870_s9 = scalar_lea.vmem (!%p3205_p12), [#allocation4], %s1718_s21 }
  0xca   : > { %2455 = dma.done.wait (%p2803_p2), %s500_s5, 128  }
  0xcb   : > { %2457 = vsyncadd (%p2803_p2), %s500_s5, 4294967168  ;;  %p3206_p6 = scmp.ne.s32.totalorder %s3190_s22, 0 }
  0xcd   : > { %2459 = dma.done.wait (%p3206_p6), [#allocation8], 8192  }
  0xce   : > { %2461 = vsyncadd (%p3206_p6), [#allocation8], 4294959104 }
  0xcf   : > { %2463 = dma.done.wait (%p3206_p6), [#allocation11], 4096  }
  0xd0   : > { %2465 = vsyncadd (%p3206_p6), [#allocation11], 4294963200 }
  0xd1   : > { %2467 = dma.done.wait (%p3206_p6), [#allocation14], 2048  }
  0xd2   : > { %2469 = vsyncadd (%p3206_p6), [#allocation14], 4294965248  ;;  %s3207_s23 = sld [smem:[#allocation21_spill]]  ;;  %p569_p2 = scmp.eq.s32.totalorder %s2492_s17, 0 }
  0xd3   : > { %s2890_s11 = scalar_lea.vmem [#allocation15], %s1718_s21 }
  0xd8   : > { %p570_p8 = scmp.eq.s32.totalorder %s3207_s23, 0 }
  0xda   : > { %p571_p7 = pnand %p570_p8, %p569_p2 }
  0xdb   : > { %v2516_v0 = vmov (!%p571_p7), 0  }
  0xdc   : > { %574 = sbr.rel (%p571_p7) target bundleno = 236 (0xec), region = 104  ;;  %575 = vst [vmem:[#allocation2] sm:$0xff] (!%p571_p7), %v2516_v0  ;;  %576 = vst [vmem:[#allocation2 + $0x8] sm:$0xff] (!%p571_p7), %v2516_v0 }
  0xdd   : > { %577 = vst [vmem:[#allocation2 + $0x10] sm:$0xff] (!%p571_p7), %v2516_v0  ;;  %578 = vst [vmem:[#allocation2 + $0x18] sm:$0xff] (!%p571_p7), %v2516_v0 }
  0xde   : > { %579 = vst [vmem:[#allocation2 + $0x20] sm:$0xff] (!%p571_p7), %v2516_v0  ;;  %580 = vst [vmem:[#allocation2 + $0x28] sm:$0xff] (!%p571_p7), %v2516_v0 }
  0xdf   : > { %581 = vst [vmem:[#allocation2 + $0x30] sm:$0xff] (!%p571_p7), %v2516_v0  ;;  %582 = vst [vmem:[#allocation2 + $0x38] sm:$0xff] (!%p571_p7), %v2516_v0 }
  0xe0   : > { %583 = vst [vmem:[#allocation2 + $0x40] sm:$0xff] (!%p571_p7), %v2516_v0  ;;  %584 = vst [vmem:[#allocation2 + $0x48] sm:$0xff] (!%p571_p7), %v2516_v0 }
  0xe1   : > { %585 = vst [vmem:[#allocation2 + $0x50] sm:$0xff] (!%p571_p7), %v2516_v0  ;;  %586 = vst [vmem:[#allocation2 + $0x58] sm:$0xff] (!%p571_p7), %v2516_v0 }
  0xe2   : > { %587 = vst [vmem:[#allocation2 + $0x60] sm:$0xff] (!%p571_p7), %v2516_v0  ;;  %588 = vst [vmem:[#allocation2 + $0x68] sm:$0xff] (!%p571_p7), %v2516_v0 }
  0xe3   : > { %589 = vst [vmem:[#allocation2 + $0x70] sm:$0xff] %v2516_v0  ;;  %590 = vst [vmem:[#allocation2 + $0x78] sm:$0xff] %v2516_v0 }
  0xe4   : > { %591 = vst [vmem:[#allocation2 + $0x80] sm:$0xff] %v2516_v0  ;;  %592 = vst [vmem:[#allocation2 + $0x88] sm:$0xff] %v2516_v0 }
  0xe5   : > { %593 = vst [vmem:[#allocation2 + $0x90] sm:$0xff] %v2516_v0  ;;  %594 = vst [vmem:[#allocation2 + $0x98] sm:$0xff] %v2516_v0 }
  0xe6   : > { %595 = vst [vmem:[#allocation2 + $0xa0] sm:$0xff] %v2516_v0  ;;  %596 = vst [vmem:[#allocation2 + $0xa8] sm:$0xff] %v2516_v0 }
  0xe7   : > { %597 = vst [vmem:[#allocation2 + $0xb0] sm:$0xff] %v2516_v0  ;;  %598 = vst [vmem:[#allocation2 + $0xb8] sm:$0xff] %v2516_v0 }
  0xe8   : > { %599 = vst [vmem:[#allocation2 + $0xc0] sm:$0xff] %v2516_v0  ;;  %600 = vst [vmem:[#allocation2 + $0xc8] sm:$0xff] %v2516_v0 }
  0xe9   : > { %601 = vst [vmem:[#allocation2 + $0xd0] sm:$0xff] %v2516_v0  ;;  %602 = vst [vmem:[#allocation2 + $0xd8] sm:$0xff] %v2516_v0 }
  0xea   : > { %603 = vst [vmem:[#allocation2 + $0xe0] sm:$0xff] %v2516_v0  ;;  %604 = vst [vmem:[#allocation2 + $0xe8] sm:$0xff] %v2516_v0 }
  0xeb   : > { %605 = vst [vmem:[#allocation2 + $0xf0] sm:$0xff] %v2516_v0  ;;  %606 = vst [vmem:[#allocation2 + $0xf8] sm:$0xff] %v2516_v0 }
  0xec PF: > { %s3208_s22 = sld [smem:[#allocation21_spill]] }
  0xf2   : > { %p1725_p3 = scmp.ne.s32.totalorder %s3208_s22, 0 }
  0xf3   : > { %v610_v1 = vld [vmem:[%s2870_s9] sm:$0xff] (!%p1725_p3) }
  0xf4   : > { %609 = sbr.rel (%p1725_p3) target bundleno = 251 (0xfb), region = 108  ;;  %611 = vst [vmem:[#allocation3] sm:$0xff] (!%p1725_p3), %v610_v1 }
  0xfb PF: > { %s3209_s13 = sld [smem:[#allocation21_spill]]  ;;  %v2517_v2 = vmov 0   ;;  %v2518_v3 = vmov 0.0   ;;  %v2927_v24 = vld [vmem:[#allocation3] sm:$0xff]  ;;  %vm2519_vm0 = vmmov 0   ;;  %vm1527_vm1 = vcmask 1043456  }
  0xfc   : > { %809 = vmatprep.mubr.bf16.mxu0 %v2517_v2  ;;  %1874 = vmatprep.subr.bf16.mxu1 %v2518_v3  ;;  %v613_v26 = vpack.c.bf16 %v2927_v24, %v2927_v24  ;;  %s3210_s5 = sld [smem:[#allocation24_spill]]  ;;  %s1002_s9 = ssub.s32 2, %s2492_s17 }
  0xfd   : > { %1890 = vmatprep.mubr.msk.bf16.mxu1 %vm2519_vm0, %v2518_v3  ;;  %s1763_s23 = sshll.u32 %s1002_s9, 3 }
 0x101   : > { %s1805_s7 = smul.u32 192, %s3209_s13  ;;  %s2896_s27 = sshll.u32 %s3209_s13, 6 }
 0x102   : > { %s2900_s1 = scalar_lea.vmem [#allocation7], %s2896_s27  ;;  %s1806_s25 = sshll.u32 %s3209_s13, 7  ;;  %v1753_v57 = vld [vmem:[%s3210_s5] ss:$0 sm:$0xff] }
 0x103   : > { %s2902_s3 = scalar_lea.vmem [#allocation9], %s1805_s7  ;;  %v2176_v28 = vld [vmem:[%s2900_s1] sm:$0xff]   ;;  %v2177_v31 = vld [vmem:[%s2900_s1 + $0x8] sm:$0xff]   ;;  %v2178_v32 = vld [vmem:[%s2900_s1 + $0x10] sm:$0xff]   ;;  %s2964_s6 = scalar_lea.vmem [#allocation2], %s1806_s25 }
 0x104   : > { %v2152_v4 = vld [vmem:[%s2902_s3 + $0x4] ss:$12 sps:$4 sm:$0xff]   ;;  %v2154_v5 = vld [vmem:[%s2902_s3] ss:$12 sps:$4 sm:$0xff]   ;;  %v2155_v6 = vld [vmem:[%s2902_s3 + $0x1c] ss:$12 sps:$4 sm:$0xff]  }
 0x105   : > { %777 = vmatprep.subr.bf16.mxu0 %v2152_v4  ;;  %v2157_v7 = vld [vmem:[%s2902_s3 + $0x18] ss:$12 sps:$4 sm:$0xff]   ;;  %v2158_v8 = vld [vmem:[%s2902_s3 + $0x34] ss:$12 sps:$4 sm:$0xff]   ;;  %v2160_v9 = vld [vmem:[%s2902_s3 + $0x30] ss:$12 sps:$4 sm:$0xff]  }
 0x106   : > { %778 = vmatpush1.bf16.msra.mxu0 %v2154_v5  ;;  %v2161_v10 = vld [vmem:[%s2902_s3 + $0x4c] ss:$12 sps:$4 sm:$0xff]   ;;  %v2163_v11 = vld [vmem:[%s2902_s3 + $0x48] ss:$12 sps:$4 sm:$0xff]   ;;  %v2164_v12 = vld [vmem:[%s2902_s3 + $0x64] ss:$12 sps:$4 sm:$0xff]  }
 0x107   : > { %779 = vmatprep.subr.bf16.mxu0 %v2155_v6  ;;  %v2166_v13 = vld [vmem:[%s2902_s3 + $0x60] ss:$12 sps:$4 sm:$0xff]   ;;  %v2180_v14 = vld [vmem:[%s2902_s3 + $0x8] ss:$12 sps:$4 sm:$0xff]   ;;  %v2169_v17 = vld [vmem:[%s2902_s3 + $0x78] ss:$12 sps:$4 sm:$0xff]  }
 0x108   : > { %v2167_v15 = vld [vmem:[%s2902_s3 + $0x7c] ss:$12 sps:$4 sm:$0xff]   ;;  %1875 = vmatpush3.bf16.msra.mxu1 %v2180_v14  ;;  %v2181_v16 = vld [vmem:[%s2902_s3 + $0x20] ss:$12 sps:$4 sm:$0xff]   ;;  %v2183_v19 = vld [vmem:[%s2902_s3 + $0x38] ss:$12 sps:$4 sm:$0xff]  }
 0x109   : > { %1876 = vmatprep.subr.bf16.mxu1 %v2518_v3  ;;  %v2170_v18 = vld [vmem:[%s2902_s3 + $0x94] ss:$12 sps:$4 sm:$0xff]   ;;  %v2172_v20 = vld [vmem:[%s2902_s3 + $0x90] ss:$12 sps:$4 sm:$0xff]   ;;  %v2173_v21 = vld [vmem:[%s2902_s3 + $0xac] ss:$12 sps:$4 sm:$0xff]  }
 0x10a   : > { %780 = vmatpush1.bf16.msra.mxu0 %v2157_v7  ;;  %v2184_v22 = vld [vmem:[%s2902_s3 + $0x50] ss:$12 sps:$4 sm:$0xff]   ;;  %v2175_v23 = vld [vmem:[%s2902_s3 + $0xa8] ss:$12 sps:$4 sm:$0xff]   ;;  %v2187_v27 = vld [vmem:[%s2902_s3 + $0x80] ss:$12 sps:$4 sm:$0xff]  }
 0x10b   : > { %781 = vmatprep.subr.bf16.mxu0 %v2158_v8  ;;  %v2186_v25 = vld [vmem:[%s2902_s3 + $0x68] ss:$12 sps:$4 sm:$0xff]   ;;  %v2189_v29 = vld [vmem:[%s2902_s3 + $0x98] ss:$12 sps:$4 sm:$0xff]   ;;  %v2190_v30 = vld [vmem:[%s2902_s3 + $0xb0] ss:$12 sps:$4 sm:$0xff]  }
 0x10c   : > { %1877 = vmatpush3.bf16.msra.mxu1 %v2181_v16  ;;  %v2179_v33 = vld [vmem:[%s2900_s1 + $0x18] sm:$0xff]   ;;  %v2182_v34 = vld [vmem:[%s2900_s1 + $0x20] sm:$0xff]   ;;  %v2185_v35 = vld [vmem:[%s2900_s1 + $0x28] sm:$0xff]   ;;  %v1004_v16 = vstv %s1763_s23  ;;  %s1118_s25 = scalar_lea.vmem [#allocation10], %s2896_s27  ;;  %s3055_s24 = scalar_lea.vmem [#allocation13], %s2896_s27 }
 0x10d   : > { %1878 = vmatprep.subr.bf16.mxu1 %v2518_v3  ;;  %v2188_v36 = vld [vmem:[%s2900_s1 + $0x30] sm:$0xff]   ;;  %v2191_v37 = vld [vmem:[%s2900_s1 + $0x38] sm:$0xff]   ;;  %v865_v38 = vld [vmem:[%s2964_s6] sm:$0xff]  ;;  %s3211_s1 = sld [smem:[#allocation23_spill]]  ;;  %s3212_s5 = sld [smem:[#allocation26_spill]] }
 0x10e   : > { %782 = vmatpush1.bf16.msra.mxu0 %v2160_v9  ;;  %v1519_v45 = vld [vmem:[%s2964_s6] sm:$0xf0]  ;;  %v868_v52 = vld [vmem:[%s2964_s6 + $0x30] sm:$0xff]  ;;  %v873_v1 = vld [vmem:[%s2964_s6 + $0x8] sm:$0xff]  ;;  %s3213_s7 = sld [smem:[#allocation27_spill]]  ;;  %p1800_p4 = scmp.ne.s32.totalorder %s3209_s13, 1 }
 0x10f   : > { %783 = vmatprep.subr.bf16.mxu0 %v2161_v10  ;;  %v1528_v46 = vrot.slane %v1519_v45, 4  ;;  %v867_v51 = vld [vmem:[%s2964_s6 + $0x20] sm:$0xff]  ;;  %v870_v54 = vld [vmem:[%s2964_s6 + $0x50] sm:$0xff]  ;;  %v1520_v2 = vld [vmem:[%s2964_s6 + $0x8] sm:$0xf0] }
 0x110   : > { %1879 = vmatpush3.bf16.msra.mxu1 %v2183_v19  ;;  %v869_v53 = vld [vmem:[%s2964_s6 + $0x40] sm:$0xff]  ;;  %v872_v56 = vld [vmem:[%s2964_s6 + $0x70] sm:$0xff]  ;;  %v1531_v4 = vrot.slane %v1520_v2, 4  ;;  %v2197_v45 = vld [vmem:[%s1118_s25 + $0x28] sm:$0xff]  }
 0x111   : > { %1880 = vmatprep.subr.bf16.mxu1 %v2518_v3  ;;  %v871_v55 = vld [vmem:[%s2964_s6 + $0x60] sm:$0xff] }
 0x112   : > { %784 = vmatpush1.bf16.msra.mxu0 %v2163_v11 }
 0x113   : > { %785 = vmatprep.subr.bf16.mxu0 %v2164_v12  ;;  %s1055_s3 = scalar_lea.vmem %s3211_s1, %s3209_s13  ;;  %s1239_s9 = scalar_lea.vmem %s3212_s5, %s3209_s13 }
 0x114   : > { %1881 = vmatpush3.bf16.msra.mxu1 %v2184_v22  ;;  %v1765_v19 = vld [vmem:[%s1055_s3] ss:$0 sm:$0xff]  ;;  %s1248_s1 = scalar_lea.vmem %s3213_s7, %s3209_s13  ;;  %s3216_s7 = sld [smem:[#allocation30_spill]] }
 0x115   : > { %1882 = vmatprep.subr.bf16.mxu1 %v2518_v3 }
 0x116   : > { %786 = vmatpush1.bf16.msra.mxu0 %v2166_v13  ;;  %v997_v13 = vlaneseq }
 0x117   : > { %787 = vmatprep.subr.bf16.mxu0 %v2167_v15 }
 0x118   : > { %1883 = vmatpush3.bf16.msra.mxu1 %v2186_v25  ;;  %v3004_v14 = vand.u32 127, %v997_v13  ;;  %v1000_v15 = vshrl.u32 %v997_v13, 7  ;;  %v2209_v13 = vld [vmem:[%s3055_s24 + $0x8] sm:$0xff]  }
 0x119   : > { %1884 = vmatprep.subr.bf16.mxu1 %v2518_v3 }
 0x11a   : > { %788 = vmatpush1.bf16.msra.mxu0 %v2169_v17  ;;  %v1764_v17 = vadd.s32 4294967280, %v3004_v14  ;;  %vm1007_vm2 = vcmp.ge.s32.totalorder %v3004_v14, 16  ;;  %vm1008_vm3 = vcmp.lt.s32.totalorder %v3004_v14, 24  ;;  %vm1001_vm4 = vcmp.lt.s32.totalorder %v3004_v14, 16 }
 0x11b   : > { %789 = vmatprep.subr.bf16.mxu0 %v2170_v18  ;;  %vm1005_vm5 = vcmp.ge.s32.totalorder %v3004_v14, %v1004_v16  ;;  %vm1009_vm6 = vmand %vm1007_vm2, %vm1008_vm3  ;;  %vm1223_vm11 = vcmp.lt.s32.totalorder %v3004_v14, 32  ;;  %v2210_v14 = vld [vmem:[%s3055_s24 + $0x10] sm:$0xff]   ;;  %v2212_v16 = vld [vmem:[%s3055_s24 + $0x20] sm:$0xff]  }
 0x11c   : > { %1885 = vmatpush3.bf16.msra.mxu1 %v2187_v27  ;;  %vm1011_vm7 = vcmp.le.s32.totalorder %v1764_v17, %v1000_v15  ;;  %vm1006_vm8 = vmand %vm1001_vm4, %vm1005_vm5  ;;  %v3046_v2 = vsel %vm1223_vm11, 1.0, %v2518_v3  ;;  %v2211_v15 = vld [vmem:[%s3055_s24 + $0x18] sm:$0xff]   ;;  %v2213_v17 = vld [vmem:[%s3055_s24 + $0x28] sm:$0xff]  }
 0x11d   : > { %1886 = vmatprep.subr.bf16.mxu1 %v2518_v3  ;;  %vm1012_vm9 = vmand %vm1009_vm6, %vm1011_vm7 }
 0x11e   : > { %790 = vmatpush1.bf16.msra.mxu0 %v2172_v20  ;;  %vm1013_vm10 = vmor %vm1006_vm8, %vm1012_vm9 }
 0x11f   : > { %791 = vmatprep.subr.bf16.mxu0 %v2173_v21 }
 0x120   : > { %1887 = vmatpush3.bf16.msra.mxu1 %v2189_v29 }
 0x121   : > { %1888 = vmatprep.subr.bf16.mxu1 %v2518_v3 }
 0x122   : > { %792 = vmatpush1.bf16.msra.mxu0 %v2175_v23 }
 0x123   : > { %1894 = vmatprep.subr.bf16.mxu0 %v2518_v3 }
 0x124   : > { %1889 = vmatpush3.bf16.msra.mxu1 %v2190_v30  ;;  %v875_v30 = vld [vmem:[%s2964_s6 + $0x28] sm:$0xff] }
 0x125   : > { %810 = vmatmul.mubr.bf16.vlgmr.msra.gmra.mrb[0].mxu0 %v613_v26  ;;  %1914 = vmatprep.subr.bf16.mxu1 %v2518_v3 }
 0x126   : > { %1910 = vmatprep.mubr.msk.bf16.mxu0 %vm2519_vm0, %v2518_v3 }
 0x127   : > { %1891 = vmatmul.mubr.bf16.vlgmr.msra.gmra.mrb[0].mxu1 %v613_v26  ;;  %v2520_v26 = vmov -1e+09  }
 0x128   : > { %1930 = vmatprep.mubr.msk.bf16.mxu1 %vm2519_vm0, %v2518_v3  ;;  %v1014_v27 = vsel %vm1013_vm10, 0.0, %v2520_v26 }
 0x12b   : > { %1895 = vmatpush3.bf16.xpose.msra.mxu0 %v2176_v28 }
 0x12c   : > { %1896 = vmatprep.subr.bf16.mxu0 %v2518_v3 }
 0x12d   : > { %1915 = vmatpush3.bf16.xpose.msra.mxu1 %v865_v38  ;;  %v879_v38 = vld [vmem:[%s2964_s6 + $0x68] sm:$0xff] }
 0x12e   : > { %1916 = vmatprep.subr.bf16.mxu1 %v2518_v3 }
 0x133   : > { %1897 = vmatpush3.bf16.xpose.msra.mxu0 %v2177_v31  ;;  %v876_v31 = vld [vmem:[%s2964_s6 + $0x38] sm:$0xff] }
 0x134   : > { %1898 = vmatprep.subr.bf16.mxu0 %v2518_v3 }
 0x13b   : > { %1899 = vmatpush3.bf16.xpose.msra.mxu0 %v2178_v32 }
 0x13c   : > { %1900 = vmatprep.subr.bf16.mxu0 %v2518_v3 }
 0x143   : > { %1901 = vmatpush3.bf16.xpose.msra.mxu0 %v2179_v33 }
 0x144   : > { %1902 = vmatprep.subr.bf16.mxu0 %v2518_v3 }
 0x14b   : > { %1903 = vmatpush3.bf16.xpose.msra.mxu0 %v2182_v34 }
 0x14c   : > { %1904 = vmatprep.subr.bf16.mxu0 %v2518_v3 }
 0x153   : > { %1905 = vmatpush3.bf16.xpose.msra.mxu0 %v2185_v35 }
 0x154   : > { %1906 = vmatprep.subr.bf16.mxu0 %v2518_v3 }
 0x15b   : > { %1907 = vmatpush3.bf16.xpose.msra.mxu0 %v2188_v36  ;;  %v877_v36 = vld [vmem:[%s2964_s6 + $0x48] sm:$0xff] }
 0x15c   : > { %1908 = vmatprep.subr.bf16.mxu0 %v2518_v3 }
 0x163   : > { %1909 = vmatpush3.bf16.xpose.msra.mxu0 %v2191_v37  ;;  %v878_v37 = vld [vmem:[%s2964_s6 + $0x58] sm:$0xff] }
 0x164   : > { %1934 = vmatprep.subr.bf16.mxu0 %v2518_v3 }
 0x1f8   : > { %v811_v39 = vpop.f32.mrb[0].mxu0 }
 0x1f9   : > { %v890_v40 = vpack.c.bf16 %v811_v39, %v811_v39  ;;  %v813_v41 = vpop.f32.mrb[1].mxu0  ;;  %v888_v58 = vadd.f32 %v1753_v57, %v811_v39  ;;  %v880_v39 = vld [vmem:[%s2964_s6 + $0x78] sm:$0xff] }
 0x1fa   : > { %v858_v42 = vpack.c.bf16 %v813_v41, %v813_v41  ;;  %v815_v43 = vpop.f32.mrb[2].mxu0  ;;  %v852_v60 = vpop.f32.mrb[0].mxu1  ;;  %v2193_v41 = vld [vmem:[%s1118_s25 + $0x8] sm:$0xff]  }
 0x1fb   : > { %v816_v44 = vpop.f32.mrb[3].mxu0  ;;  %1911 = vmatmul.mubr.bf16.vlgmr.msra.gmra.mrb[4].mxu0 %v890_v40  ;;  %v889_v59 = vpack.c.bf16 %v888_v58, %v888_v58  ;;  %v859_v61 = vpack.c.bf16 %v852_v60, %v852_v60  ;;  %v1892_v62 = vpop.f32.mrb[1].mxu1  ;;  %v2192_v40 = vld [vmem:[%s1118_s25] sm:$0xff]   ;;  %v2195_v43 = vld [vmem:[%s1118_s25 + $0x18] sm:$0xff]  }
 0x1fc   : > { %863 = vst [vmem:[%s2964_s6 + $0x10] sm:$0xf] %v858_v42  ;;  %1950 = vmatprep.mubr.msk.bf16.mxu0 %vm2519_vm0, %v2518_v3  ;;  %v855_v63 = vpop.f32.mrb[2].mxu1  ;;  %1935 = vmatpush3.bf16.msra.mxu0 %v873_v1  ;;  %v2194_v42 = vld [vmem:[%s1118_s25 + $0x10] sm:$0xff]   ;;  %v2196_v44 = vld [vmem:[%s1118_s25 + $0x20] sm:$0xff]  }
 0x1fd   : > { %864 = vst [vmem:[%s2964_s6 + $0x18] sm:$0xf] %v859_v61  ;;  %v1893_v0 = vpop.f32.mrb[3].mxu1  ;;  %1936 = vmatprep.subr.bf16.mxu0 %v2518_v3 }
 0x203   : > { %v1521_v47 = vld [vmem:[%s2964_s6 + $0x10] sm:$0xf] }
 0x204   : > { %v866_v48 = vld [vmem:[%s2964_s6 + $0x10] sm:$0xff]  ;;  %v1529_v49 = vrot.slane %v1521_v47, 4  ;;  %v1522_v5 = vld [vmem:[%s2964_s6 + $0x18] sm:$0xf] }
 0x205   : > { %1917 = vmatpush3.bf16.xpose.msra.mxu1 %v866_v48  ;;  %v874_v6 = vld [vmem:[%s2964_s6 + $0x18] sm:$0xff]  ;;  %v1532_v7 = vrot.slane %v1522_v5, 4 }
 0x206   : > { %1918 = vmatprep.subr.bf16.mxu1 %v2518_v3  ;;  %v1530_v50 = vsel %vm1527_vm1, %v1528_v46, %v1529_v49  ;;  %1937 = vmatpush3.bf16.msra.mxu0 %v874_v6  ;;  %v2198_v46 = vld [vmem:[%s1118_s25 + $0x30] sm:$0xff]  }
 0x207   : > { %1536 = vst [vmem:[%s2964_s6] sm:$0xff] %v1530_v50  ;;  %1938 = vmatprep.subr.bf16.mxu0 %v2518_v3  ;;  %v1533_v8 = vsel %vm1527_vm1, %v1531_v4, %v1532_v7 }
 0x208   : > { %1537 = vst [vmem:[%s2964_s6 + $0x8] sm:$0xff] %v1533_v8  ;;  %s1259_s6 = scalar_lea.vmem [#allocation12], %s2896_s27 }
 0x209   : > { %v2200_v62 = vld [vmem:[%s1259_s6] sm:$0xff]   ;;  %v2201_v63 = vld [vmem:[%s1259_s6 + $0x8] sm:$0xff]   ;;  %v2202_v6 = vld [vmem:[%s1259_s6 + $0x10] sm:$0xff]  }
 0x20a   : > { %1939 = vmatpush3.bf16.msra.mxu0 %v875_v30  ;;  %v2203_v7 = vld [vmem:[%s1259_s6 + $0x18] sm:$0xff]   ;;  %v2204_v8 = vld [vmem:[%s1259_s6 + $0x20] sm:$0xff]  }
 0x20b   : > { %1940 = vmatprep.subr.bf16.mxu0 %v2518_v3  ;;  %v2215_v30 = vld [vmem:[%s3055_s24 + $0x38] sm:$0xff]  }
 0x20d   : > { %1919 = vmatpush3.bf16.xpose.msra.mxu1 %v867_v51  ;;  %v2199_v51 = vld [vmem:[%s1118_s25 + $0x38] sm:$0xff]  }
 0x20e   : > { %1920 = vmatprep.subr.bf16.mxu1 %v2518_v3  ;;  %1941 = vmatpush3.bf16.msra.mxu0 %v876_v31 }
 0x20f   : > { %1942 = vmatprep.subr.bf16.mxu0 %v2518_v3 }
 0x212   : > { %1943 = vmatpush3.bf16.msra.mxu0 %v877_v36 }
 0x213   : > { %1944 = vmatprep.subr.bf16.mxu0 %v2518_v3 }
 0x215   : > { %1921 = vmatpush3.bf16.xpose.msra.mxu1 %v868_v52 }
 0x216   : > { %1922 = vmatprep.subr.bf16.mxu1 %v2518_v3  ;;  %1945 = vmatpush3.bf16.msra.mxu0 %v878_v37 }
 0x217   : > { %1946 = vmatprep.subr.bf16.mxu0 %v2518_v3 }
 0x21a   : > { %1947 = vmatpush3.bf16.msra.mxu0 %v879_v38 }
 0x21b   : > { %1948 = vmatprep.subr.bf16.mxu0 %v2518_v3 }
 0x21d   : > { %1923 = vmatpush3.bf16.xpose.msra.mxu1 %v869_v53 }
 0x21e   : > { %1924 = vmatprep.subr.bf16.mxu1 %v2518_v3  ;;  %1949 = vmatpush3.bf16.msra.mxu0 %v880_v39 }
 0x21f   : > { %1974 = vmatprep.subr.bf16.mxu0 %v2518_v3 }
 0x225   : > { %1925 = vmatpush3.bf16.xpose.msra.mxu1 %v870_v54 }
 0x226   : > { %1926 = vmatprep.subr.bf16.mxu1 %v2518_v3 }
 0x22d   : > { %1927 = vmatpush3.bf16.xpose.msra.mxu1 %v871_v55 }
 0x22e   : > { %1928 = vmatprep.subr.bf16.mxu1 %v2518_v3 }
 0x235   : > { %1929 = vmatpush3.bf16.xpose.msra.mxu1 %v872_v56 }
 0x236   : > { %1954 = vmatprep.subr.bf16.mxu1 %v2518_v3 }
 0x23c   : > { %1931 = vmatmul.mubr.bf16.vlgmr.msra.gmra.mrb[4].mxu1 %v889_v59 }
 0x23d   : > { %1970 = vmatprep.mubr.msk.bf16.mxu1 %vm2519_vm0, %v2518_v3  ;;  %1955 = vmatpush3.bf16.msra.mxu1 %v2192_v40 }
 0x23e   : > { %1956 = vmatprep.subr.bf16.mxu1 %v2518_v3 }
 0x241   : > { %1957 = vmatpush3.bf16.msra.mxu1 %v2193_v41 }
 0x242   : > { %1958 = vmatprep.subr.bf16.mxu1 %v2518_v3 }
 0x245   : > { %1959 = vmatpush3.bf16.msra.mxu1 %v2194_v42 }
 0x246   : > { %1960 = vmatprep.subr.bf16.mxu1 %v2518_v3 }
 0x249   : > { %1961 = vmatpush3.bf16.msra.mxu1 %v2195_v43 }
 0x24a   : > { %1962 = vmatprep.subr.bf16.mxu1 %v2518_v3 }
 0x24d   : > { %1963 = vmatpush3.bf16.msra.mxu1 %v2196_v44 }
 0x24e   : > { %1964 = vmatprep.subr.bf16.mxu1 %v2518_v3 }
 0x251   : > { %1965 = vmatpush3.bf16.msra.mxu1 %v2197_v45 }
 0x252   : > { %1966 = vmatprep.subr.bf16.mxu1 %v2518_v3 }
 0x255   : > { %1967 = vmatpush3.bf16.msra.mxu1 %v2198_v46 }
 0x256   : > { %1968 = vmatprep.subr.bf16.mxu1 %v2518_v3 }
 0x259   : > { %1969 = vmatpush3.bf16.msra.mxu1 %v2199_v51 }
 0x25a   : > { %1994 = vmatprep.subr.bf16.mxu1 %v2518_v3 }
 0x2ce   : > { %v991_v9 = vpop.f32.mrb[4].mxu0 }
 0x2cf   : > { %v1912_v10 = vpop.f32.mrb[5].mxu0 }
 0x2d0   : > { %v994_v11 = vpop.f32.mrb[6].mxu0  ;;  %v2206_v10 = vld [vmem:[%s1259_s6 + $0x30] sm:$0xff]  }
 0x2d1   : > { %v1913_v12 = vpop.f32.mrb[7].mxu0  ;;  %v2207_v11 = vld [vmem:[%s1259_s6 + $0x38] sm:$0xff]  }
 0x2d2   : > { %v2208_v12 = vld [vmem:[%s3055_s24] sm:$0xff]  }
 0x30f   : > { %v1049_v18 = vpop.f32.mrb[4].mxu1 }
 0x310   : > { %v1050_v20 = vadd.f32 %v1049_v18, %v991_v9  ;;  %v1932_v21 = vpop.f32.mrb[5].mxu1  ;;  %v2205_v9 = vld [vmem:[%s1259_s6 + $0x28] sm:$0xff]   ;;  %s3214_s6 = sld [smem:[#allocation28_spill]] }
 0x311   : > { %v1052_v22 = vpop.f32.mrb[6].mxu1 }
 0x312   : > { %v1063_v23 = vadd.f32 %v1765_v19, %v1050_v20  ;;  %v1933_v25 = vpop.f32.mrb[7].mxu1  ;;  %v1776_v22 = vld [vmem:[%s1239_s9] ss:$0 sm:$0xff]  ;;  %s3215_s9 = sld [smem:[#allocation29_spill]] }
 0x313   : > { %v1777_v25 = vld [vmem:[%s1248_s1] ss:$0 sm:$0xff]  ;;  %s1501_s1 = scalar_lea.vmem %s3216_s7, %s3209_s13 }
 0x314   : > { %v1064_v28 = vmul.f32 0.17677669, %v1063_v23 }
 0x316   : > { %v1065_v29 = vadd.f32 %v1064_v28, %v1014_v27  ;;  %s1276_s27 = scalar_lea.vmem %s3214_s6, %s3209_s13  ;;  %s3217_s6 = sld [smem:[#allocation31_spill]] }
 0x317   : > { %v1779_v31 = vld [vmem:[%s1276_s27] ss:$0 sm:$0xff] }
 0x318   : > { %1066 = vmax.xlane.f32.xlu0 %v1065_v29  ;;  %s1392_s23 = scalar_lea.vmem %s3215_s9, %s3209_s13 }
 0x31c   : > { %s1510_s27 = scalar_lea.vmem %s3217_s6, %s3209_s13 }
 0x3a5   : > { %v1067_v32 = vpop.xlane.xlu0 %1066 }
 0x3a6   : > { %v1068_v33 = vsub.f32 %v1065_v29, %v1067_v32  ;;  %v2214_v29 = vld [vmem:[%s3055_s24 + $0x30] sm:$0xff]  }
 0x3a8   : > { %v1069_v34 = vmul.f32 1.442695, %v1068_v33 }
 0x3aa   : > { %2216 = vpow2.f32 %v1069_v34 }
 0x3b4   : > { %v2217_v35 = vpop.eup %2216 }
 0x3b5   : > { %1071 = vadd.xlane.f32.xlu0 %v2217_v35 }
 0x442   : > { %v1072_v47 = vpop.xlane.xlu0 %1071 }
 0x443   : > { %2218 = vrcp.f32 %v1072_v47 }
 0x44d   : > { %v2219_v48 = vpop.eup %2218 }
 0x44e   : > { %v1074_v49 = vmul.f32 %v2219_v48, %v2217_v35 }
 0x450   : > { %v1075_v50 = vpack.c.bf16 %v1074_v49, %v1074_v49 }
 0x452   : > { %1951 = vmatmul.mubr.bf16.vlgmr.msra.gmra.mrb[8].mxu0 %v1075_v50 }
 0x453   : > { %1990 = vmatprep.mubr.msk.bf16.mxu0 %vm2519_vm0, %v2518_v3  ;;  %1975 = vmatpush3.bf16.msra.mxu0 %v2200_v62 }
 0x454   : > { %1976 = vmatprep.subr.bf16.mxu0 %v2518_v3 }
 0x457   : > { %1977 = vmatpush3.bf16.msra.mxu0 %v2201_v63 }
 0x458   : > { %1978 = vmatprep.subr.bf16.mxu0 %v2518_v3 }
 0x45b   : > { %1979 = vmatpush3.bf16.msra.mxu0 %v2202_v6 }
 0x45c   : > { %1980 = vmatprep.subr.bf16.mxu0 %v2518_v3 }
 0x45f   : > { %1981 = vmatpush3.bf16.msra.mxu0 %v2203_v7 }
 0x460   : > { %1982 = vmatprep.subr.bf16.mxu0 %v2518_v3 }
 0x463   : > { %1983 = vmatpush3.bf16.msra.mxu0 %v2204_v8 }
 0x464   : > { %1984 = vmatprep.subr.bf16.mxu0 %v2518_v3 }
 0x467   : > { %1985 = vmatpush3.bf16.msra.mxu0 %v2205_v9 }
 0x468   : > { %1986 = vmatprep.subr.bf16.mxu0 %v2518_v3 }
 0x46b   : > { %1987 = vmatpush3.bf16.msra.mxu0 %v2206_v10 }
 0x46c   : > { %1988 = vmatprep.subr.bf16.mxu0 %v2518_v3 }
 0x46f   : > { %1989 = vmatpush3.bf16.msra.mxu0 %v2207_v11 }
 0x525   : > { %v1110_v52 = vpop.f32.mrb[8].mxu0 }
 0x526   : > { %v1116_v53 = vpack.c.bf16 %v1110_v52, %v1110_v52  ;;  %v1952_v54 = vpop.f32.mrb[9].mxu0 }
 0x527   : > { %v1113_v55 = vpop.f32.mrb[10].mxu0  ;;  %v1798_v54 = vld [vmem:[%s1501_s1] ss:$0 sm:$0xff] }
 0x528   : > { %v1953_v56 = vpop.f32.mrb[11].mxu0  ;;  %1971 = vmatmul.mubr.bf16.vlgmr.msra.gmra.mrb[8].mxu1 %v1116_v53 }
 0x529   : > { %2010 = vmatprep.mubr.msk.bf16.mxu1 %vm2519_vm0, %v2518_v3  ;;  %1995 = vmatpush3.bf16.msra.mxu1 %v2208_v12  ;;  %v1799_v56 = vld [vmem:[%s1510_s27] ss:$0 sm:$0xff] }
 0x52a   : > { %1996 = vmatprep.subr.bf16.mxu1 %v2518_v3 }
 0x52d   : > { %1997 = vmatpush3.bf16.msra.mxu1 %v2209_v13 }
 0x52e   : > { %1998 = vmatprep.subr.bf16.mxu1 %v2518_v3 }
 0x531   : > { %1999 = vmatpush3.bf16.msra.mxu1 %v2210_v14 }
 0x532   : > { %2000 = vmatprep.subr.bf16.mxu1 %v2518_v3 }
 0x535   : > { %2001 = vmatpush3.bf16.msra.mxu1 %v2211_v15 }
 0x536   : > { %2002 = vmatprep.subr.bf16.mxu1 %v2518_v3 }
 0x539   : > { %2003 = vmatpush3.bf16.msra.mxu1 %v2212_v16 }
 0x53a   : > { %2004 = vmatprep.subr.bf16.mxu1 %v2518_v3 }
 0x53d   : > { %2005 = vmatpush3.bf16.msra.mxu1 %v2213_v17 }
 0x53e   : > { %2006 = vmatprep.subr.bf16.mxu1 %v2518_v3 }
 0x541   : > { %2007 = vmatpush3.bf16.msra.mxu1 %v2214_v29 }
 0x542   : > { %2008 = vmatprep.subr.bf16.mxu1 %v2518_v3  ;;  %v1789_v3 = vld [vmem:[%s1392_s23] ss:$0 sm:$0xff] }
 0x545   : > { %2009 = vmatpush3.bf16.msra.mxu1 %v2215_v30 }
 0x5fb   : > { %v1217_v57 = vpop.f32.mrb[8].mxu1 }
 0x5fc   : > { %v1226_v58 = vadd.f32 %v1217_v57, %v2927_v24  ;;  %v1972_v59 = vpop.f32.mrb[9].mxu1 }
 0x5fd   : > { %v1220_v60 = vpop.f32.mrb[10].mxu1 }
 0x5fe   : > { %1227 = vadd.xlane.f32.xlu1 %v1226_v58  ;;  %v1973_v61 = vpop.f32.mrb[11].mxu1 }
 0x68b   : > { %v1228_v0 = vpop.xlane.xlu1 %1227 }
 0x68c   : > { %v1229_v1 = vmul.f32 0.03125, %v1228_v0 }
 0x68e   : > { %v1230_v24 = vsub.f32 %v1226_v58, %v1229_v1 }
 0x690   : > { %v1231_v4 = vmul.f32 %v3046_v2, %v1230_v24 }
 0x692   : > { %v1232_v5 = vmul.f32 %v1231_v4, %v1231_v4 }
 0x694   : > { %1233 = vadd.xlane.f32.xlu1 %v1232_v5 }
 0x721   : > { %v1234_v18 = vpop.xlane.xlu1 %1233 }
 0x722   : > { %v1235_v19 = vmul.f32 0.03125, %v1234_v18 }
 0x724   : > { %v1236_v20 = vadd.f32 1e-05, %v1235_v19 }
 0x726   : > { %2220 = vrsqrt.f32 %v1236_v20 }
 0x730   : > { %v2221_v21 = vpop.eup %2220 }
 0x731   : > { %v1238_v23 = vmul.f32 %v2221_v21, %v1231_v4 }
 0x733   : > { %v1247_v26 = vmul.f32 %v1776_v22, %v1238_v23 }
 0x735   : > { %v1256_v27 = vadd.f32 %v1777_v25, %v1247_v26 }
 0x737   : > { %v1257_v28 = vpack.c.bf16 %v1256_v27, %v1256_v27 }
 0x739   : > { %1991 = vmatmul.mubr.bf16.vlgmr.msra.gmra.mrb[12].mxu0 %v1257_v28 }
 0x80c   : > { %v1366_v32 = vpop.f32.mrb[12].mxu0 }
 0x80d   : > { %v1367_v33 = vadd.f32 %v1779_v31, %v1366_v32  ;;  %v1992_v34 = vpop.f32.mrb[13].mxu0 }
 0x80e   : > { %v1369_v35 = vpop.f32.mrb[14].mxu0 }
 0x80f   : > { %v1372_v36 = vmax.f32 %v1367_v33, 0.0  ;;  %v1993_v37 = vpop.f32.mrb[15].mxu0 }
 0x811   : > { %v1373_v38 = vpack.c.bf16 %v1372_v36, %v1372_v36 }
 0x813   : > { %2011 = vmatmul.mubr.bf16.vlgmr.msra.gmra.mrb[12].mxu1 %v1373_v38 }
 0x8e6   : > { %v1482_v39 = vpop.f32.mrb[12].mxu1 }
 0x8e7   : > { %v1483_v40 = vadd.f32 %v1789_v3, %v1482_v39  ;;  %v2012_v41 = vpop.f32.mrb[13].mxu1 }
 0x8e8   : > { %v1485_v42 = vpop.f32.mrb[14].mxu1 }
 0x8e9   : > { %v2013_v43 = vpop.f32.mrb[15].mxu1  ;;  %v1488_v44 = vadd.f32 %v1483_v40, %v1256_v27 }
 0x8eb   : > { %1489 = vadd.xlane.f32.xlu0 %v1488_v44 }
 0x978   : > { %v1490_v45 = vpop.xlane.xlu0 %1489 }
 0x979   : > { %v1491_v46 = vmul.f32 0.03125, %v1490_v45 }
 0x97b   : > { %v1492_v47 = vsub.f32 %v1488_v44, %v1491_v46 }
 0x97d   : > { %v1493_v48 = vmul.f32 %v3046_v2, %v1492_v47 }
 0x97f   : > { %v1494_v49 = vmul.f32 %v1493_v48, %v1493_v48 }
 0x981   : > { %1495 = vadd.xlane.f32.xlu1 %v1494_v49 }
 0xa0e   : > { %v1496_v50 = vpop.xlane.xlu1 %1495 }
 0xa0f   : > { %v1497_v51 = vmul.f32 0.03125, %v1496_v50 }
 0xa11   : > { %v1498_v52 = vadd.f32 1e-05, %v1497_v51 }
 0xa13   : > { %2222 = vrsqrt.f32 %v1498_v52 }
 0xa1d   : > { %v2223_v53 = vpop.eup %2222 }
 0xa1e   : > { %v1500_v55 = vmul.f32 %v2223_v53, %v1493_v48  ;;  %1542 = sbr.rel (%p1800_p4) target bundleno = 2597 (0xa25), region = 112 }
 0xa20   : > { %v1509_v57 = vmul.f32 %v1798_v54, %v1500_v55 }
 0xa22   : > { %v1518_v58 = vadd.f32 %v1799_v56, %v1509_v57 }
 0xa24   : > { %1538 = vst [vmem:[#allocation3] sm:$0xff] %v1518_v58  ;;  %1543 = vst [vmem:[%s2890_s11] sm:$0xff] (!%p1800_p4), %v1518_v58 }
 0xa25 PF: > { %s1802_s21 = sshll.u32 %s2492_s17, 7  ;;  %s3218_s23 = sld [smem:[#allocation32_spill]] }
 0xa26   : > { %s1558_s22 = sshll.u32 %s2890_s11, 4  ;;  %s1545_s7 = scalar_lea.sflag [#allocation6], %s2866_s2  ;;  %s1559_s22 = int_to_ptr.vmem [resolvable:$true] %s1558_s22 }
 0xa27   : > { %s2394_s1 = scalar_lea.vmem %s1559_s22, 128  ;;  %p3219_p10 = scmp.ne.s32.totalorder %s3202_s12, 0 }
 0xa28   : > { %p2395_p9 = scmp.ne.s32.totalorder %s1559_s22, %s2394_s1  ;;  %s2521_s13 = smov [#allocation15]  }
 0xa29   : > { %s2398_s3 = sshll.u32 %s2521_s13, 4  ;;  %s2399_s3 = int_to_ptr.vmem [resolvable:$false] %s2398_s3 }
 0xa2a   : > { %p2396_p1 = pnand %p2395_p9, %p3219_p10  ;;  %s2400_s25 = scalar_lea.vmem %s2399_s3, 256 }
 0xa2b   : > { %s3103_s24 = scalar_lea.hbm %s3218_s23, %s1802_s21  ;;  %p2401_p11 = scmp.lt.s32.totalorder %s1559_s22, %s2399_s3 }
 0xa2c   : > { %p2397_p5 = pneg %p2396_p1  ;;  %p2402_p13 = scmp.lt.s32.totalorder %s2400_s25, %s2394_s1 }
 0xa2e   : > { %p2403_p0 = por %p2402_p13, %p2401_p11 }
 0xa30   : > { %p2404_p12 = pnand %p2403_p0, %p2397_p5 }
 0xa32   : > { %2407 = shalt.err (!%p2404_p12)
}
 0xa33   : > { %s2408_s17 = scalar_lea.hbm %s3103_s24, 128  ;;  %s2412_s6 = scalar_lea.hbm %s3218_s23, 384 }
 0xa34   : > { %p2409_p6 = scmp.ne.s32.totalorder %s3103_s24, %s2408_s17  ;;  %p2413_p7 = scmp.lt.u32.totalorder %s3103_s24, %s3218_s23 }
 0xa35   : > { %p2414_p3 = scmp.lt.u32.totalorder %s2412_s6, %s2408_s17  ;;  %p2416_p9 = scmp.lt.u32.totalorder %s2408_s17, %s3103_s24 }
 0xa36   : > { %p2410_p2 = pnand %p2409_p6, %p3219_p10 }
 0xa37   : > { %p2415_p4 = por %p2414_p3, %p2413_p7 }
 0xa38   : > { %p2411_p8 = pneg %p2410_p2 }
 0xa39   : > { %p2417_p1 = por %p2416_p9, %p2415_p4 }
 0xa3b   : > { %p2418_p5 = pnand %p2417_p1, %p2411_p8 }
 0xa3d   : > { %2421 = shalt.err (!%p2418_p5)
}
 0xa3e   : > { %2036 = dma.vmem_to_hbm [thread:$0]  (%p3219_p10), %s1559_s22, 128, %s3103_s24, %s1545_s7  }
 0xa3f PF: > { %p2073_p11 = scmp.ge.s32.totalorder %s2504_s20, 2  ;;  %s1570_s5 = sand.u32 1, %s2476_s29  }
 0xa40   : > { %p3220_p13 = scmp.ne.s32.totalorder %s3203_s28, 0  ;;  %s1571_s9 = scalar_lea.sflag [#allocation6], %s1570_s5 }
 0xa42   : > { %p2059_p0 = pnand %p2073_p11, %p3220_p13 }
 0xa44   : > { %2471 = dma.done.wait (!%p2059_p0), %s1571_s9, 128  }
 0xa45   : > { %2473 = vsyncadd (!%p2059_p0), %s1571_s9, 4294967168  ;;  %s33_s20 = sadd.s32 1, %s2504_s20   ;;  %s3221_s29 = smov %s2480_s30 }
 0xa46   : > { %p30_p12 = scmp.ge.s32.totalorder %s33_s20, 8   ;;  %s3222_s30 = smov %s2484_s15 }
 0xa47   : > { %s3223_s15 = smov %s2822_s16  ;;  %s3224_s16 = smov %s2496_s18 }
 0xa48   : > { %s3225_s17 = smov %s2500_s19  ;;  %s3226_s18 = smov %s3229_s26 }
 0xa49   : > { %s3227_s19 = smov %s3233_s14  ;;  %32 = sbr.rel (!%p30_p12) target bundleno = 22 (0x16), region = 166 }
 0xa50   :  { %1576 = vsyncpa [#allocation5], 1 }
 0xa51   :  { %1578 = vsyncpa [#allocation5 + $0x1], 1 }
 0xa52   :  { %1579 = vsyncpa [#allocation8], 1 }
 0xa53   :  { %1580 = vsyncpa [#allocation11], 1 }
 0xa54   :  { %1581 = vsyncpa [#allocation14], 1 }
 0xa55   :  { %1582 = vsyncpa [#allocation6], 1 }
 0xa56   :  { %1584 = vsyncpa [#allocation6 + $0x1], 1 }

</bundles_post_ra>
